<compile_context>
chip_gen: v7x
topology: tpu7x:2x2x1
jax: 0.10.0
libtpu: 0.0.40
codegen_flags: <defaults>
</compile_context>

<pallas_src>
import functools
import math

import jax
import jax.numpy as jnp
from jax.experimental import pallas as pl
from jax.experimental.pallas import tpu as pltpu


LANES = 128            # lane axis width
DET_TILE_R_MAX = 256   # max rows per detection grid step (multiple of 8)
SEG_TILE_R_MAX = 512   # max rows per segmentation grid step (multiple of 8)
BLOCK_BUDGET = 8 * 1024 * 1024   # ~bytes per (all-inputs) block; x2 for dbl-buffer
NAUX = 9               # tx, ty, tw, th, anchor_w, anchor_h, pos, atan(tw/th), cls_idx
EPS = 1e-7


# -----------------------------------------------------------------------------
# small host helpers
# -----------------------------------------------------------------------------
def _round_up(a, b):
    return -(-a // b) * b


def _pick_tile(rows, bytes_per_row, max_tile):
    """Largest multiple-of-8 tile under the per-block byte budget / row count."""
    t = max(8, min(max_tile, (BLOCK_BUDGET // max(bytes_per_row, 1)) // 8 * 8))
    return min(t, _round_up(max(rows, 1), 8))


@functools.lru_cache(maxsize=1)
def _vmem_limit_bytes():
    """Chip-aware scoped-VMEM limit: ~75% of capacity, capped for safety."""
    cap = 64 * 1024 * 1024   # conservative default = v7x per-TC capacity
    try:
        info = pltpu.get_tpu_info()
        c = getattr(info, "vmem_capacity_bytes", None)
        if c:
            cap = int(c)
    except Exception:
        pass
    return int(min(cap * 3 // 4, 100 * 1024 * 1024))


# -----------------------------------------------------------------------------
# in-kernel helpers
# -----------------------------------------------------------------------------
def _bce_with_logits(x, y):
    # pos_weight = 1.0 -> numerically-stable BCE with logits (elementwise)
    return jnp.maximum(x, 0.0) - x * y + jnp.log(1.0 + jnp.exp(-jnp.abs(x)))


def _atan_pos(x):
    # polynomial arctan for x >= 0 (pred w/h ratio); max abs err ~1e-5.
    inv = x > 1.0
    z = jnp.where(inv, 1.0 / jnp.maximum(x, 1e-12), x)
    z2 = z * z
    poly = z * (0.9998660 + z2 * (-0.3302995 + z2 * (0.1801410
               + z2 * (-0.0851330 + z2 * 0.0208351))))
    return jnp.where(inv, (math.pi / 2.0) - poly, poly)


def _sum_rows_to_8(x):
    """(R, W) -> (8, W) by summing 8-row groups: static slices, VPU adds only."""
    r = x.shape[0]
    acc = x[0:8]
    for i in range(1, r // 8):
        acc = acc + x[i * 8:(i + 1) * 8]
    return acc


# -----------------------------------------------------------------------------
# Pallas kernels
# -----------------------------------------------------------------------------
def det_layer_kernel(p_ref, aux_ref, out_ref, *, n_valid):
    """One detection layer, tiled over the flattened-cell row axis.

    p_ref   : VMEM (5+nc, tile_r, 128) raw prediction logits (channel-major)
    aux_ref : VMEM (NAUX, tile_r, 128)
              rows = [tx, ty, tw, th, aw, ah, pos, atan(tw/(th+eps)), cls_idx]
    out_ref : VMEM (4, 8, 128) resident accumulator:
              [box_partial, npos_partial, obj_partial, cls_partial]
    n_valid : static number of real (unpadded) cells in this layer.
    """
    t = pl.program_id(0)
    tile_r = p_ref.shape[1]
    nc = p_ref.shape[0] - 5

    @pl.when(t == 0)
    def _init():
        out_ref[...] = jnp.zeros_like(out_ref)

    sig = jax.nn.sigmoid

    # decode predictions (yolov5 v5/v6 style) — dense (tile_r, 128) slabs
    px = sig(p_ref[0]) * 2.0 - 0.5
    py = sig(p_ref[1]) * 2.0 - 0.5
    pw = (sig(p_ref[2]) * 2.0) ** 2 * aux_ref[4]
    ph = (sig(p_ref[3]) * 2.0) ** 2 * aux_ref[5]

    tx, ty = aux_ref[0], aux_ref[1]
    tw, th = aux_ref[2], aux_ref[3]
    pos = aux_ref[6]
    atan_t = aux_ref[7]          # hoisted target-only arctan term
    cls_idx = aux_ref[8]         # class index as f32 (replaces one-hot input)

    # ---- CIoU (xywh -> xyxy), exact divides for parity ----
    b1x1, b1x2 = px - pw * 0.5, px + pw * 0.5
    b1y1, b1y2 = py - ph * 0.5, py + ph * 0.5
    b2x1, b2x2 = tx - tw * 0.5, tx + tw * 0.5
    b2y1, b2y2 = ty - th * 0.5, ty + th * 0.5

    inter_w = jnp.maximum(jnp.minimum(b1x2, b2x2) - jnp.maximum(b1x1, b2x1), 0.0)
    inter_h = jnp.maximum(jnp.minimum(b1y2, b2y2) - jnp.maximum(b1y1, b2y1), 0.0)
    inter = inter_w * inter_h
    union = pw * ph + tw * th - inter + EPS
    iou = inter / union

    cw = jnp.maximum(b1x2, b2x2) - jnp.minimum(b1x1, b2x1)
    ch = jnp.maximum(b1y2, b2y2) - jnp.minimum(b1y1, b2y1)
    c2 = cw * cw + ch * ch + EPS
    rho2 = ((b2x1 + b2x2 - b1x1 - b1x2) ** 2 +
            (b2y1 + b2y2 - b1y1 - b1y2) ** 2) * 0.25
    atan_p = _atan_pos(pw / (ph + EPS))
    v = (4.0 / (math.pi ** 2)) * (atan_t - atan_p) ** 2
    alpha = v / (v - iou + (1.0 + EPS))
    ciou = iou - (rho2 / c2 + v * alpha)

    # ---- validity mask: padded tail cells contribute 0 to the obj BCE ----
    base = t * (tile_r * LANES)
    rid = jax.lax.broadcasted_iota(jnp.int32, (tile_r, LANES), 0)
    lid = jax.lax.broadcasted_iota(jnp.int32, (tile_r, LANES), 1)
    valid = ((base + rid * LANES + lid) < n_valid).astype(jnp.float32)

    # ---- objectness: target is clamped CIoU at positive cells (gr = 1) ----
    tobj = pos * jnp.maximum(ciou, 0.0)
    obj_term = valid * _bce_with_logits(p_ref[4], tobj)

    # ---- classification BCE (one-hot target formed in-kernel from cls_idx);
    #      two partial accumulators break the serial add chain ----
    if nc > 1:
        cls0 = jnp.zeros_like(pos)
        cls1 = jnp.zeros_like(pos)
        for c in range(nc):
            tgt = (cls_idx == c).astype(jnp.float32)
            term = _bce_with_logits(p_ref[5 + c], tgt)
            if c % 2 == 0:
                cls0 = cls0 + term
            else:
                cls1 = cls1 + term
        cls_term = pos * (cls0 + cls1)
    else:
        cls_term = jnp.zeros_like(pos)

    out_ref[0] = out_ref[0] + _sum_rows_to_8(pos * (1.0 - ciou))
    out_ref[1] = out_ref[1] + _sum_rows_to_8(pos)
    out_ref[2] = out_ref[2] + _sum_rows_to_8(obj_term)
    out_ref[3] = out_ref[3] + _sum_rows_to_8(cls_term)


def seg_bce_kernel(dap_ref, dag_ref, llp_ref, llg_ref, out_ref):
    """BCE-with-logits partial sums for both segmentation maps, tiled on rows.

    inputs  : VMEM (tile_r, W) each (da pred/gt, ll pred/gt) — no host stacking
    out_ref : VMEM (2, 8, W) resident per-lane accumulator [da, ll]
    """
    t = pl.program_id(0)

    @pl.when(t == 0)
    def _init():
        out_ref[...] = jnp.zeros_like(out_ref)

    out_ref[0] = out_ref[0] + _sum_rows_to_8(
        _bce_with_logits(dap_ref[...], dag_ref[...]))
    out_ref[1] = out_ref[1] + _sum_rows_to_8(
        _bce_with_logits(llp_ref[...], llg_ref[...]))


# -----------------------------------------------------------------------------
# wrappers around pallas_call
# -----------------------------------------------------------------------------
def det_layer_losses(p3d, aux3d, *, tile_r, n_valid):
    """Returns (4,) = [box_sum, npos, obj_sum, cls_sum] for one layer."""
    n_ch, rows_pad, _ = p3d.shape
    n_tiles = rows_pad // tile_r
    kernel = functools.partial(det_layer_kernel, n_valid=n_valid)
    out = pl.pallas_call(
        kernel,
        out_shape=jax.ShapeDtypeStruct((4, 8, LANES), jnp.float32),
        grid=(n_tiles,),
        in_specs=[pl.BlockSpec((n_ch, tile_r, LANES), lambda t: (0, t, 0)),
                  pl.BlockSpec((NAUX, tile_r, LANES), lambda t: (0, t, 0))],
        out_specs=pl.BlockSpec((4, 8, LANES), lambda t: (0, 0, 0)),
        compiler_params=pltpu.CompilerParams(
            dimension_semantics=("arbitrary",),       # accumulates across tiles
            vmem_limit_bytes=_vmem_limit_bytes()),
    )(p3d, aux3d)
    return out.sum(axis=(1, 2))


def seg_bce_sums(da_p, da_g, ll_p, ll_g, *, tile_r):
    """Returns (2,) BCE-with-logits sums for [drivable-area, lane-line]."""
    rows_pad, w_pad = da_p.shape
    n_tiles = rows_pad // tile_r
    in_spec = pl.BlockSpec((tile_r, w_pad), lambda t: (t, 0))
    out = pl.pallas_call(
        seg_bce_kernel,
        out_shape=jax.ShapeDtypeStruct((2, 8, w_pad), jnp.float32),
        grid=(n_tiles,),
        in_specs=[in_spec, in_spec, in_spec, in_spec],
        out_specs=pl.BlockSpec((2, 8, w_pad), lambda t: (0, 0, 0)),
        compiler_params=pltpu.CompilerParams(
            dimension_semantics=("arbitrary",),
            vmem_limit_bytes=_vmem_limit_bytes()),
    )(da_p, da_g, ll_p, ll_g)
    return out.sum(axis=(1, 2))


# -----------------------------------------------------------------------------
# host-side (XLA) layout preparation — one cheap pass per tensor, no concat
# -----------------------------------------------------------------------------
def _prep_det_layer(p, txy, twh, pos, cls_idx, anchors_wh):
    """Lay out one detection layer as lane-dense channel-major (rows, 128) slabs."""
    B, na, H, W, C = p.shape
    n = B * na * H * W
    rows = -(-n // LANES)
    bytes_per_row = (C + NAUX) * LANES * 4
    tile_r = _pick_tile(rows, bytes_per_row, DET_TILE_R_MAX)
    rows_pad = _round_up(rows, tile_r)
    pad = rows_pad * LANES - n

    p3d = jnp.pad(p.reshape(n, C).T.astype(jnp.float32),
                  ((0, 0), (0, pad))).reshape(C, rows_pad, LANES)

    def _flat(x):
        return x.reshape(n).astype(jnp.float32)

    def _pad1(x, v):
        return jnp.pad(x, (0, pad), constant_values=v)

    tx, ty = _flat(txy[..., 0]), _flat(txy[..., 1])
    tw, th = _flat(twh[..., 0]), _flat(twh[..., 1])
    aw = jnp.broadcast_to(anchors_wh[None, :, 0, None, None], (B, na, H, W)).reshape(n)
    ah = jnp.broadcast_to(anchors_wh[None, :, 1, None, None], (B, na, H, W)).reshape(n)
    atan_t = jnp.arctan(tw / (th + EPS))          # target-only term hoisted

    aux3d = jnp.stack([
        _pad1(tx, 0.0), _pad1(ty, 0.0), _pad1(tw, 1.0), _pad1(th, 1.0),
        _pad1(aw.astype(jnp.float32), 1.0), _pad1(ah.astype(jnp.float32), 1.0),
        _pad1(_flat(pos), 0.0), _pad1(atan_t, math.pi / 4.0),
        _pad1(_flat(cls_idx), -1.0),
    ], axis=0).reshape(NAUX, rows_pad, LANES)

    return p3d, aux3d, tile_r, n


def _prep_seg(pred, gt):
    """(B, 1, H, W) -> lane-dense (rows_pad, w_pad) slab.

    Padding uses (logit=+100, target=1) so padded cells contribute exactly 0
    to the BCE sum (no bias when dividing by the true element count).
    """
    W = pred.shape[-1]
    p2 = pred.reshape(-1, W).astype(jnp.float32)
    g2 = gt.reshape(-1, W).astype(jnp.float32)
    rows = p2.shape[0]
    w_pad = _round_up(W, LANES)
    bytes_per_row = 4 * w_pad * 4          # 4 operands (da/ll pred+gt), f32
    tile_r = _pick_tile(rows, bytes_per_row, SEG_TILE_R_MAX)
    rows_pad = _round_up(rows, tile_r)
    p2 = jnp.pad(p2, ((0, rows_pad - rows), (0, w_pad - W)), constant_values=100.0)
    g2 = jnp.pad(g2, ((0, rows_pad - rows), (0, w_pad - W)), constant_values=1.0)
    return p2, g2, tile_r, rows * W


# -----------------------------------------------------------------------------
# YolopLoss forward (glue in plain JAX, hot loops in Pallas)
# -----------------------------------------------------------------------------
def yolop_loss_forward(det_p, det_txy, det_twh, det_pos, det_cls_idx,
                       seg_da_pred, seg_da_gt, seg_ll_pred, seg_ll_gt,
                       anchors_grid, *, num_classes, batch_size):
    nl = len(det_p)
    balance = [4.0, 1.0, 0.4] if nl == 3 else [4.0, 1.0, 0.25, 0.06, 0.02][:nl]
    # yolov5 hyper-parameter gains (img size 640 assumed; 3/nl == 1 for nl=3)
    hyp_box = 0.05 * 3.0 / nl
    hyp_obj = 1.0 * 3.0 / nl
    hyp_cls = 0.5 * num_classes / 80.0 * 3.0 / nl

    lbox = jnp.float32(0.0)
    lobj = jnp.float32(0.0)
    lcls = jnp.float32(0.0)
    for i in range(nl):
        p3d, aux3d, tile_r, n_valid = _prep_det_layer(
            det_p[i], det_txy[i], det_twh[i], det_pos[i], det_cls_idx[i],
            anchors_grid[i])
        stats = det_layer_losses(p3d, aux3d, tile_r=tile_r, n_valid=n_valid)
        box_sum, npos, obj_sum, cls_sum = stats[0], stats[1], stats[2], stats[3]
        safe_n = jnp.maximum(npos, 1.0)
        lbox = lbox + jnp.where(npos > 0, box_sum / safe_n, 0.0)
        lobj = lobj + obj_sum * (balance[i] / float(n_valid))   # mean * balance
        if num_classes > 1:
            lcls = lcls + jnp.where(npos > 0,
                                    cls_sum / (safe_n * num_classes), 0.0)

    box_loss = lbox * hyp_box
    obj_loss = lobj * hyp_obj
    cls_loss = lcls * hyp_cls
    det_loss = (box_loss + obj_loss + cls_loss) * batch_size  # yolov5 loss * bs
    del det_loss   # computed (as in yolov5) but not part of the YolopLoss sum

    # ---- segmentation: both BCE maps reduced in one 4-input call ----
    da_p, da_g, da_tile, da_cnt = _prep_seg(seg_da_pred, seg_da_gt)
    ll_p, ll_g, ll_tile, ll_cnt = _prep_seg(seg_ll_pred, seg_ll_gt)
    assert da_p.shape == ll_p.shape and da_tile == ll_tile
    sums = seg_bce_sums(da_p, da_g, ll_p, ll_g, tile_r=da_tile)
    seg_da_ce = sums[0] / da_cnt
    seg_ll_ce = sums[1] / ll_cnt
    # TODO(synk): reference forward calls the segmentation BCEWithLogitsLoss
    # criteria with no arguments (broken as written); implemented here as
    # mean BCE(pred, gt). The "iou" criterion is the same BCE on the same
    # lane-line tensors, so its result is reused instead of re-launching.
    seg_iou_ll = seg_ll_ce

    loss = box_loss + obj_loss + cls_loss + seg_da_ce + seg_ll_ce + seg_iou_ll
    return loss, box_loss, obj_loss, cls_loss, seg_da_ce, seg_ll_ce, seg_iou_ll


# -----------------------------------------------------------------------------
# deterministic synthetic inputs + run
# -----------------------------------------------------------------------------
if __name__ == "__main__":
    key = jax.random.PRNGKey(0)

    B = 2
    num_classes = 8          # small-shape stand-in for the default 80
    nl, na = 3, 3
    C = 5 + num_classes
    strides = jnp.array([8.0, 16.0, 32.0], jnp.float32)
    anchors_px = jnp.array(
        [[3, 9, 5, 11, 4, 20],
         [7, 18, 6, 39, 12, 31],
         [19, 50, 38, 81, 68, 157]], jnp.float32).reshape(nl, na, 2)
    anchors_grid = anchors_px / strides[:, None, None]   # yolov5: anchors / stride
    spatial = [(16, 16), (8, 8), (4, 4)]

    keys = jax.random.split(key, nl + 4)

    # TODO(synk): yolov5 build_targets (GT-box -> anchor/cell assignment with
    # ratio filtering and neighbor cells) is a dynamic scatter with no clean
    # Pallas fit; dense per-cell targets are generated here as deterministic
    # synthetic glue instead.
    det_p, det_txy, det_twh, det_pos, det_cls_idx = [], [], [], [], []
    for i in range(nl):
        H, W = spatial[i]
        k1, k2, k3, k4, k5 = jax.random.split(keys[i], 5)
        det_p.append(jax.random.normal(k1, (B, na, H, W, C), jnp.float32))
        det_pos.append((jax.random.uniform(k2, (B, na, H, W)) < 0.1)
                       .astype(jnp.float32))
        det_txy.append(jax.random.uniform(k3, (B, na, H, W, 2),
                                          minval=-0.5, maxval=1.5))
        det_twh.append(jax.random.uniform(k4, (B, na, H, W, 2),
                                          minval=0.5, maxval=6.0))
        det_cls_idx.append(jax.random.randint(k5, (B, na, H, W), 0, num_classes)
                           .astype(jnp.int32))

    kd1, kd2, kl1, kl2 = keys[nl:nl + 4]
    Hs, Ws = 16, 128
    seg_da_pred = jax.random.normal(kd1, (B, 1, Hs, Ws), jnp.float32)
    seg_da_gt = (jax.random.uniform(kd2, (B, 1, Hs, Ws)) < 0.5).astype(jnp.float32)
    seg_ll_pred = jax.random.normal(kl1, (B, 1, Hs, Ws), jnp.float32)
    seg_ll_gt = (jax.random.uniform(kl2, (B, 1, Hs, Ws)) < 0.5).astype(jnp.float32)

    fwd = jax.jit(functools.partial(yolop_loss_forward,
                                    num_classes=num_classes, batch_size=B))
    out = fwd(det_p, det_txy, det_twh, det_pos, det_cls_idx,
              seg_da_pred, seg_da_gt, seg_ll_pred, seg_ll_gt,
              [anchors_grid[i] for i in range(nl)])
    out = jax.block_until_ready(out)

    loss, box_l, obj_l, cls_l, da_ce, ll_ce, ll_iou = out
    assert all(bool(jnp.isfinite(v)) for v in out)
    print("KERNEL_OK")
</pallas_src>

<mosaic_0001>
module attributes {stable_mosaic.version = 11 : i64} {
  func.func @det_layer_kernel(%arg0: i32, %arg1: memref<13x16x128xf32, #tpu.memory_space<vmem>>, %arg2: memref<9x16x128xf32, #tpu.memory_space<vmem>>, %arg3: memref<4x8x128xf32, #tpu.memory_space<vmem>>) attributes {dimension_semantics = [#tpu.dimension_semantics<arbitrary>], iteration_bounds = array<i64: 1>, scalar_prefetch = 0 : i64, scratch_operands = 0 : i64, tpu.core_type = #tpu.core_type<tc>, window_params = [{transform_indices = @transform_0, window_bounds = array<i64: 13, 16, 128>}, {transform_indices = @transform_1, window_bounds = array<i64: 9, 16, 128>}, {pipeline_mode = #tpu.pipeline_mode<synchronous>, transform_indices = @transform_2, window_bounds = array<i64: 4, 8, 128>}]} {
    %c0_i32 = arith.constant 0 : i32
    %0 = arith.cmpi eq, %arg0, %c0_i32 : i32
    %1 = arith.extui %0 : i1 to i32
    %c0_i32_0 = arith.constant 0 : i32
    %2 = arith.cmpi ne, %1, %c0_i32_0 : i32
    scf.if %2 {
      %cst_151 = arith.constant 0.000000e+00 : f32
      %394 = vector.broadcast %cst_151 : f32 to vector<4x8x128xf32>
      %c0_152 = arith.constant 0 : index
      %c0_153 = arith.constant 0 : index
      %c0_154 = arith.constant 0 : index
      %395 = vector.load %arg3[%c0_152, %c0_153, %c0_154] : memref<4x8x128xf32, #tpu.memory_space<vmem>>, vector<4x8x128xf32>
      tpu.vector_store %arg3[%c0_152, %c0_153, %c0_154], %394 {strides = array<i32>} : memref<4x8x128xf32, #tpu.memory_space<vmem>>, vector<4x8x128xf32>,
    } else {
    }
    %c0 = arith.constant 0 : index
    %c0_1 = arith.constant 0 : index
    %c0_2 = arith.constant 0 : index
    %3 = vector.load %arg1[%c0, %c0_1, %c0_2] : memref<13x16x128xf32, #tpu.memory_space<vmem>>, vector<1x16x128xf32>
    %4 = vector.shape_cast %3 : vector<1x16x128xf32> to vector<16x128xf32>
    %5 = arith.negf %4 : vector<16x128xf32>
    %6 = math.exp %5 : vector<16x128xf32>
    %cst = arith.constant 1.000000e+00 : f32
    %7 = vector.broadcast %cst : f32 to vector<16x128xf32>
    %8 = arith.addf %7, %6 : vector<16x128xf32>
    %9 = arith.divf %7, %8 : vector<16x128xf32>
    %cst_3 = arith.constant 2.000000e+00 : f32
    %10 = vector.broadcast %cst_3 : f32 to vector<16x128xf32>
    %11 = arith.mulf %9, %10 : vector<16x128xf32>
    %cst_4 = arith.constant 5.000000e-01 : f32
    %12 = vector.broadcast %cst_4 : f32 to vector<16x128xf32>
    %13 = arith.subf %11, %12 : vector<16x128xf32>
    %c1 = arith.constant 1 : index
    %c0_5 = arith.constant 0 : index
    %c0_6 = arith.constant 0 : index
    %14 = vector.load %arg1[%c1, %c0_5, %c0_6] : memref<13x16x128xf32, #tpu.memory_space<vmem>>, vector<1x16x128xf32>
    %15 = vector.shape_cast %14 : vector<1x16x128xf32> to vector<16x128xf32>
    %16 = arith.negf %15 : vector<16x128xf32>
    %17 = math.exp %16 : vector<16x128xf32>
    %cst_7 = arith.constant 1.000000e+00 : f32
    %18 = vector.broadcast %cst_7 : f32 to vector<16x128xf32>
    %19 = arith.addf %18, %17 : vector<16x128xf32>
    %20 = arith.divf %18, %19 : vector<16x128xf32>
    %cst_8 = arith.constant 2.000000e+00 : f32
    %21 = vector.broadcast %cst_8 : f32 to vector<16x128xf32>
    %22 = arith.mulf %20, %21 : vector<16x128xf32>
    %cst_9 = arith.constant 5.000000e-01 : f32
    %23 = vector.broadcast %cst_9 : f32 to vector<16x128xf32>
    %24 = arith.subf %22, %23 : vector<16x128xf32>
    %c2 = arith.constant 2 : index
    %c0_10 = arith.constant 0 : index
    %c0_11 = arith.constant 0 : index
    %25 = vector.load %arg1[%c2, %c0_10, %c0_11] : memref<13x16x128xf32, #tpu.memory_space<vmem>>, vector<1x16x128xf32>
    %26 = vector.shape_cast %25 : vector<1x16x128xf32> to vector<16x128xf32>
    %27 = arith.negf %26 : vector<16x128xf32>
    %28 = math.exp %27 : vector<16x128xf32>
    %cst_12 = arith.constant 1.000000e+00 : f32
    %29 = vector.broadcast %cst_12 : f32 to vector<16x128xf32>
    %30 = arith.addf %29, %28 : vector<16x128xf32>
    %31 = arith.divf %29, %30 : vector<16x128xf32>
    %cst_13 = arith.constant 2.000000e+00 : f32
    %32 = vector.broadcast %cst_13 : f32 to vector<16x128xf32>
    %33 = arith.mulf %31, %32 : vector<16x128xf32>
    %34 = arith.mulf %33, %33 : vector<16x128xf32>
    %c4 = arith.constant 4 : index
    %c0_14 = arith.constant 0 : index
    %c0_15 = arith.constant 0 : index
    %35 = vector.load %arg2[%c4, %c0_14, %c0_15] : memref<9x16x128xf32, #tpu.memory_space<vmem>>, vector<1x16x128xf32>
    %36 = vector.shape_cast %35 : vector<1x16x128xf32> to vector<16x128xf32>
    %37 = arith.mulf %34, %36 : vector<16x128xf32>
    %c3 = arith.constant 3 : index
    %c0_16 = arith.constant 0 : index
    %c0_17 = arith.constant 0 : index
    %38 = vector.load %arg1[%c3, %c0_16, %c0_17] : memref<13x16x128xf32, #tpu.memory_space<vmem>>, vector<1x16x128xf32>
    %39 = vector.shape_cast %38 : vector<1x16x128xf32> to vector<16x128xf32>
    %40 = arith.negf %39 : vector<16x128xf32>
    %41 = math.exp %40 : vector<16x128xf32>
    %cst_18 = arith.constant 1.000000e+00 : f32
    %42 = vector.broadcast %cst_18 : f32 to vector<16x128xf32>
    %43 = arith.addf %42, %41 : vector<16x128xf32>
    %44 = arith.divf %42, %43 : vector<16x128xf32>
    %cst_19 = arith.constant 2.000000e+00 : f32
    %45 = vector.broadcast %cst_19 : f32 to vector<16x128xf32>
    %46 = arith.mulf %44, %45 : vector<16x128xf32>
    %47 = arith.mulf %46, %46 : vector<16x128xf32>
    %c5 = arith.constant 5 : index
    %c0_20 = arith.constant 0 : index
    %c0_21 = arith.constant 0 : index
    %48 = vector.load %arg2[%c5, %c0_20, %c0_21] : memref<9x16x128xf32, #tpu.memory_space<vmem>>, vector<1x16x128xf32>
    %49 = vector.shape_cast %48 : vector<1x16x128xf32> to vector<16x128xf32>
    %50 = arith.mulf %47, %49 : vector<16x128xf32>
    %c0_22 = arith.constant 0 : index
    %c0_23 = arith.constant 0 : index
    %c0_24 = arith.constant 0 : index
    %51 = vector.load %arg2[%c0_22, %c0_23, %c0_24] : memref<9x16x128xf32, #tpu.memory_space<vmem>>, vector<1x16x128xf32>
    %52 = vector.shape_cast %51 : vector<1x16x128xf32> to vector<16x128xf32>
    %c1_25 = arith.constant 1 : index
    %c0_26 = arith.constant 0 : index
    %c0_27 = arith.constant 0 : index
    %53 = vector.load %arg2[%c1_25, %c0_26, %c0_27] : memref<9x16x128xf32, #tpu.memory_space<vmem>>, vector<1x16x128xf32>
    %54 = vector.shape_cast %53 : vector<1x16x128xf32> to vector<16x128xf32>
    %c2_28 = arith.constant 2 : index
    %c0_29 = arith.constant 0 : index
    %c0_30 = arith.constant 0 : index
    %55 = vector.load %arg2[%c2_28, %c0_29, %c0_30] : memref<9x16x128xf32, #tpu.memory_space<vmem>>, vector<1x16x128xf32>
    %56 = vector.shape_cast %55 : vector<1x16x128xf32> to vector<16x128xf32>
    %c3_31 = arith.constant 3 : index
    %c0_32 = arith.constant 0 : index
    %c0_33 = arith.constant 0 : index
    %57 = vector.load %arg2[%c3_31, %c0_32, %c0_33] : memref<9x16x128xf32, #tpu.memory_space<vmem>>, vector<1x16x128xf32>
    %58 = vector.shape_cast %57 : vector<1x16x128xf32> to vector<16x128xf32>
    %c6 = arith.constant 6 : index
    %c0_34 = arith.constant 0 : index
    %c0_35 = arith.constant 0 : index
    %59 = vector.load %arg2[%c6, %c0_34, %c0_35] : memref<9x16x128xf32, #tpu.memory_space<vmem>>, vector<1x16x128xf32>
    %60 = vector.shape_cast %59 : vector<1x16x128xf32> to vector<16x128xf32>
    %c7 = arith.constant 7 : index
    %c0_36 = arith.constant 0 : index
    %c0_37 = arith.constant 0 : index
    %61 = vector.load %arg2[%c7, %c0_36, %c0_37] : memref<9x16x128xf32, #tpu.memory_space<vmem>>, vector<1x16x128xf32>
    %62 = vector.shape_cast %61 : vector<1x16x128xf32> to vector<16x128xf32>
    %c8 = arith.constant 8 : index
    %c0_38 = arith.constant 0 : index
    %c0_39 = arith.constant 0 : index
    %63 = vector.load %arg2[%c8, %c0_38, %c0_39] : memref<9x16x128xf32, #tpu.memory_space<vmem>>, vector<1x16x128xf32>
    %64 = vector.shape_cast %63 : vector<1x16x128xf32> to vector<16x128xf32>
    %cst_40 = arith.constant 5.000000e-01 : f32
    %65 = vector.broadcast %cst_40 : f32 to vector<16x128xf32>
    %66 = arith.mulf %37, %65 : vector<16x128xf32>
    %67 = arith.subf %13, %66 : vector<16x128xf32>
    %cst_41 = arith.constant 5.000000e-01 : f32
    %68 = vector.broadcast %cst_41 : f32 to vector<16x128xf32>
    %69 = arith.mulf %37, %68 : vector<16x128xf32>
    %70 = arith.addf %13, %69 : vector<16x128xf32>
    %cst_42 = arith.constant 5.000000e-01 : f32
    %71 = vector.broadcast %cst_42 : f32 to vector<16x128xf32>
    %72 = arith.mulf %50, %71 : vector<16x128xf32>
    %73 = arith.subf %24, %72 : vector<16x128xf32>
    %cst_43 = arith.constant 5.000000e-01 : f32
    %74 = vector.broadcast %cst_43 : f32 to vector<16x128xf32>
    %75 = arith.mulf %50, %74 : vector<16x128xf32>
    %76 = arith.addf %24, %75 : vector<16x128xf32>
    %cst_44 = arith.constant 5.000000e-01 : f32
    %77 = vector.broadcast %cst_44 : f32 to vector<16x128xf32>
    %78 = arith.mulf %56, %77 : vector<16x128xf32>
    %79 = arith.subf %52, %78 : vector<16x128xf32>
    %cst_45 = arith.constant 5.000000e-01 : f32
    %80 = vector.broadcast %cst_45 : f32 to vector<16x128xf32>
    %81 = arith.mulf %56, %80 : vector<16x128xf32>
    %82 = arith.addf %52, %81 : vector<16x128xf32>
    %cst_46 = arith.constant 5.000000e-01 : f32
    %83 = vector.broadcast %cst_46 : f32 to vector<16x128xf32>
    %84 = arith.mulf %58, %83 : vector<16x128xf32>
    %85 = arith.subf %54, %84 : vector<16x128xf32>
    %cst_47 = arith.constant 5.000000e-01 : f32
    %86 = vector.broadcast %cst_47 : f32 to vector<16x128xf32>
    %87 = arith.mulf %58, %86 : vector<16x128xf32>
    %88 = arith.addf %54, %87 : vector<16x128xf32>
    %89 = arith.minimumf %70, %82 : vector<16x128xf32>
    %90 = arith.maximumf %67, %79 : vector<16x128xf32>
    %91 = arith.subf %89, %90 : vector<16x128xf32>
    %cst_48 = arith.constant 0.000000e+00 : f32
    %92 = vector.broadcast %cst_48 : f32 to vector<16x128xf32>
    %93 = arith.maximumf %91, %92 : vector<16x128xf32>
    %94 = arith.minimumf %76, %88 : vector<16x128xf32>
    %95 = arith.maximumf %73, %85 : vector<16x128xf32>
    %96 = arith.subf %94, %95 : vector<16x128xf32>
    %cst_49 = arith.constant 0.000000e+00 : f32
    %97 = vector.broadcast %cst_49 : f32 to vector<16x128xf32>
    %98 = arith.maximumf %96, %97 : vector<16x128xf32>
    %99 = arith.mulf %93, %98 : vector<16x128xf32>
    %100 = arith.mulf %37, %50 : vector<16x128xf32>
    %101 = arith.mulf %56, %58 : vector<16x128xf32>
    %102 = arith.addf %100, %101 : vector<16x128xf32>
    %103 = arith.subf %102, %99 : vector<16x128xf32>
    %cst_50 = arith.constant 1.000000e-07 : f32
    %104 = vector.broadcast %cst_50 : f32 to vector<16x128xf32>
    %105 = arith.addf %103, %104 : vector<16x128xf32>
    %106 = arith.divf %99, %105 : vector<16x128xf32>
    %107 = arith.maximumf %70, %82 : vector<16x128xf32>
    %108 = arith.minimumf %67, %79 : vector<16x128xf32>
    %109 = arith.subf %107, %108 : vector<16x128xf32>
    %110 = arith.maximumf %76, %88 : vector<16x128xf32>
    %111 = arith.minimumf %73, %85 : vector<16x128xf32>
    %112 = arith.subf %110, %111 : vector<16x128xf32>
    %113 = arith.mulf %109, %109 : vector<16x128xf32>
    %114 = arith.mulf %112, %112 : vector<16x128xf32>
    %115 = arith.addf %113, %114 : vector<16x128xf32>
    %cst_51 = arith.constant 1.000000e-07 : f32
    %116 = vector.broadcast %cst_51 : f32 to vector<16x128xf32>
    %117 = arith.addf %115, %116 : vector<16x128xf32>
    %118 = arith.addf %79, %82 : vector<16x128xf32>
    %119 = arith.subf %118, %67 : vector<16x128xf32>
    %120 = arith.subf %119, %70 : vector<16x128xf32>
    %121 = arith.mulf %120, %120 : vector<16x128xf32>
    %122 = arith.addf %85, %88 : vector<16x128xf32>
    %123 = arith.subf %122, %73 : vector<16x128xf32>
    %124 = arith.subf %123, %76 : vector<16x128xf32>
    %125 = arith.mulf %124, %124 : vector<16x128xf32>
    %126 = arith.addf %121, %125 : vector<16x128xf32>
    %cst_52 = arith.constant 2.500000e-01 : f32
    %127 = vector.broadcast %cst_52 : f32 to vector<16x128xf32>
    %128 = arith.mulf %126, %127 : vector<16x128xf32>
    %cst_53 = arith.constant 1.000000e-07 : f32
    %129 = vector.broadcast %cst_53 : f32 to vector<16x128xf32>
    %130 = arith.addf %50, %129 : vector<16x128xf32>
    %131 = arith.divf %37, %130 : vector<16x128xf32>
    %cst_54 = arith.constant 1.000000e+00 : f32
    %132 = vector.broadcast %cst_54 : f32 to vector<16x128xf32>
    %133 = arith.cmpf ogt, %131, %132 : vector<16x128xf32>
    %cst_55 = arith.constant 9.99999996E-13 : f32
    %134 = vector.broadcast %cst_55 : f32 to vector<16x128xf32>
    %135 = arith.maximumf %131, %134 : vector<16x128xf32>
    %cst_56 = arith.constant 1.000000e+00 : f32
    %136 = vector.broadcast %cst_56 : f32 to vector<16x128xf32>
    %137 = arith.divf %136, %135 : vector<16x128xf32>
    %138 = arith.select %133, %137, %131 : vector<16x128xi1>, vector<16x128xf32>
    %139 = arith.mulf %138, %138 : vector<16x128xf32>
    %cst_57 = arith.constant 2.083510e-02 : f32
    %140 = vector.broadcast %cst_57 : f32 to vector<16x128xf32>
    %141 = arith.mulf %139, %140 : vector<16x128xf32>
    %cst_58 = arith.constant -8.513300e-02 : f32
    %142 = vector.broadcast %cst_58 : f32 to vector<16x128xf32>
    %143 = arith.addf %142, %141 : vector<16x128xf32>
    %144 = arith.mulf %139, %143 : vector<16x128xf32>
    %cst_59 = arith.constant 1.801410e-01 : f32
    %145 = vector.broadcast %cst_59 : f32 to vector<16x128xf32>
    %146 = arith.addf %145, %144 : vector<16x128xf32>
    %147 = arith.mulf %139, %146 : vector<16x128xf32>
    %cst_60 = arith.constant -0.330299497 : f32
    %148 = vector.broadcast %cst_60 : f32 to vector<16x128xf32>
    %149 = arith.addf %148, %147 : vector<16x128xf32>
    %150 = arith.mulf %139, %149 : vector<16x128xf32>
    %cst_61 = arith.constant 9.998660e-01 : f32
    %151 = vector.broadcast %cst_61 : f32 to vector<16x128xf32>
    %152 = arith.addf %151, %150 : vector<16x128xf32>
    %153 = arith.mulf %138, %152 : vector<16x128xf32>
    %cst_62 = arith.constant 1.57079637 : f32
    %154 = vector.broadcast %cst_62 : f32 to vector<16x128xf32>
    %155 = arith.subf %154, %153 : vector<16x128xf32>
    %156 = arith.select %133, %155, %153 : vector<16x128xi1>, vector<16x128xf32>
    %157 = arith.subf %62, %156 : vector<16x128xf32>
    %158 = arith.mulf %157, %157 : vector<16x128xf32>
    %cst_63 = arith.constant 0.405284733 : f32
    %159 = vector.broadcast %cst_63 : f32 to vector<16x128xf32>
    %160 = arith.mulf %159, %158 : vector<16x128xf32>
    %161 = arith.subf %160, %106 : vector<16x128xf32>
    %cst_64 = arith.constant 1.00000012 : f32
    %162 = vector.broadcast %cst_64 : f32 to vector<16x128xf32>
    %163 = arith.addf %161, %162 : vector<16x128xf32>
    %164 = arith.divf %160, %163 : vector<16x128xf32>
    %165 = arith.divf %128, %117 : vector<16x128xf32>
    %166 = arith.mulf %160, %164 : vector<16x128xf32>
    %167 = arith.addf %165, %166 : vector<16x128xf32>
    %168 = arith.subf %106, %167 : vector<16x128xf32>
    %c2048_i32 = arith.constant 2048 : i32
    %169 = arith.muli %arg0, %c2048_i32 : i32
    %170 = tpu.iota {dimensions = array<i32: 0>} : vector<16x128xi32>
    %171 = tpu.iota {dimensions = array<i32: 1>} : vector<16x128xi32>
    %c128_i32 = arith.constant 128 : i32
    %172 = vector.broadcast %c128_i32 : i32 to vector<16x128xi32>
    %173 = arith.muli %170, %172 : vector<16x128xi32>
    %174 = vector.broadcast %169 : i32 to vector<16x128xi32>
    %175 = arith.addi %174, %173 : vector<16x128xi32>
    %176 = arith.addi %175, %171 : vector<16x128xi32>
    %c1536_i32 = arith.constant 1536 : i32
    %177 = vector.broadcast %c1536_i32 : i32 to vector<16x128xi32>
    %178 = arith.cmpi slt, %176, %177 : vector<16x128xi32>
    %179 = arith.extui %178 : vector<16x128xi1> to vector<16x128xi32>
    %180 = arith.sitofp %179 : vector<16x128xi32> to vector<16x128xf32>
    %cst_65 = arith.constant 0.000000e+00 : f32
    %181 = vector.broadcast %cst_65 : f32 to vector<16x128xf32>
    %182 = arith.maximumf %168, %181 : vector<16x128xf32>
    %183 = arith.mulf %60, %182 : vector<16x128xf32>
    %c4_66 = arith.constant 4 : index
    %c0_67 = arith.constant 0 : index
    %c0_68 = arith.constant 0 : index
    %184 = vector.load %arg1[%c4_66, %c0_67, %c0_68] : memref<13x16x128xf32, #tpu.memory_space<vmem>>, vector<1x16x128xf32>
    %185 = vector.shape_cast %184 : vector<1x16x128xf32> to vector<16x128xf32>
    %cst_69 = arith.constant 0.000000e+00 : f32
    %186 = vector.broadcast %cst_69 : f32 to vector<16x128xf32>
    %187 = arith.maximumf %185, %186 : vector<16x128xf32>
    %188 = arith.mulf %185, %183 : vector<16x128xf32>
    %189 = arith.subf %187, %188 : vector<16x128xf32>
    %190 = math.absf %185 : vector<16x128xf32>
    %cst_70 = arith.constant 0.000000e+00 : f32
    %191 = vector.broadcast %cst_70 : f32 to vector<16x128xf32>
    %192 = arith.subf %191, %190 : vector<16x128xf32>
    %193 = math.exp %192 : vector<16x128xf32>
    %cst_71 = arith.constant 1.000000e+00 : f32
    %194 = vector.broadcast %cst_71 : f32 to vector<16x128xf32>
    %195 = arith.addf %194, %193 : vector<16x128xf32>
    %196 = math.log %195 : vector<16x128xf32>
    %197 = arith.addf %189, %196 : vector<16x128xf32>
    %198 = arith.mulf %180, %197 : vector<16x128xf32>
    %cst_72 = arith.constant 0.000000e+00 : f32
    %199 = vector.broadcast %cst_72 : f32 to vector<16x128xf32>
    %cst_73 = arith.constant 0.000000e+00 : f32
    %200 = vector.broadcast %cst_73 : f32 to vector<16x128xf32>
    %cst_74 = arith.constant 0.000000e+00 : f32
    %201 = vector.broadcast %cst_74 : f32 to vector<16x128xf32>
    %202 = arith.cmpf oeq, %64, %201 : vector<16x128xf32>
    %203 = arith.extui %202 : vector<16x128xi1> to vector<16x128xi32>
    %204 = arith.sitofp %203 : vector<16x128xi32> to vector<16x128xf32>
    %c5_75 = arith.constant 5 : index
    %c0_76 = arith.constant 0 : index
    %c0_77 = arith.constant 0 : index
    %205 = vector.load %arg1[%c5_75, %c0_76, %c0_77] : memref<13x16x128xf32, #tpu.memory_space<vmem>>, vector<1x16x128xf32>
    %206 = vector.shape_cast %205 : vector<1x16x128xf32> to vector<16x128xf32>
    %cst_78 = arith.constant 0.000000e+00 : f32
    %207 = vector.broadcast %cst_78 : f32 to vector<16x128xf32>
    %208 = arith.maximumf %206, %207 : vector<16x128xf32>
    %209 = arith.mulf %206, %204 : vector<16x128xf32>
    %210 = arith.subf %208, %209 : vector<16x128xf32>
    %211 = math.absf %206 : vector<16x128xf32>
    %cst_79 = arith.constant 0.000000e+00 : f32
    %212 = vector.broadcast %cst_79 : f32 to vector<16x128xf32>
    %213 = arith.subf %212, %211 : vector<16x128xf32>
    %214 = math.exp %213 : vector<16x128xf32>
    %cst_80 = arith.constant 1.000000e+00 : f32
    %215 = vector.broadcast %cst_80 : f32 to vector<16x128xf32>
    %216 = arith.addf %215, %214 : vector<16x128xf32>
    %217 = math.log %216 : vector<16x128xf32>
    %218 = arith.addf %210, %217 : vector<16x128xf32>
    %219 = arith.addf %199, %218 : vector<16x128xf32>
    %cst_81 = arith.constant 1.000000e+00 : f32
    %220 = vector.broadcast %cst_81 : f32 to vector<16x128xf32>
    %221 = arith.cmpf oeq, %64, %220 : vector<16x128xf32>
    %222 = arith.extui %221 : vector<16x128xi1> to vector<16x128xi32>
    %223 = arith.sitofp %222 : vector<16x128xi32> to vector<16x128xf32>
    %c6_82 = arith.constant 6 : index
    %c0_83 = arith.constant 0 : index
    %c0_84 = arith.constant 0 : index
    %224 = vector.load %arg1[%c6_82, %c0_83, %c0_84] : memref<13x16x128xf32, #tpu.memory_space<vmem>>, vector<1x16x128xf32>
    %225 = vector.shape_cast %224 : vector<1x16x128xf32> to vector<16x128xf32>
    %cst_85 = arith.constant 0.000000e+00 : f32
    %226 = vector.broadcast %cst_85 : f32 to vector<16x128xf32>
    %227 = arith.maximumf %225, %226 : vector<16x128xf32>
    %228 = arith.mulf %225, %223 : vector<16x128xf32>
    %229 = arith.subf %227, %228 : vector<16x128xf32>
    %230 = math.absf %225 : vector<16x128xf32>
    %cst_86 = arith.constant 0.000000e+00 : f32
    %231 = vector.broadcast %cst_86 : f32 to vector<16x128xf32>
    %232 = arith.subf %231, %230 : vector<16x128xf32>
    %233 = math.exp %232 : vector<16x128xf32>
    %cst_87 = arith.constant 1.000000e+00 : f32
    %234 = vector.broadcast %cst_87 : f32 to vector<16x128xf32>
    %235 = arith.addf %234, %233 : vector<16x128xf32>
    %236 = math.log %235 : vector<16x128xf32>
    %237 = arith.addf %229, %236 : vector<16x128xf32>
    %238 = arith.addf %200, %237 : vector<16x128xf32>
    %cst_88 = arith.constant 2.000000e+00 : f32
    %239 = vector.broadcast %cst_88 : f32 to vector<16x128xf32>
    %240 = arith.cmpf oeq, %64, %239 : vector<16x128xf32>
    %241 = arith.extui %240 : vector<16x128xi1> to vector<16x128xi32>
    %242 = arith.sitofp %241 : vector<16x128xi32> to vector<16x128xf32>
    %c7_89 = arith.constant 7 : index
    %c0_90 = arith.constant 0 : index
    %c0_91 = arith.constant 0 : index
    %243 = vector.load %arg1[%c7_89, %c0_90, %c0_91] : memref<13x16x128xf32, #tpu.memory_space<vmem>>, vector<1x16x128xf32>
    %244 = vector.shape_cast %243 : vector<1x16x128xf32> to vector<16x128xf32>
    %cst_92 = arith.constant 0.000000e+00 : f32
    %245 = vector.broadcast %cst_92 : f32 to vector<16x128xf32>
    %246 = arith.maximumf %244, %245 : vector<16x128xf32>
    %247 = arith.mulf %244, %242 : vector<16x128xf32>
    %248 = arith.subf %246, %247 : vector<16x128xf32>
    %249 = math.absf %244 : vector<16x128xf32>
    %cst_93 = arith.constant 0.000000e+00 : f32
    %250 = vector.broadcast %cst_93 : f32 to vector<16x128xf32>
    %251 = arith.subf %250, %249 : vector<16x128xf32>
    %252 = math.exp %251 : vector<16x128xf32>
    %cst_94 = arith.constant 1.000000e+00 : f32
    %253 = vector.broadcast %cst_94 : f32 to vector<16x128xf32>
    %254 = arith.addf %253, %252 : vector<16x128xf32>
    %255 = math.log %254 : vector<16x128xf32>
    %256 = arith.addf %248, %255 : vector<16x128xf32>
    %257 = arith.addf %219, %256 : vector<16x128xf32>
    %cst_95 = arith.constant 3.000000e+00 : f32
    %258 = vector.broadcast %cst_95 : f32 to vector<16x128xf32>
    %259 = arith.cmpf oeq, %64, %258 : vector<16x128xf32>
    %260 = arith.extui %259 : vector<16x128xi1> to vector<16x128xi32>
    %261 = arith.sitofp %260 : vector<16x128xi32> to vector<16x128xf32>
    %c8_96 = arith.constant 8 : index
    %c0_97 = arith.constant 0 : index
    %c0_98 = arith.constant 0 : index
    %262 = vector.load %arg1[%c8_96, %c0_97, %c0_98] : memref<13x16x128xf32, #tpu.memory_space<vmem>>, vector<1x16x128xf32>
    %263 = vector.shape_cast %262 : vector<1x16x128xf32> to vector<16x128xf32>
    %cst_99 = arith.constant 0.000000e+00 : f32
    %264 = vector.broadcast %cst_99 : f32 to vector<16x128xf32>
    %265 = arith.maximumf %263, %264 : vector<16x128xf32>
    %266 = arith.mulf %263, %261 : vector<16x128xf32>
    %267 = arith.subf %265, %266 : vector<16x128xf32>
    %268 = math.absf %263 : vector<16x128xf32>
    %cst_100 = arith.constant 0.000000e+00 : f32
    %269 = vector.broadcast %cst_100 : f32 to vector<16x128xf32>
    %270 = arith.subf %269, %268 : vector<16x128xf32>
    %271 = math.exp %270 : vector<16x128xf32>
    %cst_101 = arith.constant 1.000000e+00 : f32
    %272 = vector.broadcast %cst_101 : f32 to vector<16x128xf32>
    %273 = arith.addf %272, %271 : vector<16x128xf32>
    %274 = math.log %273 : vector<16x128xf32>
    %275 = arith.addf %267, %274 : vector<16x128xf32>
    %276 = arith.addf %238, %275 : vector<16x128xf32>
    %cst_102 = arith.constant 4.000000e+00 : f32
    %277 = vector.broadcast %cst_102 : f32 to vector<16x128xf32>
    %278 = arith.cmpf oeq, %64, %277 : vector<16x128xf32>
    %279 = arith.extui %278 : vector<16x128xi1> to vector<16x128xi32>
    %280 = arith.sitofp %279 : vector<16x128xi32> to vector<16x128xf32>
    %c9 = arith.constant 9 : index
    %c0_103 = arith.constant 0 : index
    %c0_104 = arith.constant 0 : index
    %281 = vector.load %arg1[%c9, %c0_103, %c0_104] : memref<13x16x128xf32, #tpu.memory_space<vmem>>, vector<1x16x128xf32>
    %282 = vector.shape_cast %281 : vector<1x16x128xf32> to vector<16x128xf32>
    %cst_105 = arith.constant 0.000000e+00 : f32
    %283 = vector.broadcast %cst_105 : f32 to vector<16x128xf32>
    %284 = arith.maximumf %282, %283 : vector<16x128xf32>
    %285 = arith.mulf %282, %280 : vector<16x128xf32>
    %286 = arith.subf %284, %285 : vector<16x128xf32>
    %287 = math.absf %282 : vector<16x128xf32>
    %cst_106 = arith.constant 0.000000e+00 : f32
    %288 = vector.broadcast %cst_106 : f32 to vector<16x128xf32>
    %289 = arith.subf %288, %287 : vector<16x128xf32>
    %290 = math.exp %289 : vector<16x128xf32>
    %cst_107 = arith.constant 1.000000e+00 : f32
    %291 = vector.broadcast %cst_107 : f32 to vector<16x128xf32>
    %292 = arith.addf %291, %290 : vector<16x128xf32>
    %293 = math.log %292 : vector<16x128xf32>
    %294 = arith.addf %286, %293 : vector<16x128xf32>
    %295 = arith.addf %257, %294 : vector<16x128xf32>
    %cst_108 = arith.constant 5.000000e+00 : f32
    %296 = vector.broadcast %cst_108 : f32 to vector<16x128xf32>
    %297 = arith.cmpf oeq, %64, %296 : vector<16x128xf32>
    %298 = arith.extui %297 : vector<16x128xi1> to vector<16x128xi32>
    %299 = arith.sitofp %298 : vector<16x128xi32> to vector<16x128xf32>
    %c10 = arith.constant 10 : index
    %c0_109 = arith.constant 0 : index
    %c0_110 = arith.constant 0 : index
    %300 = vector.load %arg1[%c10, %c0_109, %c0_110] : memref<13x16x128xf32, #tpu.memory_space<vmem>>, vector<1x16x128xf32>
    %301 = vector.shape_cast %300 : vector<1x16x128xf32> to vector<16x128xf32>
    %cst_111 = arith.constant 0.000000e+00 : f32
    %302 = vector.broadcast %cst_111 : f32 to vector<16x128xf32>
    %303 = arith.maximumf %301, %302 : vector<16x128xf32>
    %304 = arith.mulf %301, %299 : vector<16x128xf32>
    %305 = arith.subf %303, %304 : vector<16x128xf32>
    %306 = math.absf %301 : vector<16x128xf32>
    %cst_112 = arith.constant 0.000000e+00 : f32
    %307 = vector.broadcast %cst_112 : f32 to vector<16x128xf32>
    %308 = arith.subf %307, %306 : vector<16x128xf32>
    %309 = math.exp %308 : vector<16x128xf32>
    %cst_113 = arith.constant 1.000000e+00 : f32
    %310 = vector.broadcast %cst_113 : f32 to vector<16x128xf32>
    %311 = arith.addf %310, %309 : vector<16x128xf32>
    %312 = math.log %311 : vector<16x128xf32>
    %313 = arith.addf %305, %312 : vector<16x128xf32>
    %314 = arith.addf %276, %313 : vector<16x128xf32>
    %cst_114 = arith.constant 6.000000e+00 : f32
    %315 = vector.broadcast %cst_114 : f32 to vector<16x128xf32>
    %316 = arith.cmpf oeq, %64, %315 : vector<16x128xf32>
    %317 = arith.extui %316 : vector<16x128xi1> to vector<16x128xi32>
    %318 = arith.sitofp %317 : vector<16x128xi32> to vector<16x128xf32>
    %c11 = arith.constant 11 : index
    %c0_115 = arith.constant 0 : index
    %c0_116 = arith.constant 0 : index
    %319 = vector.load %arg1[%c11, %c0_115, %c0_116] : memref<13x16x128xf32, #tpu.memory_space<vmem>>, vector<1x16x128xf32>
    %320 = vector.shape_cast %319 : vector<1x16x128xf32> to vector<16x128xf32>
    %cst_117 = arith.constant 0.000000e+00 : f32
    %321 = vector.broadcast %cst_117 : f32 to vector<16x128xf32>
    %322 = arith.maximumf %320, %321 : vector<16x128xf32>
    %323 = arith.mulf %320, %318 : vector<16x128xf32>
    %324 = arith.subf %322, %323 : vector<16x128xf32>
    %325 = math.absf %320 : vector<16x128xf32>
    %cst_118 = arith.constant 0.000000e+00 : f32
    %326 = vector.broadcast %cst_118 : f32 to vector<16x128xf32>
    %327 = arith.subf %326, %325 : vector<16x128xf32>
    %328 = math.exp %327 : vector<16x128xf32>
    %cst_119 = arith.constant 1.000000e+00 : f32
    %329 = vector.broadcast %cst_119 : f32 to vector<16x128xf32>
    %330 = arith.addf %329, %328 : vector<16x128xf32>
    %331 = math.log %330 : vector<16x128xf32>
    %332 = arith.addf %324, %331 : vector<16x128xf32>
    %333 = arith.addf %295, %332 : vector<16x128xf32>
    %cst_120 = arith.constant 7.000000e+00 : f32
    %334 = vector.broadcast %cst_120 : f32 to vector<16x128xf32>
    %335 = arith.cmpf oeq, %64, %334 : vector<16x128xf32>
    %336 = arith.extui %335 : vector<16x128xi1> to vector<16x128xi32>
    %337 = arith.sitofp %336 : vector<16x128xi32> to vector<16x128xf32>
    %c12 = arith.constant 12 : index
    %c0_121 = arith.constant 0 : index
    %c0_122 = arith.constant 0 : index
    %338 = vector.load %arg1[%c12, %c0_121, %c0_122] : memref<13x16x128xf32, #tpu.memory_space<vmem>>, vector<1x16x128xf32>
    %339 = vector.shape_cast %338 : vector<1x16x128xf32> to vector<16x128xf32>
    %cst_123 = arith.constant 0.000000e+00 : f32
    %340 = vector.broadcast %cst_123 : f32 to vector<16x128xf32>
    %341 = arith.maximumf %339, %340 : vector<16x128xf32>
    %342 = arith.mulf %339, %337 : vector<16x128xf32>
    %343 = arith.subf %341, %342 : vector<16x128xf32>
    %344 = math.absf %339 : vector<16x128xf32>
    %cst_124 = arith.constant 0.000000e+00 : f32
    %345 = vector.broadcast %cst_124 : f32 to vector<16x128xf32>
    %346 = arith.subf %345, %344 : vector<16x128xf32>
    %347 = math.exp %346 : vector<16x128xf32>
    %cst_125 = arith.constant 1.000000e+00 : f32
    %348 = vector.broadcast %cst_125 : f32 to vector<16x128xf32>
    %349 = arith.addf %348, %347 : vector<16x128xf32>
    %350 = math.log %349 : vector<16x128xf32>
    %351 = arith.addf %343, %350 : vector<16x128xf32>
    %352 = arith.addf %314, %351 : vector<16x128xf32>
    %353 = arith.addf %333, %352 : vector<16x128xf32>
    %354 = arith.mulf %60, %353 : vector<16x128xf32>
    %c0_126 = arith.constant 0 : index
    %c0_127 = arith.constant 0 : index
    %c0_128 = arith.constant 0 : index
    %355 = vector.load %arg3[%c0_126, %c0_127, %c0_128] : memref<4x8x128xf32, #tpu.memory_space<vmem>>, vector<1x8x128xf32>
    %356 = vector.shape_cast %355 : vector<1x8x128xf32> to vector<8x128xf32>
    %cst_129 = arith.constant 1.000000e+00 : f32
    %357 = vector.broadcast %cst_129 : f32 to vector<16x128xf32>
    %358 = arith.subf %357, %168 : vector<16x128xf32>
    %359 = arith.mulf %60, %358 : vector<16x128xf32>
    %360 = vector.extract_strided_slice %359 {offsets = [0, 0], sizes = [8, 128], strides = [1, 1]} : vector<16x128xf32> to vector<8x128xf32>
    %361 = vector.extract_strided_slice %359 {offsets = [8, 0], sizes = [8, 128], strides = [1, 1]} : vector<16x128xf32> to vector<8x128xf32>
    %362 = arith.addf %360, %361 : vector<8x128xf32>
    %363 = arith.addf %356, %362 : vector<8x128xf32>
    %c0_130 = arith.constant 0 : index
    %c0_131 = arith.constant 0 : index
    %c0_132 = arith.constant 0 : index
    %364 = vector.load %arg3[%c0_130, %c0_131, %c0_132] : memref<4x8x128xf32, #tpu.memory_space<vmem>>, vector<1x8x128xf32>
    %365 = vector.shape_cast %364 : vector<1x8x128xf32> to vector<8x128xf32>
    %366 = vector.shape_cast %363 : vector<8x128xf32> to vector<1x8x128xf32>
    tpu.vector_store %arg3[%c0_130, %c0_131, %c0_132], %366 {strides = array<i32>} : memref<4x8x128xf32, #tpu.memory_space<vmem>>, vector<1x8x128xf32>,
    %c1_133 = arith.constant 1 : index
    %c0_134 = arith.constant 0 : index
    %c0_135 = arith.constant 0 : index
    %367 = vector.load %arg3[%c1_133, %c0_134, %c0_135] : memref<4x8x128xf32, #tpu.memory_space<vmem>>, vector<1x8x128xf32>
    %368 = vector.shape_cast %367 : vector<1x8x128xf32> to vector<8x128xf32>
    %369 = vector.extract_strided_slice %60 {offsets = [0, 0], sizes = [8, 128], strides = [1, 1]} : vector<16x128xf32> to vector<8x128xf32>
    %370 = vector.extract_strided_slice %60 {offsets = [8, 0], sizes = [8, 128], strides = [1, 1]} : vector<16x128xf32> to vector<8x128xf32>
    %371 = arith.addf %369, %370 : vector<8x128xf32>
    %372 = arith.addf %368, %371 : vector<8x128xf32>
    %c1_136 = arith.constant 1 : index
    %c0_137 = arith.constant 0 : index
    %c0_138 = arith.constant 0 : index
    %373 = vector.load %arg3[%c1_136, %c0_137, %c0_138] : memref<4x8x128xf32, #tpu.memory_space<vmem>>, vector<1x8x128xf32>
    %374 = vector.shape_cast %373 : vector<1x8x128xf32> to vector<8x128xf32>
    %375 = vector.shape_cast %372 : vector<8x128xf32> to vector<1x8x128xf32>
    tpu.vector_store %arg3[%c1_136, %c0_137, %c0_138], %375 {strides = array<i32>} : memref<4x8x128xf32, #tpu.memory_space<vmem>>, vector<1x8x128xf32>,
    %c2_139 = arith.constant 2 : index
    %c0_140 = arith.constant 0 : index
    %c0_141 = arith.constant 0 : index
    %376 = vector.load %arg3[%c2_139, %c0_140, %c0_141] : memref<4x8x128xf32, #tpu.memory_space<vmem>>, vector<1x8x128xf32>
    %377 = vector.shape_cast %376 : vector<1x8x128xf32> to vector<8x128xf32>
    %378 = vector.extract_strided_slice %198 {offsets = [0, 0], sizes = [8, 128], strides = [1, 1]} : vector<16x128xf32> to vector<8x128xf32>
    %379 = vector.extract_strided_slice %198 {offsets = [8, 0], sizes = [8, 128], strides = [1, 1]} : vector<16x128xf32> to vector<8x128xf32>
    %380 = arith.addf %378, %379 : vector<8x128xf32>
    %381 = arith.addf %377, %380 : vector<8x128xf32>
    %c2_142 = arith.constant 2 : index
    %c0_143 = arith.constant 0 : index
    %c0_144 = arith.constant 0 : index
    %382 = vector.load %arg3[%c2_142, %c0_143, %c0_144] : memref<4x8x128xf32, #tpu.memory_space<vmem>>, vector<1x8x128xf32>
    %383 = vector.shape_cast %382 : vector<1x8x128xf32> to vector<8x128xf32>
    %384 = vector.shape_cast %381 : vector<8x128xf32> to vector<1x8x128xf32>
    tpu.vector_store %arg3[%c2_142, %c0_143, %c0_144], %384 {strides = array<i32>} : memref<4x8x128xf32, #tpu.memory_space<vmem>>, vector<1x8x128xf32>,
    %c3_145 = arith.constant 3 : index
    %c0_146 = arith.constant 0 : index
    %c0_147 = arith.constant 0 : index
    %385 = vector.load %arg3[%c3_145, %c0_146, %c0_147] : memref<4x8x128xf32, #tpu.memory_space<vmem>>, vector<1x8x128xf32>
    %386 = vector.shape_cast %385 : vector<1x8x128xf32> to vector<8x128xf32>
    %387 = vector.extract_strided_slice %354 {offsets = [0, 0], sizes = [8, 128], strides = [1, 1]} : vector<16x128xf32> to vector<8x128xf32>
    %388 = vector.extract_strided_slice %354 {offsets = [8, 0], sizes = [8, 128], strides = [1, 1]} : vector<16x128xf32> to vector<8x128xf32>
    %389 = arith.addf %387, %388 : vector<8x128xf32>
    %390 = arith.addf %386, %389 : vector<8x128xf32>
    %c3_148 = arith.constant 3 : index
    %c0_149 = arith.constant 0 : index
    %c0_150 = arith.constant 0 : index
    %391 = vector.load %arg3[%c3_148, %c0_149, %c0_150] : memref<4x8x128xf32, #tpu.memory_space<vmem>>, vector<1x8x128xf32>
    %392 = vector.shape_cast %391 : vector<1x8x128xf32> to vector<8x128xf32>
    %393 = vector.shape_cast %390 : vector<8x128xf32> to vector<1x8x128xf32>
    tpu.vector_store %arg3[%c3_148, %c0_149, %c0_150], %393 {strides = array<i32>} : memref<4x8x128xf32, #tpu.memory_space<vmem>>, vector<1x8x128xf32>,
    return
  }
  func.func @transform_0(%arg0: i32) -> (i32, i32, i32) {
    %c0_i32 = arith.constant 0 : i32
    %c0_i32_0 = arith.constant 0 : i32
    %c0_i32_1 = arith.constant 0 : i32
    return %c0_i32, %arg0, %c0_i32_0 : i32, i32, i32
  }
  func.func @transform_1(%arg0: i32) -> (i32, i32, i32) {
    %c0_i32 = arith.constant 0 : i32
    %c0_i32_0 = arith.constant 0 : i32
    %c0_i32_1 = arith.constant 0 : i32
    return %c0_i32, %arg0, %c0_i32_0 : i32, i32, i32
  }
  func.func @transform_2(%arg0: i32) -> (i32, i32, i32) {
    %c0_i32 = arith.constant 0 : i32
    %c0_i32_0 = arith.constant 0 : i32
    %c0_i32_1 = arith.constant 0 : i32
    %c0_i32_2 = arith.constant 0 : i32
    return %c0_i32, %c0_i32_0, %c0_i32_1 : i32, i32, i32
  }
}

module attributes {stable_mosaic.version = 11 : i64} {
  func.func @det_layer_kernel(%arg0: i32, %arg1: memref<13x8x128xf32, #tpu.memory_space<vmem>>, %arg2: memref<9x8x128xf32, #tpu.memory_space<vmem>>, %arg3: memref<4x8x128xf32, #tpu.memory_space<vmem>>) attributes {dimension_semantics = [#tpu.dimension_semantics<arbitrary>], iteration_bounds = array<i64: 1>, scalar_prefetch = 0 : i64, scratch_operands = 0 : i64, tpu.core_type = #tpu.core_type<tc>, window_params = [{transform_indices = @transform_0, window_bounds = array<i64: 13, 8, 128>}, {transform_indices = @transform_1, window_bounds = array<i64: 9, 8, 128>}, {pipeline_mode = #tpu.pipeline_mode<synchronous>, transform_indices = @transform_2, window_bounds = array<i64: 4, 8, 128>}]} {
    %c0_i32 = arith.constant 0 : i32
    %0 = arith.cmpi eq, %arg0, %c0_i32 : i32
    %1 = arith.extui %0 : i1 to i32
    %c0_i32_0 = arith.constant 0 : i32
    %2 = arith.cmpi ne, %1, %c0_i32_0 : i32
    scf.if %2 {
      %cst_151 = arith.constant 0.000000e+00 : f32
      %382 = vector.broadcast %cst_151 : f32 to vector<4x8x128xf32>
      %c0_152 = arith.constant 0 : index
      %c0_153 = arith.constant 0 : index
      %c0_154 = arith.constant 0 : index
      %383 = vector.load %arg3[%c0_152, %c0_153, %c0_154] : memref<4x8x128xf32, #tpu.memory_space<vmem>>, vector<4x8x128xf32>
      tpu.vector_store %arg3[%c0_152, %c0_153, %c0_154], %382 {strides = array<i32>} : memref<4x8x128xf32, #tpu.memory_space<vmem>>, vector<4x8x128xf32>,
    } else {
    }
    %c0 = arith.constant 0 : index
    %c0_1 = arith.constant 0 : index
    %c0_2 = arith.constant 0 : index
    %3 = vector.load %arg1[%c0, %c0_1, %c0_2] : memref<13x8x128xf32, #tpu.memory_space<vmem>>, vector<1x8x128xf32>
    %4 = vector.shape_cast %3 : vector<1x8x128xf32> to vector<8x128xf32>
    %5 = arith.negf %4 : vector<8x128xf32>
    %6 = math.exp %5 : vector<8x128xf32>
    %cst = arith.constant 1.000000e+00 : f32
    %7 = vector.broadcast %cst : f32 to vector<8x128xf32>
    %8 = arith.addf %7, %6 : vector<8x128xf32>
    %9 = arith.divf %7, %8 : vector<8x128xf32>
    %cst_3 = arith.constant 2.000000e+00 : f32
    %10 = vector.broadcast %cst_3 : f32 to vector<8x128xf32>
    %11 = arith.mulf %9, %10 : vector<8x128xf32>
    %cst_4 = arith.constant 5.000000e-01 : f32
    %12 = vector.broadcast %cst_4 : f32 to vector<8x128xf32>
    %13 = arith.subf %11, %12 : vector<8x128xf32>
    %c1 = arith.constant 1 : index
    %c0_5 = arith.constant 0 : index
    %c0_6 = arith.constant 0 : index
    %14 = vector.load %arg1[%c1, %c0_5, %c0_6] : memref<13x8x128xf32, #tpu.memory_space<vmem>>, vector<1x8x128xf32>
    %15 = vector.shape_cast %14 : vector<1x8x128xf32> to vector<8x128xf32>
    %16 = arith.negf %15 : vector<8x128xf32>
    %17 = math.exp %16 : vector<8x128xf32>
    %cst_7 = arith.constant 1.000000e+00 : f32
    %18 = vector.broadcast %cst_7 : f32 to vector<8x128xf32>
    %19 = arith.addf %18, %17 : vector<8x128xf32>
    %20 = arith.divf %18, %19 : vector<8x128xf32>
    %cst_8 = arith.constant 2.000000e+00 : f32
    %21 = vector.broadcast %cst_8 : f32 to vector<8x128xf32>
    %22 = arith.mulf %20, %21 : vector<8x128xf32>
    %cst_9 = arith.constant 5.000000e-01 : f32
    %23 = vector.broadcast %cst_9 : f32 to vector<8x128xf32>
    %24 = arith.subf %22, %23 : vector<8x128xf32>
    %c2 = arith.constant 2 : index
    %c0_10 = arith.constant 0 : index
    %c0_11 = arith.constant 0 : index
    %25 = vector.load %arg1[%c2, %c0_10, %c0_11] : memref<13x8x128xf32, #tpu.memory_space<vmem>>, vector<1x8x128xf32>
    %26 = vector.shape_cast %25 : vector<1x8x128xf32> to vector<8x128xf32>
    %27 = arith.negf %26 : vector<8x128xf32>
    %28 = math.exp %27 : vector<8x128xf32>
    %cst_12 = arith.constant 1.000000e+00 : f32
    %29 = vector.broadcast %cst_12 : f32 to vector<8x128xf32>
    %30 = arith.addf %29, %28 : vector<8x128xf32>
    %31 = arith.divf %29, %30 : vector<8x128xf32>
    %cst_13 = arith.constant 2.000000e+00 : f32
    %32 = vector.broadcast %cst_13 : f32 to vector<8x128xf32>
    %33 = arith.mulf %31, %32 : vector<8x128xf32>
    %34 = arith.mulf %33, %33 : vector<8x128xf32>
    %c4 = arith.constant 4 : index
    %c0_14 = arith.constant 0 : index
    %c0_15 = arith.constant 0 : index
    %35 = vector.load %arg2[%c4, %c0_14, %c0_15] : memref<9x8x128xf32, #tpu.memory_space<vmem>>, vector<1x8x128xf32>
    %36 = vector.shape_cast %35 : vector<1x8x128xf32> to vector<8x128xf32>
    %37 = arith.mulf %34, %36 : vector<8x128xf32>
    %c3 = arith.constant 3 : index
    %c0_16 = arith.constant 0 : index
    %c0_17 = arith.constant 0 : index
    %38 = vector.load %arg1[%c3, %c0_16, %c0_17] : memref<13x8x128xf32, #tpu.memory_space<vmem>>, vector<1x8x128xf32>
    %39 = vector.shape_cast %38 : vector<1x8x128xf32> to vector<8x128xf32>
    %40 = arith.negf %39 : vector<8x128xf32>
    %41 = math.exp %40 : vector<8x128xf32>
    %cst_18 = arith.constant 1.000000e+00 : f32
    %42 = vector.broadcast %cst_18 : f32 to vector<8x128xf32>
    %43 = arith.addf %42, %41 : vector<8x128xf32>
    %44 = arith.divf %42, %43 : vector<8x128xf32>
    %cst_19 = arith.constant 2.000000e+00 : f32
    %45 = vector.broadcast %cst_19 : f32 to vector<8x128xf32>
    %46 = arith.mulf %44, %45 : vector<8x128xf32>
    %47 = arith.mulf %46, %46 : vector<8x128xf32>
    %c5 = arith.constant 5 : index
    %c0_20 = arith.constant 0 : index
    %c0_21 = arith.constant 0 : index
    %48 = vector.load %arg2[%c5, %c0_20, %c0_21] : memref<9x8x128xf32, #tpu.memory_space<vmem>>, vector<1x8x128xf32>
    %49 = vector.shape_cast %48 : vector<1x8x128xf32> to vector<8x128xf32>
    %50 = arith.mulf %47, %49 : vector<8x128xf32>
    %c0_22 = arith.constant 0 : index
    %c0_23 = arith.constant 0 : index
    %c0_24 = arith.constant 0 : index
    %51 = vector.load %arg2[%c0_22, %c0_23, %c0_24] : memref<9x8x128xf32, #tpu.memory_space<vmem>>, vector<1x8x128xf32>
    %52 = vector.shape_cast %51 : vector<1x8x128xf32> to vector<8x128xf32>
    %c1_25 = arith.constant 1 : index
    %c0_26 = arith.constant 0 : index
    %c0_27 = arith.constant 0 : index
    %53 = vector.load %arg2[%c1_25, %c0_26, %c0_27] : memref<9x8x128xf32, #tpu.memory_space<vmem>>, vector<1x8x128xf32>
    %54 = vector.shape_cast %53 : vector<1x8x128xf32> to vector<8x128xf32>
    %c2_28 = arith.constant 2 : index
    %c0_29 = arith.constant 0 : index
    %c0_30 = arith.constant 0 : index
    %55 = vector.load %arg2[%c2_28, %c0_29, %c0_30] : memref<9x8x128xf32, #tpu.memory_space<vmem>>, vector<1x8x128xf32>
    %56 = vector.shape_cast %55 : vector<1x8x128xf32> to vector<8x128xf32>
    %c3_31 = arith.constant 3 : index
    %c0_32 = arith.constant 0 : index
    %c0_33 = arith.constant 0 : index
    %57 = vector.load %arg2[%c3_31, %c0_32, %c0_33] : memref<9x8x128xf32, #tpu.memory_space<vmem>>, vector<1x8x128xf32>
    %58 = vector.shape_cast %57 : vector<1x8x128xf32> to vector<8x128xf32>
    %c6 = arith.constant 6 : index
    %c0_34 = arith.constant 0 : index
    %c0_35 = arith.constant 0 : index
    %59 = vector.load %arg2[%c6, %c0_34, %c0_35] : memref<9x8x128xf32, #tpu.memory_space<vmem>>, vector<1x8x128xf32>
    %60 = vector.shape_cast %59 : vector<1x8x128xf32> to vector<8x128xf32>
    %c7 = arith.constant 7 : index
    %c0_36 = arith.constant 0 : index
    %c0_37 = arith.constant 0 : index
    %61 = vector.load %arg2[%c7, %c0_36, %c0_37] : memref<9x8x128xf32, #tpu.memory_space<vmem>>, vector<1x8x128xf32>
    %62 = vector.shape_cast %61 : vector<1x8x128xf32> to vector<8x128xf32>
    %c8 = arith.constant 8 : index
    %c0_38 = arith.constant 0 : index
    %c0_39 = arith.constant 0 : index
    %63 = vector.load %arg2[%c8, %c0_38, %c0_39] : memref<9x8x128xf32, #tpu.memory_space<vmem>>, vector<1x8x128xf32>
    %64 = vector.shape_cast %63 : vector<1x8x128xf32> to vector<8x128xf32>
    %cst_40 = arith.constant 5.000000e-01 : f32
    %65 = vector.broadcast %cst_40 : f32 to vector<8x128xf32>
    %66 = arith.mulf %37, %65 : vector<8x128xf32>
    %67 = arith.subf %13, %66 : vector<8x128xf32>
    %cst_41 = arith.constant 5.000000e-01 : f32
    %68 = vector.broadcast %cst_41 : f32 to vector<8x128xf32>
    %69 = arith.mulf %37, %68 : vector<8x128xf32>
    %70 = arith.addf %13, %69 : vector<8x128xf32>
    %cst_42 = arith.constant 5.000000e-01 : f32
    %71 = vector.broadcast %cst_42 : f32 to vector<8x128xf32>
    %72 = arith.mulf %50, %71 : vector<8x128xf32>
    %73 = arith.subf %24, %72 : vector<8x128xf32>
    %cst_43 = arith.constant 5.000000e-01 : f32
    %74 = vector.broadcast %cst_43 : f32 to vector<8x128xf32>
    %75 = arith.mulf %50, %74 : vector<8x128xf32>
    %76 = arith.addf %24, %75 : vector<8x128xf32>
    %cst_44 = arith.constant 5.000000e-01 : f32
    %77 = vector.broadcast %cst_44 : f32 to vector<8x128xf32>
    %78 = arith.mulf %56, %77 : vector<8x128xf32>
    %79 = arith.subf %52, %78 : vector<8x128xf32>
    %cst_45 = arith.constant 5.000000e-01 : f32
    %80 = vector.broadcast %cst_45 : f32 to vector<8x128xf32>
    %81 = arith.mulf %56, %80 : vector<8x128xf32>
    %82 = arith.addf %52, %81 : vector<8x128xf32>
    %cst_46 = arith.constant 5.000000e-01 : f32
    %83 = vector.broadcast %cst_46 : f32 to vector<8x128xf32>
    %84 = arith.mulf %58, %83 : vector<8x128xf32>
    %85 = arith.subf %54, %84 : vector<8x128xf32>
    %cst_47 = arith.constant 5.000000e-01 : f32
    %86 = vector.broadcast %cst_47 : f32 to vector<8x128xf32>
    %87 = arith.mulf %58, %86 : vector<8x128xf32>
    %88 = arith.addf %54, %87 : vector<8x128xf32>
    %89 = arith.minimumf %70, %82 : vector<8x128xf32>
    %90 = arith.maximumf %67, %79 : vector<8x128xf32>
    %91 = arith.subf %89, %90 : vector<8x128xf32>
    %cst_48 = arith.constant 0.000000e+00 : f32
    %92 = vector.broadcast %cst_48 : f32 to vector<8x128xf32>
    %93 = arith.maximumf %91, %92 : vector<8x128xf32>
    %94 = arith.minimumf %76, %88 : vector<8x128xf32>
    %95 = arith.maximumf %73, %85 : vector<8x128xf32>
    %96 = arith.subf %94, %95 : vector<8x128xf32>
    %cst_49 = arith.constant 0.000000e+00 : f32
    %97 = vector.broadcast %cst_49 : f32 to vector<8x128xf32>
    %98 = arith.maximumf %96, %97 : vector<8x128xf32>
    %99 = arith.mulf %93, %98 : vector<8x128xf32>
    %100 = arith.mulf %37, %50 : vector<8x128xf32>
    %101 = arith.mulf %56, %58 : vector<8x128xf32>
    %102 = arith.addf %100, %101 : vector<8x128xf32>
    %103 = arith.subf %102, %99 : vector<8x128xf32>
    %cst_50 = arith.constant 1.000000e-07 : f32
    %104 = vector.broadcast %cst_50 : f32 to vector<8x128xf32>
    %105 = arith.addf %103, %104 : vector<8x128xf32>
    %106 = arith.divf %99, %105 : vector<8x128xf32>
    %107 = arith.maximumf %70, %82 : vector<8x128xf32>
    %108 = arith.minimumf %67, %79 : vector<8x128xf32>
    %109 = arith.subf %107, %108 : vector<8x128xf32>
    %110 = arith.maximumf %76, %88 : vector<8x128xf32>
    %111 = arith.minimumf %73, %85 : vector<8x128xf32>
    %112 = arith.subf %110, %111 : vector<8x128xf32>
    %113 = arith.mulf %109, %109 : vector<8x128xf32>
    %114 = arith.mulf %112, %112 : vector<8x128xf32>
    %115 = arith.addf %113, %114 : vector<8x128xf32>
    %cst_51 = arith.constant 1.000000e-07 : f32
    %116 = vector.broadcast %cst_51 : f32 to vector<8x128xf32>
    %117 = arith.addf %115, %116 : vector<8x128xf32>
    %118 = arith.addf %79, %82 : vector<8x128xf32>
    %119 = arith.subf %118, %67 : vector<8x128xf32>
    %120 = arith.subf %119, %70 : vector<8x128xf32>
    %121 = arith.mulf %120, %120 : vector<8x128xf32>
    %122 = arith.addf %85, %88 : vector<8x128xf32>
    %123 = arith.subf %122, %73 : vector<8x128xf32>
    %124 = arith.subf %123, %76 : vector<8x128xf32>
    %125 = arith.mulf %124, %124 : vector<8x128xf32>
    %126 = arith.addf %121, %125 : vector<8x128xf32>
    %cst_52 = arith.constant 2.500000e-01 : f32
    %127 = vector.broadcast %cst_52 : f32 to vector<8x128xf32>
    %128 = arith.mulf %126, %127 : vector<8x128xf32>
    %cst_53 = arith.constant 1.000000e-07 : f32
    %129 = vector.broadcast %cst_53 : f32 to vector<8x128xf32>
    %130 = arith.addf %50, %129 : vector<8x128xf32>
    %131 = arith.divf %37, %130 : vector<8x128xf32>
    %cst_54 = arith.constant 1.000000e+00 : f32
    %132 = vector.broadcast %cst_54 : f32 to vector<8x128xf32>
    %133 = arith.cmpf ogt, %131, %132 : vector<8x128xf32>
    %cst_55 = arith.constant 9.99999996E-13 : f32
    %134 = vector.broadcast %cst_55 : f32 to vector<8x128xf32>
    %135 = arith.maximumf %131, %134 : vector<8x128xf32>
    %cst_56 = arith.constant 1.000000e+00 : f32
    %136 = vector.broadcast %cst_56 : f32 to vector<8x128xf32>
    %137 = arith.divf %136, %135 : vector<8x128xf32>
    %138 = arith.select %133, %137, %131 : vector<8x128xi1>, vector<8x128xf32>
    %139 = arith.mulf %138, %138 : vector<8x128xf32>
    %cst_57 = arith.constant 2.083510e-02 : f32
    %140 = vector.broadcast %cst_57 : f32 to vector<8x128xf32>
    %141 = arith.mulf %139, %140 : vector<8x128xf32>
    %cst_58 = arith.constant -8.513300e-02 : f32
    %142 = vector.broadcast %cst_58 : f32 to vector<8x128xf32>
    %143 = arith.addf %142, %141 : vector<8x128xf32>
    %144 = arith.mulf %139, %143 : vector<8x128xf32>
    %cst_59 = arith.constant 1.801410e-01 : f32
    %145 = vector.broadcast %cst_59 : f32 to vector<8x128xf32>
    %146 = arith.addf %145, %144 : vector<8x128xf32>
    %147 = arith.mulf %139, %146 : vector<8x128xf32>
    %cst_60 = arith.constant -0.330299497 : f32
    %148 = vector.broadcast %cst_60 : f32 to vector<8x128xf32>
    %149 = arith.addf %148, %147 : vector<8x128xf32>
    %150 = arith.mulf %139, %149 : vector<8x128xf32>
    %cst_61 = arith.constant 9.998660e-01 : f32
    %151 = vector.broadcast %cst_61 : f32 to vector<8x128xf32>
    %152 = arith.addf %151, %150 : vector<8x128xf32>
    %153 = arith.mulf %138, %152 : vector<8x128xf32>
    %cst_62 = arith.constant 1.57079637 : f32
    %154 = vector.broadcast %cst_62 : f32 to vector<8x128xf32>
    %155 = arith.subf %154, %153 : vector<8x128xf32>
    %156 = arith.select %133, %155, %153 : vector<8x128xi1>, vector<8x128xf32>
    %157 = arith.subf %62, %156 : vector<8x128xf32>
    %158 = arith.mulf %157, %157 : vector<8x128xf32>
    %cst_63 = arith.constant 0.405284733 : f32
    %159 = vector.broadcast %cst_63 : f32 to vector<8x128xf32>
    %160 = arith.mulf %159, %158 : vector<8x128xf32>
    %161 = arith.subf %160, %106 : vector<8x128xf32>
    %cst_64 = arith.constant 1.00000012 : f32
    %162 = vector.broadcast %cst_64 : f32 to vector<8x128xf32>
    %163 = arith.addf %161, %162 : vector<8x128xf32>
    %164 = arith.divf %160, %163 : vector<8x128xf32>
    %165 = arith.divf %128, %117 : vector<8x128xf32>
    %166 = arith.mulf %160, %164 : vector<8x128xf32>
    %167 = arith.addf %165, %166 : vector<8x128xf32>
    %168 = arith.subf %106, %167 : vector<8x128xf32>
    %c1024_i32 = arith.constant 1024 : i32
    %169 = arith.muli %arg0, %c1024_i32 : i32
    %170 = tpu.iota {dimensions = array<i32: 0>} : vector<8x128xi32>
    %171 = tpu.iota {dimensions = array<i32: 1>} : vector<8x128xi32>
    %c128_i32 = arith.constant 128 : i32
    %172 = vector.broadcast %c128_i32 : i32 to vector<8x128xi32>
    %173 = arith.muli %170, %172 : vector<8x128xi32>
    %174 = vector.broadcast %169 : i32 to vector<8x128xi32>
    %175 = arith.addi %174, %173 : vector<8x128xi32>
    %176 = arith.addi %175, %171 : vector<8x128xi32>
    %c384_i32 = arith.constant 384 : i32
    %177 = vector.broadcast %c384_i32 : i32 to vector<8x128xi32>
    %178 = arith.cmpi slt, %176, %177 : vector<8x128xi32>
    %179 = arith.extui %178 : vector<8x128xi1> to vector<8x128xi32>
    %180 = arith.sitofp %179 : vector<8x128xi32> to vector<8x128xf32>
    %cst_65 = arith.constant 0.000000e+00 : f32
    %181 = vector.broadcast %cst_65 : f32 to vector<8x128xf32>
    %182 = arith.maximumf %168, %181 : vector<8x128xf32>
    %183 = arith.mulf %60, %182 : vector<8x128xf32>
    %c4_66 = arith.constant 4 : index
    %c0_67 = arith.constant 0 : index
    %c0_68 = arith.constant 0 : index
    %184 = vector.load %arg1[%c4_66, %c0_67, %c0_68] : memref<13x8x128xf32, #tpu.memory_space<vmem>>, vector<1x8x128xf32>
    %185 = vector.shape_cast %184 : vector<1x8x128xf32> to vector<8x128xf32>
    %cst_69 = arith.constant 0.000000e+00 : f32
    %186 = vector.broadcast %cst_69 : f32 to vector<8x128xf32>
    %187 = arith.maximumf %185, %186 : vector<8x128xf32>
    %188 = arith.mulf %185, %183 : vector<8x128xf32>
    %189 = arith.subf %187, %188 : vector<8x128xf32>
    %190 = math.absf %185 : vector<8x128xf32>
    %cst_70 = arith.constant 0.000000e+00 : f32
    %191 = vector.broadcast %cst_70 : f32 to vector<8x128xf32>
    %192 = arith.subf %191, %190 : vector<8x128xf32>
    %193 = math.exp %192 : vector<8x128xf32>
    %cst_71 = arith.constant 1.000000e+00 : f32
    %194 = vector.broadcast %cst_71 : f32 to vector<8x128xf32>
    %195 = arith.addf %194, %193 : vector<8x128xf32>
    %196 = math.log %195 : vector<8x128xf32>
    %197 = arith.addf %189, %196 : vector<8x128xf32>
    %198 = arith.mulf %180, %197 : vector<8x128xf32>
    %cst_72 = arith.constant 0.000000e+00 : f32
    %199 = vector.broadcast %cst_72 : f32 to vector<8x128xf32>
    %cst_73 = arith.constant 0.000000e+00 : f32
    %200 = vector.broadcast %cst_73 : f32 to vector<8x128xf32>
    %cst_74 = arith.constant 0.000000e+00 : f32
    %201 = vector.broadcast %cst_74 : f32 to vector<8x128xf32>
    %202 = arith.cmpf oeq, %64, %201 : vector<8x128xf32>
    %203 = arith.extui %202 : vector<8x128xi1> to vector<8x128xi32>
    %204 = arith.sitofp %203 : vector<8x128xi32> to vector<8x128xf32>
    %c5_75 = arith.constant 5 : index
    %c0_76 = arith.constant 0 : index
    %c0_77 = arith.constant 0 : index
    %205 = vector.load %arg1[%c5_75, %c0_76, %c0_77] : memref<13x8x128xf32, #tpu.memory_space<vmem>>, vector<1x8x128xf32>
    %206 = vector.shape_cast %205 : vector<1x8x128xf32> to vector<8x128xf32>
    %cst_78 = arith.constant 0.000000e+00 : f32
    %207 = vector.broadcast %cst_78 : f32 to vector<8x128xf32>
    %208 = arith.maximumf %206, %207 : vector<8x128xf32>
    %209 = arith.mulf %206, %204 : vector<8x128xf32>
    %210 = arith.subf %208, %209 : vector<8x128xf32>
    %211 = math.absf %206 : vector<8x128xf32>
    %cst_79 = arith.constant 0.000000e+00 : f32
    %212 = vector.broadcast %cst_79 : f32 to vector<8x128xf32>
    %213 = arith.subf %212, %211 : vector<8x128xf32>
    %214 = math.exp %213 : vector<8x128xf32>
    %cst_80 = arith.constant 1.000000e+00 : f32
    %215 = vector.broadcast %cst_80 : f32 to vector<8x128xf32>
    %216 = arith.addf %215, %214 : vector<8x128xf32>
    %217 = math.log %216 : vector<8x128xf32>
    %218 = arith.addf %210, %217 : vector<8x128xf32>
    %219 = arith.addf %199, %218 : vector<8x128xf32>
    %cst_81 = arith.constant 1.000000e+00 : f32
    %220 = vector.broadcast %cst_81 : f32 to vector<8x128xf32>
    %221 = arith.cmpf oeq, %64, %220 : vector<8x128xf32>
    %222 = arith.extui %221 : vector<8x128xi1> to vector<8x128xi32>
    %223 = arith.sitofp %222 : vector<8x128xi32> to vector<8x128xf32>
    %c6_82 = arith.constant 6 : index
    %c0_83 = arith.constant 0 : index
    %c0_84 = arith.constant 0 : index
    %224 = vector.load %arg1[%c6_82, %c0_83, %c0_84] : memref<13x8x128xf32, #tpu.memory_space<vmem>>, vector<1x8x128xf32>
    %225 = vector.shape_cast %224 : vector<1x8x128xf32> to vector<8x128xf32>
    %cst_85 = arith.constant 0.000000e+00 : f32
    %226 = vector.broadcast %cst_85 : f32 to vector<8x128xf32>
    %227 = arith.maximumf %225, %226 : vector<8x128xf32>
    %228 = arith.mulf %225, %223 : vector<8x128xf32>
    %229 = arith.subf %227, %228 : vector<8x128xf32>
    %230 = math.absf %225 : vector<8x128xf32>
    %cst_86 = arith.constant 0.000000e+00 : f32
    %231 = vector.broadcast %cst_86 : f32 to vector<8x128xf32>
    %232 = arith.subf %231, %230 : vector<8x128xf32>
    %233 = math.exp %232 : vector<8x128xf32>
    %cst_87 = arith.constant 1.000000e+00 : f32
    %234 = vector.broadcast %cst_87 : f32 to vector<8x128xf32>
    %235 = arith.addf %234, %233 : vector<8x128xf32>
    %236 = math.log %235 : vector<8x128xf32>
    %237 = arith.addf %229, %236 : vector<8x128xf32>
    %238 = arith.addf %200, %237 : vector<8x128xf32>
    %cst_88 = arith.constant 2.000000e+00 : f32
    %239 = vector.broadcast %cst_88 : f32 to vector<8x128xf32>
    %240 = arith.cmpf oeq, %64, %239 : vector<8x128xf32>
    %241 = arith.extui %240 : vector<8x128xi1> to vector<8x128xi32>
    %242 = arith.sitofp %241 : vector<8x128xi32> to vector<8x128xf32>
    %c7_89 = arith.constant 7 : index
    %c0_90 = arith.constant 0 : index
    %c0_91 = arith.constant 0 : index
    %243 = vector.load %arg1[%c7_89, %c0_90, %c0_91] : memref<13x8x128xf32, #tpu.memory_space<vmem>>, vector<1x8x128xf32>
    %244 = vector.shape_cast %243 : vector<1x8x128xf32> to vector<8x128xf32>
    %cst_92 = arith.constant 0.000000e+00 : f32
    %245 = vector.broadcast %cst_92 : f32 to vector<8x128xf32>
    %246 = arith.maximumf %244, %245 : vector<8x128xf32>
    %247 = arith.mulf %244, %242 : vector<8x128xf32>
    %248 = arith.subf %246, %247 : vector<8x128xf32>
    %249 = math.absf %244 : vector<8x128xf32>
    %cst_93 = arith.constant 0.000000e+00 : f32
    %250 = vector.broadcast %cst_93 : f32 to vector<8x128xf32>
    %251 = arith.subf %250, %249 : vector<8x128xf32>
    %252 = math.exp %251 : vector<8x128xf32>
    %cst_94 = arith.constant 1.000000e+00 : f32
    %253 = vector.broadcast %cst_94 : f32 to vector<8x128xf32>
    %254 = arith.addf %253, %252 : vector<8x128xf32>
    %255 = math.log %254 : vector<8x128xf32>
    %256 = arith.addf %248, %255 : vector<8x128xf32>
    %257 = arith.addf %219, %256 : vector<8x128xf32>
    %cst_95 = arith.constant 3.000000e+00 : f32
    %258 = vector.broadcast %cst_95 : f32 to vector<8x128xf32>
    %259 = arith.cmpf oeq, %64, %258 : vector<8x128xf32>
    %260 = arith.extui %259 : vector<8x128xi1> to vector<8x128xi32>
    %261 = arith.sitofp %260 : vector<8x128xi32> to vector<8x128xf32>
    %c8_96 = arith.constant 8 : index
    %c0_97 = arith.constant 0 : index
    %c0_98 = arith.constant 0 : index
    %262 = vector.load %arg1[%c8_96, %c0_97, %c0_98] : memref<13x8x128xf32, #tpu.memory_space<vmem>>, vector<1x8x128xf32>
    %263 = vector.shape_cast %262 : vector<1x8x128xf32> to vector<8x128xf32>
    %cst_99 = arith.constant 0.000000e+00 : f32
    %264 = vector.broadcast %cst_99 : f32 to vector<8x128xf32>
    %265 = arith.maximumf %263, %264 : vector<8x128xf32>
    %266 = arith.mulf %263, %261 : vector<8x128xf32>
    %267 = arith.subf %265, %266 : vector<8x128xf32>
    %268 = math.absf %263 : vector<8x128xf32>
    %cst_100 = arith.constant 0.000000e+00 : f32
    %269 = vector.broadcast %cst_100 : f32 to vector<8x128xf32>
    %270 = arith.subf %269, %268 : vector<8x128xf32>
    %271 = math.exp %270 : vector<8x128xf32>
    %cst_101 = arith.constant 1.000000e+00 : f32
    %272 = vector.broadcast %cst_101 : f32 to vector<8x128xf32>
    %273 = arith.addf %272, %271 : vector<8x128xf32>
    %274 = math.log %273 : vector<8x128xf32>
    %275 = arith.addf %267, %274 : vector<8x128xf32>
    %276 = arith.addf %238, %275 : vector<8x128xf32>
    %cst_102 = arith.constant 4.000000e+00 : f32
    %277 = vector.broadcast %cst_102 : f32 to vector<8x128xf32>
    %278 = arith.cmpf oeq, %64, %277 : vector<8x128xf32>
    %279 = arith.extui %278 : vector<8x128xi1> to vector<8x128xi32>
    %280 = arith.sitofp %279 : vector<8x128xi32> to vector<8x128xf32>
    %c9 = arith.constant 9 : index
    %c0_103 = arith.constant 0 : index
    %c0_104 = arith.constant 0 : index
    %281 = vector.load %arg1[%c9, %c0_103, %c0_104] : memref<13x8x128xf32, #tpu.memory_space<vmem>>, vector<1x8x128xf32>
    %282 = vector.shape_cast %281 : vector<1x8x128xf32> to vector<8x128xf32>
    %cst_105 = arith.constant 0.000000e+00 : f32
    %283 = vector.broadcast %cst_105 : f32 to vector<8x128xf32>
    %284 = arith.maximumf %282, %283 : vector<8x128xf32>
    %285 = arith.mulf %282, %280 : vector<8x128xf32>
    %286 = arith.subf %284, %285 : vector<8x128xf32>
    %287 = math.absf %282 : vector<8x128xf32>
    %cst_106 = arith.constant 0.000000e+00 : f32
    %288 = vector.broadcast %cst_106 : f32 to vector<8x128xf32>
    %289 = arith.subf %288, %287 : vector<8x128xf32>
    %290 = math.exp %289 : vector<8x128xf32>
    %cst_107 = arith.constant 1.000000e+00 : f32
    %291 = vector.broadcast %cst_107 : f32 to vector<8x128xf32>
    %292 = arith.addf %291, %290 : vector<8x128xf32>
    %293 = math.log %292 : vector<8x128xf32>
    %294 = arith.addf %286, %293 : vector<8x128xf32>
    %295 = arith.addf %257, %294 : vector<8x128xf32>
    %cst_108 = arith.constant 5.000000e+00 : f32
    %296 = vector.broadcast %cst_108 : f32 to vector<8x128xf32>
    %297 = arith.cmpf oeq, %64, %296 : vector<8x128xf32>
    %298 = arith.extui %297 : vector<8x128xi1> to vector<8x128xi32>
    %299 = arith.sitofp %298 : vector<8x128xi32> to vector<8x128xf32>
    %c10 = arith.constant 10 : index
    %c0_109 = arith.constant 0 : index
    %c0_110 = arith.constant 0 : index
    %300 = vector.load %arg1[%c10, %c0_109, %c0_110] : memref<13x8x128xf32, #tpu.memory_space<vmem>>, vector<1x8x128xf32>
    %301 = vector.shape_cast %300 : vector<1x8x128xf32> to vector<8x128xf32>
    %cst_111 = arith.constant 0.000000e+00 : f32
    %302 = vector.broadcast %cst_111 : f32 to vector<8x128xf32>
    %303 = arith.maximumf %301, %302 : vector<8x128xf32>
    %304 = arith.mulf %301, %299 : vector<8x128xf32>
    %305 = arith.subf %303, %304 : vector<8x128xf32>
    %306 = math.absf %301 : vector<8x128xf32>
    %cst_112 = arith.constant 0.000000e+00 : f32
    %307 = vector.broadcast %cst_112 : f32 to vector<8x128xf32>
    %308 = arith.subf %307, %306 : vector<8x128xf32>
    %309 = math.exp %308 : vector<8x128xf32>
    %cst_113 = arith.constant 1.000000e+00 : f32
    %310 = vector.broadcast %cst_113 : f32 to vector<8x128xf32>
    %311 = arith.addf %310, %309 : vector<8x128xf32>
    %312 = math.log %311 : vector<8x128xf32>
    %313 = arith.addf %305, %312 : vector<8x128xf32>
    %314 = arith.addf %276, %313 : vector<8x128xf32>
    %cst_114 = arith.constant 6.000000e+00 : f32
    %315 = vector.broadcast %cst_114 : f32 to vector<8x128xf32>
    %316 = arith.cmpf oeq, %64, %315 : vector<8x128xf32>
    %317 = arith.extui %316 : vector<8x128xi1> to vector<8x128xi32>
    %318 = arith.sitofp %317 : vector<8x128xi32> to vector<8x128xf32>
    %c11 = arith.constant 11 : index
    %c0_115 = arith.constant 0 : index
    %c0_116 = arith.constant 0 : index
    %319 = vector.load %arg1[%c11, %c0_115, %c0_116] : memref<13x8x128xf32, #tpu.memory_space<vmem>>, vector<1x8x128xf32>
    %320 = vector.shape_cast %319 : vector<1x8x128xf32> to vector<8x128xf32>
    %cst_117 = arith.constant 0.000000e+00 : f32
    %321 = vector.broadcast %cst_117 : f32 to vector<8x128xf32>
    %322 = arith.maximumf %320, %321 : vector<8x128xf32>
    %323 = arith.mulf %320, %318 : vector<8x128xf32>
    %324 = arith.subf %322, %323 : vector<8x128xf32>
    %325 = math.absf %320 : vector<8x128xf32>
    %cst_118 = arith.constant 0.000000e+00 : f32
    %326 = vector.broadcast %cst_118 : f32 to vector<8x128xf32>
    %327 = arith.subf %326, %325 : vector<8x128xf32>
    %328 = math.exp %327 : vector<8x128xf32>
    %cst_119 = arith.constant 1.000000e+00 : f32
    %329 = vector.broadcast %cst_119 : f32 to vector<8x128xf32>
    %330 = arith.addf %329, %328 : vector<8x128xf32>
    %331 = math.log %330 : vector<8x128xf32>
    %332 = arith.addf %324, %331 : vector<8x128xf32>
    %333 = arith.addf %295, %332 : vector<8x128xf32>
    %cst_120 = arith.constant 7.000000e+00 : f32
    %334 = vector.broadcast %cst_120 : f32 to vector<8x128xf32>
    %335 = arith.cmpf oeq, %64, %334 : vector<8x128xf32>
    %336 = arith.extui %335 : vector<8x128xi1> to vector<8x128xi32>
    %337 = arith.sitofp %336 : vector<8x128xi32> to vector<8x128xf32>
    %c12 = arith.constant 12 : index
    %c0_121 = arith.constant 0 : index
    %c0_122 = arith.constant 0 : index
    %338 = vector.load %arg1[%c12, %c0_121, %c0_122] : memref<13x8x128xf32, #tpu.memory_space<vmem>>, vector<1x8x128xf32>
    %339 = vector.shape_cast %338 : vector<1x8x128xf32> to vector<8x128xf32>
    %cst_123 = arith.constant 0.000000e+00 : f32
    %340 = vector.broadcast %cst_123 : f32 to vector<8x128xf32>
    %341 = arith.maximumf %339, %340 : vector<8x128xf32>
    %342 = arith.mulf %339, %337 : vector<8x128xf32>
    %343 = arith.subf %341, %342 : vector<8x128xf32>
    %344 = math.absf %339 : vector<8x128xf32>
    %cst_124 = arith.constant 0.000000e+00 : f32
    %345 = vector.broadcast %cst_124 : f32 to vector<8x128xf32>
    %346 = arith.subf %345, %344 : vector<8x128xf32>
    %347 = math.exp %346 : vector<8x128xf32>
    %cst_125 = arith.constant 1.000000e+00 : f32
    %348 = vector.broadcast %cst_125 : f32 to vector<8x128xf32>
    %349 = arith.addf %348, %347 : vector<8x128xf32>
    %350 = math.log %349 : vector<8x128xf32>
    %351 = arith.addf %343, %350 : vector<8x128xf32>
    %352 = arith.addf %314, %351 : vector<8x128xf32>
    %353 = arith.addf %333, %352 : vector<8x128xf32>
    %354 = arith.mulf %60, %353 : vector<8x128xf32>
    %c0_126 = arith.constant 0 : index
    %c0_127 = arith.constant 0 : index
    %c0_128 = arith.constant 0 : index
    %355 = vector.load %arg3[%c0_126, %c0_127, %c0_128] : memref<4x8x128xf32, #tpu.memory_space<vmem>>, vector<1x8x128xf32>
    %356 = vector.shape_cast %355 : vector<1x8x128xf32> to vector<8x128xf32>
    %cst_129 = arith.constant 1.000000e+00 : f32
    %357 = vector.broadcast %cst_129 : f32 to vector<8x128xf32>
    %358 = arith.subf %357, %168 : vector<8x128xf32>
    %359 = arith.mulf %60, %358 : vector<8x128xf32>
    %360 = arith.addf %356, %359 : vector<8x128xf32>
    %c0_130 = arith.constant 0 : index
    %c0_131 = arith.constant 0 : index
    %c0_132 = arith.constant 0 : index
    %361 = vector.load %arg3[%c0_130, %c0_131, %c0_132] : memref<4x8x128xf32, #tpu.memory_space<vmem>>, vector<1x8x128xf32>
    %362 = vector.shape_cast %361 : vector<1x8x128xf32> to vector<8x128xf32>
    %363 = vector.shape_cast %360 : vector<8x128xf32> to vector<1x8x128xf32>
    tpu.vector_store %arg3[%c0_130, %c0_131, %c0_132], %363 {strides = array<i32>} : memref<4x8x128xf32, #tpu.memory_space<vmem>>, vector<1x8x128xf32>,
    %c1_133 = arith.constant 1 : index
    %c0_134 = arith.constant 0 : index
    %c0_135 = arith.constant 0 : index
    %364 = vector.load %arg3[%c1_133, %c0_134, %c0_135] : memref<4x8x128xf32, #tpu.memory_space<vmem>>, vector<1x8x128xf32>
    %365 = vector.shape_cast %364 : vector<1x8x128xf32> to vector<8x128xf32>
    %366 = arith.addf %365, %60 : vector<8x128xf32>
    %c1_136 = arith.constant 1 : index
    %c0_137 = arith.constant 0 : index
    %c0_138 = arith.constant 0 : index
    %367 = vector.load %arg3[%c1_136, %c0_137, %c0_138] : memref<4x8x128xf32, #tpu.memory_space<vmem>>, vector<1x8x128xf32>
    %368 = vector.shape_cast %367 : vector<1x8x128xf32> to vector<8x128xf32>
    %369 = vector.shape_cast %366 : vector<8x128xf32> to vector<1x8x128xf32>
    tpu.vector_store %arg3[%c1_136, %c0_137, %c0_138], %369 {strides = array<i32>} : memref<4x8x128xf32, #tpu.memory_space<vmem>>, vector<1x8x128xf32>,
    %c2_139 = arith.constant 2 : index
    %c0_140 = arith.constant 0 : index
    %c0_141 = arith.constant 0 : index
    %370 = vector.load %arg3[%c2_139, %c0_140, %c0_141] : memref<4x8x128xf32, #tpu.memory_space<vmem>>, vector<1x8x128xf32>
    %371 = vector.shape_cast %370 : vector<1x8x128xf32> to vector<8x128xf32>
    %372 = arith.addf %371, %198 : vector<8x128xf32>
    %c2_142 = arith.constant 2 : index
    %c0_143 = arith.constant 0 : index
    %c0_144 = arith.constant 0 : index
    %373 = vector.load %arg3[%c2_142, %c0_143, %c0_144] : memref<4x8x128xf32, #tpu.memory_space<vmem>>, vector<1x8x128xf32>
    %374 = vector.shape_cast %373 : vector<1x8x128xf32> to vector<8x128xf32>
    %375 = vector.shape_cast %372 : vector<8x128xf32> to vector<1x8x128xf32>
    tpu.vector_store %arg3[%c2_142, %c0_143, %c0_144], %375 {strides = array<i32>} : memref<4x8x128xf32, #tpu.memory_space<vmem>>, vector<1x8x128xf32>,
    %c3_145 = arith.constant 3 : index
    %c0_146 = arith.constant 0 : index
    %c0_147 = arith.constant 0 : index
    %376 = vector.load %arg3[%c3_145, %c0_146, %c0_147] : memref<4x8x128xf32, #tpu.memory_space<vmem>>, vector<1x8x128xf32>
    %377 = vector.shape_cast %376 : vector<1x8x128xf32> to vector<8x128xf32>
    %378 = arith.addf %377, %354 : vector<8x128xf32>
    %c3_148 = arith.constant 3 : index
    %c0_149 = arith.constant 0 : index
    %c0_150 = arith.constant 0 : index
    %379 = vector.load %arg3[%c3_148, %c0_149, %c0_150] : memref<4x8x128xf32, #tpu.memory_space<vmem>>, vector<1x8x128xf32>
    %380 = vector.shape_cast %379 : vector<1x8x128xf32> to vector<8x128xf32>
    %381 = vector.shape_cast %378 : vector<8x128xf32> to vector<1x8x128xf32>
    tpu.vector_store %arg3[%c3_148, %c0_149, %c0_150], %381 {strides = array<i32>} : memref<4x8x128xf32, #tpu.memory_space<vmem>>, vector<1x8x128xf32>,
    return
  }
  func.func @transform_0(%arg0: i32) -> (i32, i32, i32) {
    %c0_i32 = arith.constant 0 : i32
    %c0_i32_0 = arith.constant 0 : i32
    %c0_i32_1 = arith.constant 0 : i32
    return %c0_i32, %arg0, %c0_i32_0 : i32, i32, i32
  }
  func.func @transform_1(%arg0: i32) -> (i32, i32, i32) {
    %c0_i32 = arith.constant 0 : i32
    %c0_i32_0 = arith.constant 0 : i32
    %c0_i32_1 = arith.constant 0 : i32
    return %c0_i32, %arg0, %c0_i32_0 : i32, i32, i32
  }
  func.func @transform_2(%arg0: i32) -> (i32, i32, i32) {
    %c0_i32 = arith.constant 0 : i32
    %c0_i32_0 = arith.constant 0 : i32
    %c0_i32_1 = arith.constant 0 : i32
    %c0_i32_2 = arith.constant 0 : i32
    return %c0_i32, %c0_i32_0, %c0_i32_1 : i32, i32, i32
  }
}

module attributes {stable_mosaic.version = 11 : i64} {
  func.func @det_layer_kernel(%arg0: i32, %arg1: memref<13x8x128xf32, #tpu.memory_space<vmem>>, %arg2: memref<9x8x128xf32, #tpu.memory_space<vmem>>, %arg3: memref<4x8x128xf32, #tpu.memory_space<vmem>>) attributes {dimension_semantics = [#tpu.dimension_semantics<arbitrary>], iteration_bounds = array<i64: 1>, scalar_prefetch = 0 : i64, scratch_operands = 0 : i64, tpu.core_type = #tpu.core_type<tc>, window_params = [{transform_indices = @transform_0, window_bounds = array<i64: 13, 8, 128>}, {transform_indices = @transform_1, window_bounds = array<i64: 9, 8, 128>}, {pipeline_mode = #tpu.pipeline_mode<synchronous>, transform_indices = @transform_2, window_bounds = array<i64: 4, 8, 128>}]} {
    %c0_i32 = arith.constant 0 : i32
    %0 = arith.cmpi eq, %arg0, %c0_i32 : i32
    %1 = arith.extui %0 : i1 to i32
    %c0_i32_0 = arith.constant 0 : i32
    %2 = arith.cmpi ne, %1, %c0_i32_0 : i32
    scf.if %2 {
      %cst_151 = arith.constant 0.000000e+00 : f32
      %382 = vector.broadcast %cst_151 : f32 to vector<4x8x128xf32>
      %c0_152 = arith.constant 0 : index
      %c0_153 = arith.constant 0 : index
      %c0_154 = arith.constant 0 : index
      %383 = vector.load %arg3[%c0_152, %c0_153, %c0_154] : memref<4x8x128xf32, #tpu.memory_space<vmem>>, vector<4x8x128xf32>
      tpu.vector_store %arg3[%c0_152, %c0_153, %c0_154], %382 {strides = array<i32>} : memref<4x8x128xf32, #tpu.memory_space<vmem>>, vector<4x8x128xf32>,
    } else {
    }
    %c0 = arith.constant 0 : index
    %c0_1 = arith.constant 0 : index
    %c0_2 = arith.constant 0 : index
    %3 = vector.load %arg1[%c0, %c0_1, %c0_2] : memref<13x8x128xf32, #tpu.memory_space<vmem>>, vector<1x8x128xf32>
    %4 = vector.shape_cast %3 : vector<1x8x128xf32> to vector<8x128xf32>
    %5 = arith.negf %4 : vector<8x128xf32>
    %6 = math.exp %5 : vector<8x128xf32>
    %cst = arith.constant 1.000000e+00 : f32
    %7 = vector.broadcast %cst : f32 to vector<8x128xf32>
    %8 = arith.addf %7, %6 : vector<8x128xf32>
    %9 = arith.divf %7, %8 : vector<8x128xf32>
    %cst_3 = arith.constant 2.000000e+00 : f32
    %10 = vector.broadcast %cst_3 : f32 to vector<8x128xf32>
    %11 = arith.mulf %9, %10 : vector<8x128xf32>
    %cst_4 = arith.constant 5.000000e-01 : f32
    %12 = vector.broadcast %cst_4 : f32 to vector<8x128xf32>
    %13 = arith.subf %11, %12 : vector<8x128xf32>
    %c1 = arith.constant 1 : index
    %c0_5 = arith.constant 0 : index
    %c0_6 = arith.constant 0 : index
    %14 = vector.load %arg1[%c1, %c0_5, %c0_6] : memref<13x8x128xf32, #tpu.memory_space<vmem>>, vector<1x8x128xf32>
    %15 = vector.shape_cast %14 : vector<1x8x128xf32> to vector<8x128xf32>
    %16 = arith.negf %15 : vector<8x128xf32>
    %17 = math.exp %16 : vector<8x128xf32>
    %cst_7 = arith.constant 1.000000e+00 : f32
    %18 = vector.broadcast %cst_7 : f32 to vector<8x128xf32>
    %19 = arith.addf %18, %17 : vector<8x128xf32>
    %20 = arith.divf %18, %19 : vector<8x128xf32>
    %cst_8 = arith.constant 2.000000e+00 : f32
    %21 = vector.broadcast %cst_8 : f32 to vector<8x128xf32>
    %22 = arith.mulf %20, %21 : vector<8x128xf32>
    %cst_9 = arith.constant 5.000000e-01 : f32
    %23 = vector.broadcast %cst_9 : f32 to vector<8x128xf32>
    %24 = arith.subf %22, %23 : vector<8x128xf32>
    %c2 = arith.constant 2 : index
    %c0_10 = arith.constant 0 : index
    %c0_11 = arith.constant 0 : index
    %25 = vector.load %arg1[%c2, %c0_10, %c0_11] : memref<13x8x128xf32, #tpu.memory_space<vmem>>, vector<1x8x128xf32>
    %26 = vector.shape_cast %25 : vector<1x8x128xf32> to vector<8x128xf32>
    %27 = arith.negf %26 : vector<8x128xf32>
    %28 = math.exp %27 : vector<8x128xf32>
    %cst_12 = arith.constant 1.000000e+00 : f32
    %29 = vector.broadcast %cst_12 : f32 to vector<8x128xf32>
    %30 = arith.addf %29, %28 : vector<8x128xf32>
    %31 = arith.divf %29, %30 : vector<8x128xf32>
    %cst_13 = arith.constant 2.000000e+00 : f32
    %32 = vector.broadcast %cst_13 : f32 to vector<8x128xf32>
    %33 = arith.mulf %31, %32 : vector<8x128xf32>
    %34 = arith.mulf %33, %33 : vector<8x128xf32>
    %c4 = arith.constant 4 : index
    %c0_14 = arith.constant 0 : index
    %c0_15 = arith.constant 0 : index
    %35 = vector.load %arg2[%c4, %c0_14, %c0_15] : memref<9x8x128xf32, #tpu.memory_space<vmem>>, vector<1x8x128xf32>
    %36 = vector.shape_cast %35 : vector<1x8x128xf32> to vector<8x128xf32>
    %37 = arith.mulf %34, %36 : vector<8x128xf32>
    %c3 = arith.constant 3 : index
    %c0_16 = arith.constant 0 : index
    %c0_17 = arith.constant 0 : index
    %38 = vector.load %arg1[%c3, %c0_16, %c0_17] : memref<13x8x128xf32, #tpu.memory_space<vmem>>, vector<1x8x128xf32>
    %39 = vector.shape_cast %38 : vector<1x8x128xf32> to vector<8x128xf32>
    %40 = arith.negf %39 : vector<8x128xf32>
    %41 = math.exp %40 : vector<8x128xf32>
    %cst_18 = arith.constant 1.000000e+00 : f32
    %42 = vector.broadcast %cst_18 : f32 to vector<8x128xf32>
    %43 = arith.addf %42, %41 : vector<8x128xf32>
    %44 = arith.divf %42, %43 : vector<8x128xf32>
    %cst_19 = arith.constant 2.000000e+00 : f32
    %45 = vector.broadcast %cst_19 : f32 to vector<8x128xf32>
    %46 = arith.mulf %44, %45 : vector<8x128xf32>
    %47 = arith.mulf %46, %46 : vector<8x128xf32>
    %c5 = arith.constant 5 : index
    %c0_20 = arith.constant 0 : index
    %c0_21 = arith.constant 0 : index
    %48 = vector.load %arg2[%c5, %c0_20, %c0_21] : memref<9x8x128xf32, #tpu.memory_space<vmem>>, vector<1x8x128xf32>
    %49 = vector.shape_cast %48 : vector<1x8x128xf32> to vector<8x128xf32>
    %50 = arith.mulf %47, %49 : vector<8x128xf32>
    %c0_22 = arith.constant 0 : index
    %c0_23 = arith.constant 0 : index
    %c0_24 = arith.constant 0 : index
    %51 = vector.load %arg2[%c0_22, %c0_23, %c0_24] : memref<9x8x128xf32, #tpu.memory_space<vmem>>, vector<1x8x128xf32>
    %52 = vector.shape_cast %51 : vector<1x8x128xf32> to vector<8x128xf32>
    %c1_25 = arith.constant 1 : index
    %c0_26 = arith.constant 0 : index
    %c0_27 = arith.constant 0 : index
    %53 = vector.load %arg2[%c1_25, %c0_26, %c0_27] : memref<9x8x128xf32, #tpu.memory_space<vmem>>, vector<1x8x128xf32>
    %54 = vector.shape_cast %53 : vector<1x8x128xf32> to vector<8x128xf32>
    %c2_28 = arith.constant 2 : index
    %c0_29 = arith.constant 0 : index
    %c0_30 = arith.constant 0 : index
    %55 = vector.load %arg2[%c2_28, %c0_29, %c0_30] : memref<9x8x128xf32, #tpu.memory_space<vmem>>, vector<1x8x128xf32>
    %56 = vector.shape_cast %55 : vector<1x8x128xf32> to vector<8x128xf32>
    %c3_31 = arith.constant 3 : index
    %c0_32 = arith.constant 0 : index
    %c0_33 = arith.constant 0 : index
    %57 = vector.load %arg2[%c3_31, %c0_32, %c0_33] : memref<9x8x128xf32, #tpu.memory_space<vmem>>, vector<1x8x128xf32>
    %58 = vector.shape_cast %57 : vector<1x8x128xf32> to vector<8x128xf32>
    %c6 = arith.constant 6 : index
    %c0_34 = arith.constant 0 : index
    %c0_35 = arith.constant 0 : index
    %59 = vector.load %arg2[%c6, %c0_34, %c0_35] : memref<9x8x128xf32, #tpu.memory_space<vmem>>, vector<1x8x128xf32>
    %60 = vector.shape_cast %59 : vector<1x8x128xf32> to vector<8x128xf32>
    %c7 = arith.constant 7 : index
    %c0_36 = arith.constant 0 : index
    %c0_37 = arith.constant 0 : index
    %61 = vector.load %arg2[%c7, %c0_36, %c0_37] : memref<9x8x128xf32, #tpu.memory_space<vmem>>, vector<1x8x128xf32>
    %62 = vector.shape_cast %61 : vector<1x8x128xf32> to vector<8x128xf32>
    %c8 = arith.constant 8 : index
    %c0_38 = arith.constant 0 : index
    %c0_39 = arith.constant 0 : index
    %63 = vector.load %arg2[%c8, %c0_38, %c0_39] : memref<9x8x128xf32, #tpu.memory_space<vmem>>, vector<1x8x128xf32>
    %64 = vector.shape_cast %63 : vector<1x8x128xf32> to vector<8x128xf32>
    %cst_40 = arith.constant 5.000000e-01 : f32
    %65 = vector.broadcast %cst_40 : f32 to vector<8x128xf32>
    %66 = arith.mulf %37, %65 : vector<8x128xf32>
    %67 = arith.subf %13, %66 : vector<8x128xf32>
    %cst_41 = arith.constant 5.000000e-01 : f32
    %68 = vector.broadcast %cst_41 : f32 to vector<8x128xf32>
    %69 = arith.mulf %37, %68 : vector<8x128xf32>
    %70 = arith.addf %13, %69 : vector<8x128xf32>
    %cst_42 = arith.constant 5.000000e-01 : f32
    %71 = vector.broadcast %cst_42 : f32 to vector<8x128xf32>
    %72 = arith.mulf %50, %71 : vector<8x128xf32>
    %73 = arith.subf %24, %72 : vector<8x128xf32>
    %cst_43 = arith.constant 5.000000e-01 : f32
    %74 = vector.broadcast %cst_43 : f32 to vector<8x128xf32>
    %75 = arith.mulf %50, %74 : vector<8x128xf32>
    %76 = arith.addf %24, %75 : vector<8x128xf32>
    %cst_44 = arith.constant 5.000000e-01 : f32
    %77 = vector.broadcast %cst_44 : f32 to vector<8x128xf32>
    %78 = arith.mulf %56, %77 : vector<8x128xf32>
    %79 = arith.subf %52, %78 : vector<8x128xf32>
    %cst_45 = arith.constant 5.000000e-01 : f32
    %80 = vector.broadcast %cst_45 : f32 to vector<8x128xf32>
    %81 = arith.mulf %56, %80 : vector<8x128xf32>
    %82 = arith.addf %52, %81 : vector<8x128xf32>
    %cst_46 = arith.constant 5.000000e-01 : f32
    %83 = vector.broadcast %cst_46 : f32 to vector<8x128xf32>
    %84 = arith.mulf %58, %83 : vector<8x128xf32>
    %85 = arith.subf %54, %84 : vector<8x128xf32>
    %cst_47 = arith.constant 5.000000e-01 : f32
    %86 = vector.broadcast %cst_47 : f32 to vector<8x128xf32>
    %87 = arith.mulf %58, %86 : vector<8x128xf32>
    %88 = arith.addf %54, %87 : vector<8x128xf32>
    %89 = arith.minimumf %70, %82 : vector<8x128xf32>
    %90 = arith.maximumf %67, %79 : vector<8x128xf32>
    %91 = arith.subf %89, %90 : vector<8x128xf32>
    %cst_48 = arith.constant 0.000000e+00 : f32
    %92 = vector.broadcast %cst_48 : f32 to vector<8x128xf32>
    %93 = arith.maximumf %91, %92 : vector<8x128xf32>
    %94 = arith.minimumf %76, %88 : vector<8x128xf32>
    %95 = arith.maximumf %73, %85 : vector<8x128xf32>
    %96 = arith.subf %94, %95 : vector<8x128xf32>
    %cst_49 = arith.constant 0.000000e+00 : f32
    %97 = vector.broadcast %cst_49 : f32 to vector<8x128xf32>
    %98 = arith.maximumf %96, %97 : vector<8x128xf32>
    %99 = arith.mulf %93, %98 : vector<8x128xf32>
    %100 = arith.mulf %37, %50 : vector<8x128xf32>
    %101 = arith.mulf %56, %58 : vector<8x128xf32>
    %102 = arith.addf %100, %101 : vector<8x128xf32>
    %103 = arith.subf %102, %99 : vector<8x128xf32>
    %cst_50 = arith.constant 1.000000e-07 : f32
    %104 = vector.broadcast %cst_50 : f32 to vector<8x128xf32>
    %105 = arith.addf %103, %104 : vector<8x128xf32>
    %106 = arith.divf %99, %105 : vector<8x128xf32>
    %107 = arith.maximumf %70, %82 : vector<8x128xf32>
    %108 = arith.minimumf %67, %79 : vector<8x128xf32>
    %109 = arith.subf %107, %108 : vector<8x128xf32>
    %110 = arith.maximumf %76, %88 : vector<8x128xf32>
    %111 = arith.minimumf %73, %85 : vector<8x128xf32>
    %112 = arith.subf %110, %111 : vector<8x128xf32>
    %113 = arith.mulf %109, %109 : vector<8x128xf32>
    %114 = arith.mulf %112, %112 : vector<8x128xf32>
    %115 = arith.addf %113, %114 : vector<8x128xf32>
    %cst_51 = arith.constant 1.000000e-07 : f32
    %116 = vector.broadcast %cst_51 : f32 to vector<8x128xf32>
    %117 = arith.addf %115, %116 : vector<8x128xf32>
    %118 = arith.addf %79, %82 : vector<8x128xf32>
    %119 = arith.subf %118, %67 : vector<8x128xf32>
    %120 = arith.subf %119, %70 : vector<8x128xf32>
    %121 = arith.mulf %120, %120 : vector<8x128xf32>
    %122 = arith.addf %85, %88 : vector<8x128xf32>
    %123 = arith.subf %122, %73 : vector<8x128xf32>
    %124 = arith.subf %123, %76 : vector<8x128xf32>
    %125 = arith.mulf %124, %124 : vector<8x128xf32>
    %126 = arith.addf %121, %125 : vector<8x128xf32>
    %cst_52 = arith.constant 2.500000e-01 : f32
    %127 = vector.broadcast %cst_52 : f32 to vector<8x128xf32>
    %128 = arith.mulf %126, %127 : vector<8x128xf32>
    %cst_53 = arith.constant 1.000000e-07 : f32
    %129 = vector.broadcast %cst_53 : f32 to vector<8x128xf32>
    %130 = arith.addf %50, %129 : vector<8x128xf32>
    %131 = arith.divf %37, %130 : vector<8x128xf32>
    %cst_54 = arith.constant 1.000000e+00 : f32
    %132 = vector.broadcast %cst_54 : f32 to vector<8x128xf32>
    %133 = arith.cmpf ogt, %131, %132 : vector<8x128xf32>
    %cst_55 = arith.constant 9.99999996E-13 : f32
    %134 = vector.broadcast %cst_55 : f32 to vector<8x128xf32>
    %135 = arith.maximumf %131, %134 : vector<8x128xf32>
    %cst_56 = arith.constant 1.000000e+00 : f32
    %136 = vector.broadcast %cst_56 : f32 to vector<8x128xf32>
    %137 = arith.divf %136, %135 : vector<8x128xf32>
    %138 = arith.select %133, %137, %131 : vector<8x128xi1>, vector<8x128xf32>
    %139 = arith.mulf %138, %138 : vector<8x128xf32>
    %cst_57 = arith.constant 2.083510e-02 : f32
    %140 = vector.broadcast %cst_57 : f32 to vector<8x128xf32>
    %141 = arith.mulf %139, %140 : vector<8x128xf32>
    %cst_58 = arith.constant -8.513300e-02 : f32
    %142 = vector.broadcast %cst_58 : f32 to vector<8x128xf32>
    %143 = arith.addf %142, %141 : vector<8x128xf32>
    %144 = arith.mulf %139, %143 : vector<8x128xf32>
    %cst_59 = arith.constant 1.801410e-01 : f32
    %145 = vector.broadcast %cst_59 : f32 to vector<8x128xf32>
    %146 = arith.addf %145, %144 : vector<8x128xf32>
    %147 = arith.mulf %139, %146 : vector<8x128xf32>
    %cst_60 = arith.constant -0.330299497 : f32
    %148 = vector.broadcast %cst_60 : f32 to vector<8x128xf32>
    %149 = arith.addf %148, %147 : vector<8x128xf32>
    %150 = arith.mulf %139, %149 : vector<8x128xf32>
    %cst_61 = arith.constant 9.998660e-01 : f32
    %151 = vector.broadcast %cst_61 : f32 to vector<8x128xf32>
    %152 = arith.addf %151, %150 : vector<8x128xf32>
    %153 = arith.mulf %138, %152 : vector<8x128xf32>
    %cst_62 = arith.constant 1.57079637 : f32
    %154 = vector.broadcast %cst_62 : f32 to vector<8x128xf32>
    %155 = arith.subf %154, %153 : vector<8x128xf32>
    %156 = arith.select %133, %155, %153 : vector<8x128xi1>, vector<8x128xf32>
    %157 = arith.subf %62, %156 : vector<8x128xf32>
    %158 = arith.mulf %157, %157 : vector<8x128xf32>
    %cst_63 = arith.constant 0.405284733 : f32
    %159 = vector.broadcast %cst_63 : f32 to vector<8x128xf32>
    %160 = arith.mulf %159, %158 : vector<8x128xf32>
    %161 = arith.subf %160, %106 : vector<8x128xf32>
    %cst_64 = arith.constant 1.00000012 : f32
    %162 = vector.broadcast %cst_64 : f32 to vector<8x128xf32>
    %163 = arith.addf %161, %162 : vector<8x128xf32>
    %164 = arith.divf %160, %163 : vector<8x128xf32>
    %165 = arith.divf %128, %117 : vector<8x128xf32>
    %166 = arith.mulf %160, %164 : vector<8x128xf32>
    %167 = arith.addf %165, %166 : vector<8x128xf32>
    %168 = arith.subf %106, %167 : vector<8x128xf32>
    %c1024_i32 = arith.constant 1024 : i32
    %169 = arith.muli %arg0, %c1024_i32 : i32
    %170 = tpu.iota {dimensions = array<i32: 0>} : vector<8x128xi32>
    %171 = tpu.iota {dimensions = array<i32: 1>} : vector<8x128xi32>
    %c128_i32 = arith.constant 128 : i32
    %172 = vector.broadcast %c128_i32 : i32 to vector<8x128xi32>
    %173 = arith.muli %170, %172 : vector<8x128xi32>
    %174 = vector.broadcast %169 : i32 to vector<8x128xi32>
    %175 = arith.addi %174, %173 : vector<8x128xi32>
    %176 = arith.addi %175, %171 : vector<8x128xi32>
    %c96_i32 = arith.constant 96 : i32
    %177 = vector.broadcast %c96_i32 : i32 to vector<8x128xi32>
    %178 = arith.cmpi slt, %176, %177 : vector<8x128xi32>
    %179 = arith.extui %178 : vector<8x128xi1> to vector<8x128xi32>
    %180 = arith.sitofp %179 : vector<8x128xi32> to vector<8x128xf32>
    %cst_65 = arith.constant 0.000000e+00 : f32
    %181 = vector.broadcast %cst_65 : f32 to vector<8x128xf32>
    %182 = arith.maximumf %168, %181 : vector<8x128xf32>
    %183 = arith.mulf %60, %182 : vector<8x128xf32>
    %c4_66 = arith.constant 4 : index
    %c0_67 = arith.constant 0 : index
    %c0_68 = arith.constant 0 : index
    %184 = vector.load %arg1[%c4_66, %c0_67, %c0_68] : memref<13x8x128xf32, #tpu.memory_space<vmem>>, vector<1x8x128xf32>
    %185 = vector.shape_cast %184 : vector<1x8x128xf32> to vector<8x128xf32>
    %cst_69 = arith.constant 0.000000e+00 : f32
    %186 = vector.broadcast %cst_69 : f32 to vector<8x128xf32>
    %187 = arith.maximumf %185, %186 : vector<8x128xf32>
    %188 = arith.mulf %185, %183 : vector<8x128xf32>
    %189 = arith.subf %187, %188 : vector<8x128xf32>
    %190 = math.absf %185 : vector<8x128xf32>
    %cst_70 = arith.constant 0.000000e+00 : f32
    %191 = vector.broadcast %cst_70 : f32 to vector<8x128xf32>
    %192 = arith.subf %191, %190 : vector<8x128xf32>
    %193 = math.exp %192 : vector<8x128xf32>
    %cst_71 = arith.constant 1.000000e+00 : f32
    %194 = vector.broadcast %cst_71 : f32 to vector<8x128xf32>
    %195 = arith.addf %194, %193 : vector<8x128xf32>
    %196 = math.log %195 : vector<8x128xf32>
    %197 = arith.addf %189, %196 : vector<8x128xf32>
    %198 = arith.mulf %180, %197 : vector<8x128xf32>
    %cst_72 = arith.constant 0.000000e+00 : f32
    %199 = vector.broadcast %cst_72 : f32 to vector<8x128xf32>
    %cst_73 = arith.constant 0.000000e+00 : f32
    %200 = vector.broadcast %cst_73 : f32 to vector<8x128xf32>
    %cst_74 = arith.constant 0.000000e+00 : f32
    %201 = vector.broadcast %cst_74 : f32 to vector<8x128xf32>
    %202 = arith.cmpf oeq, %64, %201 : vector<8x128xf32>
    %203 = arith.extui %202 : vector<8x128xi1> to vector<8x128xi32>
    %204 = arith.sitofp %203 : vector<8x128xi32> to vector<8x128xf32>
    %c5_75 = arith.constant 5 : index
    %c0_76 = arith.constant 0 : index
    %c0_77 = arith.constant 0 : index
    %205 = vector.load %arg1[%c5_75, %c0_76, %c0_77] : memref<13x8x128xf32, #tpu.memory_space<vmem>>, vector<1x8x128xf32>
    %206 = vector.shape_cast %205 : vector<1x8x128xf32> to vector<8x128xf32>
    %cst_78 = arith.constant 0.000000e+00 : f32
    %207 = vector.broadcast %cst_78 : f32 to vector<8x128xf32>
    %208 = arith.maximumf %206, %207 : vector<8x128xf32>
    %209 = arith.mulf %206, %204 : vector<8x128xf32>
    %210 = arith.subf %208, %209 : vector<8x128xf32>
    %211 = math.absf %206 : vector<8x128xf32>
    %cst_79 = arith.constant 0.000000e+00 : f32
    %212 = vector.broadcast %cst_79 : f32 to vector<8x128xf32>
    %213 = arith.subf %212, %211 : vector<8x128xf32>
    %214 = math.exp %213 : vector<8x128xf32>
    %cst_80 = arith.constant 1.000000e+00 : f32
    %215 = vector.broadcast %cst_80 : f32 to vector<8x128xf32>
    %216 = arith.addf %215, %214 : vector<8x128xf32>
    %217 = math.log %216 : vector<8x128xf32>
    %218 = arith.addf %210, %217 : vector<8x128xf32>
    %219 = arith.addf %199, %218 : vector<8x128xf32>
    %cst_81 = arith.constant 1.000000e+00 : f32
    %220 = vector.broadcast %cst_81 : f32 to vector<8x128xf32>
    %221 = arith.cmpf oeq, %64, %220 : vector<8x128xf32>
    %222 = arith.extui %221 : vector<8x128xi1> to vector<8x128xi32>
    %223 = arith.sitofp %222 : vector<8x128xi32> to vector<8x128xf32>
    %c6_82 = arith.constant 6 : index
    %c0_83 = arith.constant 0 : index
    %c0_84 = arith.constant 0 : index
    %224 = vector.load %arg1[%c6_82, %c0_83, %c0_84] : memref<13x8x128xf32, #tpu.memory_space<vmem>>, vector<1x8x128xf32>
    %225 = vector.shape_cast %224 : vector<1x8x128xf32> to vector<8x128xf32>
    %cst_85 = arith.constant 0.000000e+00 : f32
    %226 = vector.broadcast %cst_85 : f32 to vector<8x128xf32>
    %227 = arith.maximumf %225, %226 : vector<8x128xf32>
    %228 = arith.mulf %225, %223 : vector<8x128xf32>
    %229 = arith.subf %227, %228 : vector<8x128xf32>
    %230 = math.absf %225 : vector<8x128xf32>
    %cst_86 = arith.constant 0.000000e+00 : f32
    %231 = vector.broadcast %cst_86 : f32 to vector<8x128xf32>
    %232 = arith.subf %231, %230 : vector<8x128xf32>
    %233 = math.exp %232 : vector<8x128xf32>
    %cst_87 = arith.constant 1.000000e+00 : f32
    %234 = vector.broadcast %cst_87 : f32 to vector<8x128xf32>
    %235 = arith.addf %234, %233 : vector<8x128xf32>
    %236 = math.log %235 : vector<8x128xf32>
    %237 = arith.addf %229, %236 : vector<8x128xf32>
    %238 = arith.addf %200, %237 : vector<8x128xf32>
    %cst_88 = arith.constant 2.000000e+00 : f32
    %239 = vector.broadcast %cst_88 : f32 to vector<8x128xf32>
    %240 = arith.cmpf oeq, %64, %239 : vector<8x128xf32>
    %241 = arith.extui %240 : vector<8x128xi1> to vector<8x128xi32>
    %242 = arith.sitofp %241 : vector<8x128xi32> to vector<8x128xf32>
    %c7_89 = arith.constant 7 : index
    %c0_90 = arith.constant 0 : index
    %c0_91 = arith.constant 0 : index
    %243 = vector.load %arg1[%c7_89, %c0_90, %c0_91] : memref<13x8x128xf32, #tpu.memory_space<vmem>>, vector<1x8x128xf32>
    %244 = vector.shape_cast %243 : vector<1x8x128xf32> to vector<8x128xf32>
    %cst_92 = arith.constant 0.000000e+00 : f32
    %245 = vector.broadcast %cst_92 : f32 to vector<8x128xf32>
    %246 = arith.maximumf %244, %245 : vector<8x128xf32>
    %247 = arith.mulf %244, %242 : vector<8x128xf32>
    %248 = arith.subf %246, %247 : vector<8x128xf32>
    %249 = math.absf %244 : vector<8x128xf32>
    %cst_93 = arith.constant 0.000000e+00 : f32
    %250 = vector.broadcast %cst_93 : f32 to vector<8x128xf32>
    %251 = arith.subf %250, %249 : vector<8x128xf32>
    %252 = math.exp %251 : vector<8x128xf32>
    %cst_94 = arith.constant 1.000000e+00 : f32
    %253 = vector.broadcast %cst_94 : f32 to vector<8x128xf32>
    %254 = arith.addf %253, %252 : vector<8x128xf32>
    %255 = math.log %254 : vector<8x128xf32>
    %256 = arith.addf %248, %255 : vector<8x128xf32>
    %257 = arith.addf %219, %256 : vector<8x128xf32>
    %cst_95 = arith.constant 3.000000e+00 : f32
    %258 = vector.broadcast %cst_95 : f32 to vector<8x128xf32>
    %259 = arith.cmpf oeq, %64, %258 : vector<8x128xf32>
    %260 = arith.extui %259 : vector<8x128xi1> to vector<8x128xi32>
    %261 = arith.sitofp %260 : vector<8x128xi32> to vector<8x128xf32>
    %c8_96 = arith.constant 8 : index
    %c0_97 = arith.constant 0 : index
    %c0_98 = arith.constant 0 : index
    %262 = vector.load %arg1[%c8_96, %c0_97, %c0_98] : memref<13x8x128xf32, #tpu.memory_space<vmem>>, vector<1x8x128xf32>
    %263 = vector.shape_cast %262 : vector<1x8x128xf32> to vector<8x128xf32>
    %cst_99 = arith.constant 0.000000e+00 : f32
    %264 = vector.broadcast %cst_99 : f32 to vector<8x128xf32>
    %265 = arith.maximumf %263, %264 : vector<8x128xf32>
    %266 = arith.mulf %263, %261 : vector<8x128xf32>
    %267 = arith.subf %265, %266 : vector<8x128xf32>
    %268 = math.absf %263 : vector<8x128xf32>
    %cst_100 = arith.constant 0.000000e+00 : f32
    %269 = vector.broadcast %cst_100 : f32 to vector<8x128xf32>
    %270 = arith.subf %269, %268 : vector<8x128xf32>
    %271 = math.exp %270 : vector<8x128xf32>
    %cst_101 = arith.constant 1.000000e+00 : f32
    %272 = vector.broadcast %cst_101 : f32 to vector<8x128xf32>
    %273 = arith.addf %272, %271 : vector<8x128xf32>
    %274 = math.log %273 : vector<8x128xf32>
    %275 = arith.addf %267, %274 : vector<8x128xf32>
    %276 = arith.addf %238, %275 : vector<8x128xf32>
    %cst_102 = arith.constant 4.000000e+00 : f32
    %277 = vector.broadcast %cst_102 : f32 to vector<8x128xf32>
    %278 = arith.cmpf oeq, %64, %277 : vector<8x128xf32>
    %279 = arith.extui %278 : vector<8x128xi1> to vector<8x128xi32>
    %280 = arith.sitofp %279 : vector<8x128xi32> to vector<8x128xf32>
    %c9 = arith.constant 9 : index
    %c0_103 = arith.constant 0 : index
    %c0_104 = arith.constant 0 : index
    %281 = vector.load %arg1[%c9, %c0_103, %c0_104] : memref<13x8x128xf32, #tpu.memory_space<vmem>>, vector<1x8x128xf32>
    %282 = vector.shape_cast %281 : vector<1x8x128xf32> to vector<8x128xf32>
    %cst_105 = arith.constant 0.000000e+00 : f32
    %283 = vector.broadcast %cst_105 : f32 to vector<8x128xf32>
    %284 = arith.maximumf %282, %283 : vector<8x128xf32>
    %285 = arith.mulf %282, %280 : vector<8x128xf32>
    %286 = arith.subf %284, %285 : vector<8x128xf32>
    %287 = math.absf %282 : vector<8x128xf32>
    %cst_106 = arith.constant 0.000000e+00 : f32
    %288 = vector.broadcast %cst_106 : f32 to vector<8x128xf32>
    %289 = arith.subf %288, %287 : vector<8x128xf32>
    %290 = math.exp %289 : vector<8x128xf32>
    %cst_107 = arith.constant 1.000000e+00 : f32
    %291 = vector.broadcast %cst_107 : f32 to vector<8x128xf32>
    %292 = arith.addf %291, %290 : vector<8x128xf32>
    %293 = math.log %292 : vector<8x128xf32>
    %294 = arith.addf %286, %293 : vector<8x128xf32>
    %295 = arith.addf %257, %294 : vector<8x128xf32>
    %cst_108 = arith.constant 5.000000e+00 : f32
    %296 = vector.broadcast %cst_108 : f32 to vector<8x128xf32>
    %297 = arith.cmpf oeq, %64, %296 : vector<8x128xf32>
    %298 = arith.extui %297 : vector<8x128xi1> to vector<8x128xi32>
    %299 = arith.sitofp %298 : vector<8x128xi32> to vector<8x128xf32>
    %c10 = arith.constant 10 : index
    %c0_109 = arith.constant 0 : index
    %c0_110 = arith.constant 0 : index
    %300 = vector.load %arg1[%c10, %c0_109, %c0_110] : memref<13x8x128xf32, #tpu.memory_space<vmem>>, vector<1x8x128xf32>
    %301 = vector.shape_cast %300 : vector<1x8x128xf32> to vector<8x128xf32>
    %cst_111 = arith.constant 0.000000e+00 : f32
    %302 = vector.broadcast %cst_111 : f32 to vector<8x128xf32>
    %303 = arith.maximumf %301, %302 : vector<8x128xf32>
    %304 = arith.mulf %301, %299 : vector<8x128xf32>
    %305 = arith.subf %303, %304 : vector<8x128xf32>
    %306 = math.absf %301 : vector<8x128xf32>
    %cst_112 = arith.constant 0.000000e+00 : f32
    %307 = vector.broadcast %cst_112 : f32 to vector<8x128xf32>
    %308 = arith.subf %307, %306 : vector<8x128xf32>
    %309 = math.exp %308 : vector<8x128xf32>
    %cst_113 = arith.constant 1.000000e+00 : f32
    %310 = vector.broadcast %cst_113 : f32 to vector<8x128xf32>
    %311 = arith.addf %310, %309 : vector<8x128xf32>
    %312 = math.log %311 : vector<8x128xf32>
    %313 = arith.addf %305, %312 : vector<8x128xf32>
    %314 = arith.addf %276, %313 : vector<8x128xf32>
    %cst_114 = arith.constant 6.000000e+00 : f32
    %315 = vector.broadcast %cst_114 : f32 to vector<8x128xf32>
    %316 = arith.cmpf oeq, %64, %315 : vector<8x128xf32>
    %317 = arith.extui %316 : vector<8x128xi1> to vector<8x128xi32>
    %318 = arith.sitofp %317 : vector<8x128xi32> to vector<8x128xf32>
    %c11 = arith.constant 11 : index
    %c0_115 = arith.constant 0 : index
    %c0_116 = arith.constant 0 : index
    %319 = vector.load %arg1[%c11, %c0_115, %c0_116] : memref<13x8x128xf32, #tpu.memory_space<vmem>>, vector<1x8x128xf32>
    %320 = vector.shape_cast %319 : vector<1x8x128xf32> to vector<8x128xf32>
    %cst_117 = arith.constant 0.000000e+00 : f32
    %321 = vector.broadcast %cst_117 : f32 to vector<8x128xf32>
    %322 = arith.maximumf %320, %321 : vector<8x128xf32>
    %323 = arith.mulf %320, %318 : vector<8x128xf32>
    %324 = arith.subf %322, %323 : vector<8x128xf32>
    %325 = math.absf %320 : vector<8x128xf32>
    %cst_118 = arith.constant 0.000000e+00 : f32
    %326 = vector.broadcast %cst_118 : f32 to vector<8x128xf32>
    %327 = arith.subf %326, %325 : vector<8x128xf32>
    %328 = math.exp %327 : vector<8x128xf32>
    %cst_119 = arith.constant 1.000000e+00 : f32
    %329 = vector.broadcast %cst_119 : f32 to vector<8x128xf32>
    %330 = arith.addf %329, %328 : vector<8x128xf32>
    %331 = math.log %330 : vector<8x128xf32>
    %332 = arith.addf %324, %331 : vector<8x128xf32>
    %333 = arith.addf %295, %332 : vector<8x128xf32>
    %cst_120 = arith.constant 7.000000e+00 : f32
    %334 = vector.broadcast %cst_120 : f32 to vector<8x128xf32>
    %335 = arith.cmpf oeq, %64, %334 : vector<8x128xf32>
    %336 = arith.extui %335 : vector<8x128xi1> to vector<8x128xi32>
    %337 = arith.sitofp %336 : vector<8x128xi32> to vector<8x128xf32>
    %c12 = arith.constant 12 : index
    %c0_121 = arith.constant 0 : index
    %c0_122 = arith.constant 0 : index
    %338 = vector.load %arg1[%c12, %c0_121, %c0_122] : memref<13x8x128xf32, #tpu.memory_space<vmem>>, vector<1x8x128xf32>
    %339 = vector.shape_cast %338 : vector<1x8x128xf32> to vector<8x128xf32>
    %cst_123 = arith.constant 0.000000e+00 : f32
    %340 = vector.broadcast %cst_123 : f32 to vector<8x128xf32>
    %341 = arith.maximumf %339, %340 : vector<8x128xf32>
    %342 = arith.mulf %339, %337 : vector<8x128xf32>
    %343 = arith.subf %341, %342 : vector<8x128xf32>
    %344 = math.absf %339 : vector<8x128xf32>
    %cst_124 = arith.constant 0.000000e+00 : f32
    %345 = vector.broadcast %cst_124 : f32 to vector<8x128xf32>
    %346 = arith.subf %345, %344 : vector<8x128xf32>
    %347 = math.exp %346 : vector<8x128xf32>
    %cst_125 = arith.constant 1.000000e+00 : f32
    %348 = vector.broadcast %cst_125 : f32 to vector<8x128xf32>
    %349 = arith.addf %348, %347 : vector<8x128xf32>
    %350 = math.log %349 : vector<8x128xf32>
    %351 = arith.addf %343, %350 : vector<8x128xf32>
    %352 = arith.addf %314, %351 : vector<8x128xf32>
    %353 = arith.addf %333, %352 : vector<8x128xf32>
    %354 = arith.mulf %60, %353 : vector<8x128xf32>
    %c0_126 = arith.constant 0 : index
    %c0_127 = arith.constant 0 : index
    %c0_128 = arith.constant 0 : index
    %355 = vector.load %arg3[%c0_126, %c0_127, %c0_128] : memref<4x8x128xf32, #tpu.memory_space<vmem>>, vector<1x8x128xf32>
    %356 = vector.shape_cast %355 : vector<1x8x128xf32> to vector<8x128xf32>
    %cst_129 = arith.constant 1.000000e+00 : f32
    %357 = vector.broadcast %cst_129 : f32 to vector<8x128xf32>
    %358 = arith.subf %357, %168 : vector<8x128xf32>
    %359 = arith.mulf %60, %358 : vector<8x128xf32>
    %360 = arith.addf %356, %359 : vector<8x128xf32>
    %c0_130 = arith.constant 0 : index
    %c0_131 = arith.constant 0 : index
    %c0_132 = arith.constant 0 : index
    %361 = vector.load %arg3[%c0_130, %c0_131, %c0_132] : memref<4x8x128xf32, #tpu.memory_space<vmem>>, vector<1x8x128xf32>
    %362 = vector.shape_cast %361 : vector<1x8x128xf32> to vector<8x128xf32>
    %363 = vector.shape_cast %360 : vector<8x128xf32> to vector<1x8x128xf32>
    tpu.vector_store %arg3[%c0_130, %c0_131, %c0_132], %363 {strides = array<i32>} : memref<4x8x128xf32, #tpu.memory_space<vmem>>, vector<1x8x128xf32>,
    %c1_133 = arith.constant 1 : index
    %c0_134 = arith.constant 0 : index
    %c0_135 = arith.constant 0 : index
    %364 = vector.load %arg3[%c1_133, %c0_134, %c0_135] : memref<4x8x128xf32, #tpu.memory_space<vmem>>, vector<1x8x128xf32>
    %365 = vector.shape_cast %364 : vector<1x8x128xf32> to vector<8x128xf32>
    %366 = arith.addf %365, %60 : vector<8x128xf32>
    %c1_136 = arith.constant 1 : index
    %c0_137 = arith.constant 0 : index
    %c0_138 = arith.constant 0 : index
    %367 = vector.load %arg3[%c1_136, %c0_137, %c0_138] : memref<4x8x128xf32, #tpu.memory_space<vmem>>, vector<1x8x128xf32>
    %368 = vector.shape_cast %367 : vector<1x8x128xf32> to vector<8x128xf32>
    %369 = vector.shape_cast %366 : vector<8x128xf32> to vector<1x8x128xf32>
    tpu.vector_store %arg3[%c1_136, %c0_137, %c0_138], %369 {strides = array<i32>} : memref<4x8x128xf32, #tpu.memory_space<vmem>>, vector<1x8x128xf32>,
    %c2_139 = arith.constant 2 : index
    %c0_140 = arith.constant 0 : index
    %c0_141 = arith.constant 0 : index
    %370 = vector.load %arg3[%c2_139, %c0_140, %c0_141] : memref<4x8x128xf32, #tpu.memory_space<vmem>>, vector<1x8x128xf32>
    %371 = vector.shape_cast %370 : vector<1x8x128xf32> to vector<8x128xf32>
    %372 = arith.addf %371, %198 : vector<8x128xf32>
    %c2_142 = arith.constant 2 : index
    %c0_143 = arith.constant 0 : index
    %c0_144 = arith.constant 0 : index
    %373 = vector.load %arg3[%c2_142, %c0_143, %c0_144] : memref<4x8x128xf32, #tpu.memory_space<vmem>>, vector<1x8x128xf32>
    %374 = vector.shape_cast %373 : vector<1x8x128xf32> to vector<8x128xf32>
    %375 = vector.shape_cast %372 : vector<8x128xf32> to vector<1x8x128xf32>
    tpu.vector_store %arg3[%c2_142, %c0_143, %c0_144], %375 {strides = array<i32>} : memref<4x8x128xf32, #tpu.memory_space<vmem>>, vector<1x8x128xf32>,
    %c3_145 = arith.constant 3 : index
    %c0_146 = arith.constant 0 : index
    %c0_147 = arith.constant 0 : index
    %376 = vector.load %arg3[%c3_145, %c0_146, %c0_147] : memref<4x8x128xf32, #tpu.memory_space<vmem>>, vector<1x8x128xf32>
    %377 = vector.shape_cast %376 : vector<1x8x128xf32> to vector<8x128xf32>
    %378 = arith.addf %377, %354 : vector<8x128xf32>
    %c3_148 = arith.constant 3 : index
    %c0_149 = arith.constant 0 : index
    %c0_150 = arith.constant 0 : index
    %379 = vector.load %arg3[%c3_148, %c0_149, %c0_150] : memref<4x8x128xf32, #tpu.memory_space<vmem>>, vector<1x8x128xf32>
    %380 = vector.shape_cast %379 : vector<1x8x128xf32> to vector<8x128xf32>
    %381 = vector.shape_cast %378 : vector<8x128xf32> to vector<1x8x128xf32>
    tpu.vector_store %arg3[%c3_148, %c0_149, %c0_150], %381 {strides = array<i32>} : memref<4x8x128xf32, #tpu.memory_space<vmem>>, vector<1x8x128xf32>,
    return
  }
  func.func @transform_0(%arg0: i32) -> (i32, i32, i32) {
    %c0_i32 = arith.constant 0 : i32
    %c0_i32_0 = arith.constant 0 : i32
    %c0_i32_1 = arith.constant 0 : i32
    return %c0_i32, %arg0, %c0_i32_0 : i32, i32, i32
  }
  func.func @transform_1(%arg0: i32) -> (i32, i32, i32) {
    %c0_i32 = arith.constant 0 : i32
    %c0_i32_0 = arith.constant 0 : i32
    %c0_i32_1 = arith.constant 0 : i32
    return %c0_i32, %arg0, %c0_i32_0 : i32, i32, i32
  }
  func.func @transform_2(%arg0: i32) -> (i32, i32, i32) {
    %c0_i32 = arith.constant 0 : i32
    %c0_i32_0 = arith.constant 0 : i32
    %c0_i32_1 = arith.constant 0 : i32
    %c0_i32_2 = arith.constant 0 : i32
    return %c0_i32, %c0_i32_0, %c0_i32_1 : i32, i32, i32
  }
}

module attributes {stable_mosaic.version = 11 : i64} {
  func.func @seg_bce_kernel(%arg0: i32, %arg1: memref<32x128xf32, #tpu.memory_space<vmem>>, %arg2: memref<32x128xf32, #tpu.memory_space<vmem>>, %arg3: memref<32x128xf32, #tpu.memory_space<vmem>>, %arg4: memref<32x128xf32, #tpu.memory_space<vmem>>, %arg5: memref<2x8x128xf32, #tpu.memory_space<vmem>>) attributes {dimension_semantics = [#tpu.dimension_semantics<arbitrary>], iteration_bounds = array<i64: 1>, scalar_prefetch = 0 : i64, scratch_operands = 0 : i64, tpu.core_type = #tpu.core_type<tc>, window_params = [{transform_indices = @transform_0, window_bounds = array<i64: 32, 128>}, {transform_indices = @transform_1, window_bounds = array<i64: 32, 128>}, {transform_indices = @transform_2, window_bounds = array<i64: 32, 128>}, {transform_indices = @transform_3, window_bounds = array<i64: 32, 128>}, {pipeline_mode = #tpu.pipeline_mode<synchronous>, transform_indices = @transform_4, window_bounds = array<i64: 2, 8, 128>}]} {
    %c0_i32 = arith.constant 0 : i32
    %0 = arith.cmpi eq, %arg0, %c0_i32 : i32
    %1 = arith.extui %0 : i1 to i32
    %c0_i32_0 = arith.constant 0 : i32
    %2 = arith.cmpi ne, %1, %c0_i32_0 : i32
    scf.if %2 {
      %cst_24 = arith.constant 0.000000e+00 : f32
      %57 = vector.broadcast %cst_24 : f32 to vector<2x8x128xf32>
      %c0_25 = arith.constant 0 : index
      %c0_26 = arith.constant 0 : index
      %c0_27 = arith.constant 0 : index
      %58 = vector.load %arg5[%c0_25, %c0_26, %c0_27] : memref<2x8x128xf32, #tpu.memory_space<vmem>>, vector<2x8x128xf32>
      tpu.vector_store %arg5[%c0_25, %c0_26, %c0_27], %57 {strides = array<i32>} : memref<2x8x128xf32, #tpu.memory_space<vmem>>, vector<2x8x128xf32>,
    } else {
    }
    %c0 = arith.constant 0 : index
    %c0_1 = arith.constant 0 : index
    %c0_2 = arith.constant 0 : index
    %3 = vector.load %arg5[%c0, %c0_1, %c0_2] : memref<2x8x128xf32, #tpu.memory_space<vmem>>, vector<1x8x128xf32>
    %4 = vector.shape_cast %3 : vector<1x8x128xf32> to vector<8x128xf32>
    %c0_3 = arith.constant 0 : index
    %c0_4 = arith.constant 0 : index
    %5 = vector.load %arg1[%c0_3, %c0_4] : memref<32x128xf32, #tpu.memory_space<vmem>>, vector<32x128xf32>
    %c0_5 = arith.constant 0 : index
    %c0_6 = arith.constant 0 : index
    %6 = vector.load %arg2[%c0_5, %c0_6] : memref<32x128xf32, #tpu.memory_space<vmem>>, vector<32x128xf32>
    %cst = arith.constant 0.000000e+00 : f32
    %7 = vector.broadcast %cst : f32 to vector<32x128xf32>
    %8 = arith.maximumf %5, %7 : vector<32x128xf32>
    %9 = arith.mulf %5, %6 : vector<32x128xf32>
    %10 = arith.subf %8, %9 : vector<32x128xf32>
    %11 = math.absf %5 : vector<32x128xf32>
    %cst_7 = arith.constant 0.000000e+00 : f32
    %12 = vector.broadcast %cst_7 : f32 to vector<32x128xf32>
    %13 = arith.subf %12, %11 : vector<32x128xf32>
    %14 = math.exp %13 : vector<32x128xf32>
    %cst_8 = arith.constant 1.000000e+00 : f32
    %15 = vector.broadcast %cst_8 : f32 to vector<32x128xf32>
    %16 = arith.addf %15, %14 : vector<32x128xf32>
    %17 = math.log %16 : vector<32x128xf32>
    %18 = arith.addf %10, %17 : vector<32x128xf32>
    %19 = vector.extract_strided_slice %18 {offsets = [0, 0], sizes = [8, 128], strides = [1, 1]} : vector<32x128xf32> to vector<8x128xf32>
    %20 = vector.extract_strided_slice %18 {offsets = [8, 0], sizes = [8, 128], strides = [1, 1]} : vector<32x128xf32> to vector<8x128xf32>
    %21 = arith.addf %19, %20 : vector<8x128xf32>
    %22 = vector.extract_strided_slice %18 {offsets = [16, 0], sizes = [8, 128], strides = [1, 1]} : vector<32x128xf32> to vector<8x128xf32>
    %23 = arith.addf %21, %22 : vector<8x128xf32>
    %24 = vector.extract_strided_slice %18 {offsets = [24, 0], sizes = [8, 128], strides = [1, 1]} : vector<32x128xf32> to vector<8x128xf32>
    %25 = arith.addf %23, %24 : vector<8x128xf32>
    %26 = arith.addf %4, %25 : vector<8x128xf32>
    %c0_9 = arith.constant 0 : index
    %c0_10 = arith.constant 0 : index
    %c0_11 = arith.constant 0 : index
    %27 = vector.load %arg5[%c0_9, %c0_10, %c0_11] : memref<2x8x128xf32, #tpu.memory_space<vmem>>, vector<1x8x128xf32>
    %28 = vector.shape_cast %27 : vector<1x8x128xf32> to vector<8x128xf32>
    %29 = vector.shape_cast %26 : vector<8x128xf32> to vector<1x8x128xf32>
    tpu.vector_store %arg5[%c0_9, %c0_10, %c0_11], %29 {strides = array<i32>} : memref<2x8x128xf32, #tpu.memory_space<vmem>>, vector<1x8x128xf32>,
    %c1 = arith.constant 1 : index
    %c0_12 = arith.constant 0 : index
    %c0_13 = arith.constant 0 : index
    %30 = vector.load %arg5[%c1, %c0_12, %c0_13] : memref<2x8x128xf32, #tpu.memory_space<vmem>>, vector<1x8x128xf32>
    %31 = vector.shape_cast %30 : vector<1x8x128xf32> to vector<8x128xf32>
    %c0_14 = arith.constant 0 : index
    %c0_15 = arith.constant 0 : index
    %32 = vector.load %arg3[%c0_14, %c0_15] : memref<32x128xf32, #tpu.memory_space<vmem>>, vector<32x128xf32>
    %c0_16 = arith.constant 0 : index
    %c0_17 = arith.constant 0 : index
    %33 = vector.load %arg4[%c0_16, %c0_17] : memref<32x128xf32, #tpu.memory_space<vmem>>, vector<32x128xf32>
    %cst_18 = arith.constant 0.000000e+00 : f32
    %34 = vector.broadcast %cst_18 : f32 to vector<32x128xf32>
    %35 = arith.maximumf %32, %34 : vector<32x128xf32>
    %36 = arith.mulf %32, %33 : vector<32x128xf32>
    %37 = arith.subf %35, %36 : vector<32x128xf32>
    %38 = math.absf %32 : vector<32x128xf32>
    %cst_19 = arith.constant 0.000000e+00 : f32
    %39 = vector.broadcast %cst_19 : f32 to vector<32x128xf32>
    %40 = arith.subf %39, %38 : vector<32x128xf32>
    %41 = math.exp %40 : vector<32x128xf32>
    %cst_20 = arith.constant 1.000000e+00 : f32
    %42 = vector.broadcast %cst_20 : f32 to vector<32x128xf32>
    %43 = arith.addf %42, %41 : vector<32x128xf32>
    %44 = math.log %43 : vector<32x128xf32>
    %45 = arith.addf %37, %44 : vector<32x128xf32>
    %46 = vector.extract_strided_slice %45 {offsets = [0, 0], sizes = [8, 128], strides = [1, 1]} : vector<32x128xf32> to vector<8x128xf32>
    %47 = vector.extract_strided_slice %45 {offsets = [8, 0], sizes = [8, 128], strides = [1, 1]} : vector<32x128xf32> to vector<8x128xf32>
    %48 = arith.addf %46, %47 : vector<8x128xf32>
    %49 = vector.extract_strided_slice %45 {offsets = [16, 0], sizes = [8, 128], strides = [1, 1]} : vector<32x128xf32> to vector<8x128xf32>
    %50 = arith.addf %48, %49 : vector<8x128xf32>
    %51 = vector.extract_strided_slice %45 {offsets = [24, 0], sizes = [8, 128], strides = [1, 1]} : vector<32x128xf32> to vector<8x128xf32>
    %52 = arith.addf %50, %51 : vector<8x128xf32>
    %53 = arith.addf %31, %52 : vector<8x128xf32>
    %c1_21 = arith.constant 1 : index
    %c0_22 = arith.constant 0 : index
    %c0_23 = arith.constant 0 : index
    %54 = vector.load %arg5[%c1_21, %c0_22, %c0_23] : memref<2x8x128xf32, #tpu.memory_space<vmem>>, vector<1x8x128xf32>
    %55 = vector.shape_cast %54 : vector<1x8x128xf32> to vector<8x128xf32>
    %56 = vector.shape_cast %53 : vector<8x128xf32> to vector<1x8x128xf32>
    tpu.vector_store %arg5[%c1_21, %c0_22, %c0_23], %56 {strides = array<i32>} : memref<2x8x128xf32, #tpu.memory_space<vmem>>, vector<1x8x128xf32>,
    return
  }
  func.func @transform_0(%arg0: i32) -> (i32, i32) {
    %c0_i32 = arith.constant 0 : i32
    %c0_i32_0 = arith.constant 0 : i32
    return %arg0, %c0_i32 : i32, i32
  }
  func.func @transform_1(%arg0: i32) -> (i32, i32) {
    %c0_i32 = arith.constant 0 : i32
    %c0_i32_0 = arith.constant 0 : i32
    return %arg0, %c0_i32 : i32, i32
  }
  func.func @transform_2(%arg0: i32) -> (i32, i32) {
    %c0_i32 = arith.constant 0 : i32
    %c0_i32_0 = arith.constant 0 : i32
    return %arg0, %c0_i32 : i32, i32
  }
  func.func @transform_3(%arg0: i32) -> (i32, i32) {
    %c0_i32 = arith.constant 0 : i32
    %c0_i32_0 = arith.constant 0 : i32
    return %arg0, %c0_i32 : i32, i32
  }
  func.func @transform_4(%arg0: i32) -> (i32, i32, i32) {
    %c0_i32 = arith.constant 0 : i32
    %c0_i32_0 = arith.constant 0 : i32
    %c0_i32_1 = arith.constant 0 : i32
    %c0_i32_2 = arith.constant 0 : i32
    return %c0_i32, %c0_i32_0, %c0_i32_1 : i32, i32, i32
  }
}

</mosaic_0001>

<bundles_post_ra>
// kernel: squeeze.32
= control target key start
LH: loop header
LB: loop body
LE: loop exit
PB: predicated region body
PF: predicated region fallthrough
CT: control target
= control target key end

     0   :  { %vm4_vm0 = vcmask 1047556   ;;  %s169_s14 = smov 96   ;;  %s170_s15 = smov 112   ;;  %vm6_vm1 = vcmask 130048   ;;  %vm21_vm2 = vcmask 1048448   ;;  %vm38_vm3 = vcmask 917248   ;;  %s314_s0 = inlined_call_operand.vmem [shape: f32[2,3,16,16], index: 0, kind: input, shape index: {}]   ;;  %s315_s1 = inlined_call_operand.vmem [shape: f32[1536], index: 1, kind: output, shape index: {}]  }
   0x1   :  { %v138_v0 = vld [vmem:[%s314_s0 + $0x6] ss:$8 sm:$0xf]   ;;  %v134_v3 = vld [vmem:[%s314_s0 + $0x7] ss:$8 sm:$0xf]  }
   0x2   :  { %v139_v1 = vld [vmem:[%s314_s0 + $0x6] ss:$8 sm:$0xf0]   ;;  %v135_v4 = vld [vmem:[%s314_s0 + $0x7] ss:$8 sm:$0xf0]  }
   0x3   :  { %v35_v2 = vsel %vm4_vm0, %v139_v1, %v138_v0  ;;  %v18_v5 = vsel %vm4_vm0, %v135_v4, %v134_v3  ;;  %v140_v6 = vld [vmem:[%s314_s0 + $0x46] ss:$8 sm:$0xf]   ;;  %v136_v7 = vld [vmem:[%s314_s0 + $0x47] ss:$8 sm:$0xf]  }
   0x4   :  { %36 = vrot.lane.b32.xlu1 %v35_v2, %s169_s14  ;;  %19 = vrot.lane.b32.xlu0 %v18_v5, %s170_s15  ;;  %v142_v8 = vld [vmem:[%s314_s0 + $0x5] ss:$8 sm:$0xf]   ;;  %v146_v12 = vld [vmem:[%s314_s0 + $0x4] ss:$8 sm:$0xf]  }
   0x5   :  { %v143_v9 = vld [vmem:[%s314_s0 + $0x5] ss:$8 sm:$0xf0]   ;;  %v147_v13 = vld [vmem:[%s314_s0 + $0x4] ss:$8 sm:$0xf0]  }
   0x6   :  { %v144_v10 = vld [vmem:[%s314_s0 + $0x45] ss:$8 sm:$0xf]   ;;  %v52_v11 = vsel %vm4_vm0, %v143_v9, %v142_v8  ;;  %s171_s30 = smov 80   ;;  %v69_v16 = vsel %vm4_vm0, %v147_v13, %v146_v12  ;;  %s173_s25 = smov 48   ;;  %vm55_vm4 = vcmask 786048  }
   0x7   :  { %v148_v14 = vld [vmem:[%s314_s0 + $0x44] ss:$8 sm:$0xf]   ;;  %v150_v15 = vld [vmem:[%s314_s0 + $0x3] ss:$8 sm:$0xf]  }
   0x8   :  { %42 = vrot.lane.b32.xlu1 %v140_v6, %s169_s14  ;;  %25 = vrot.lane.b32.xlu0 %v136_v7, %s170_s15  ;;  %v2_v17 = vld [vmem:[%s314_s0] ss:$8 sm:$0xf]   ;;  %v151_v19 = vld [vmem:[%s314_s0 + $0x3] ss:$8 sm:$0xf0]  }
   0x9   :  { %v3_v18 = vld [vmem:[%s314_s0] ss:$8 sm:$0xf0]   ;;  %s172_s14 = smov 64   ;;  %v86_v23 = vsel %vm4_vm0, %v151_v19, %v150_v15  ;;  %s174_s3 = smov 32   ;;  %vm72_vm5 = vcmask 654848  }
   0xa   :  { %v5_v20 = vsel %vm4_vm0, %v3_v18, %v2_v17  ;;  %v132_v21 = vld [vmem:[%s314_s0 + $0x40] ss:$8 sm:$0xf]   ;;  %v152_v22 = vld [vmem:[%s314_s0 + $0x43] ss:$8 sm:$0xf]  }
   0xb   :  { %7 = vst.msk [vmem:[%s315_s1] sm:$0xff] %vm6_vm1, %v5_v20   ;;  %133 = vst.msk [vmem:[%s315_s1 + $0x8] sm:$0xf] %vm6_vm1, %v132_v21   ;;  %v154_v24 = vld [vmem:[%s314_s0 + $0x2] ss:$8 sm:$0xf]  }
   0xc   :  { %59 = vrot.lane.b32.xlu1 %v144_v10, %s171_s30  ;;  %53 = vrot.lane.b32.xlu0 %v52_v11, %s171_s30  ;;  %v155_v25 = vld [vmem:[%s314_s0 + $0x2] ss:$8 sm:$0xf0]   ;;  %v158_v28 = vld [vmem:[%s314_s0 + $0x1] ss:$8 sm:$0xf]  }
   0xd   :  { %v156_v26 = vld [vmem:[%s314_s0 + $0x42] ss:$8 sm:$0xf]   ;;  %v103_v27 = vsel %vm4_vm0, %v155_v25, %v154_v24  ;;  %v159_v29 = vld [vmem:[%s314_s0 + $0x1] ss:$8 sm:$0xf0]  }
   0xe   :  { %v160_v30 = vld [vmem:[%s314_s0 + $0x41] ss:$8 sm:$0xf]   ;;  %v120_v31 = vsel %vm4_vm0, %v159_v29, %v158_v28  ;;  %s175_s0 = smov 16   ;;  %vm89_vm6 = vcmask 523648   ;;  %vm106_vm7 = vcmask 392448  }
   0xf   :  { %vm123_vm8 = vcmask 261248  }
  0x10   :  { %76 = vrot.lane.b32.xlu1 %v148_v14, %s172_s14  ;;  %70 = vrot.lane.b32.xlu0 %v69_v16, %s172_s14 }
  0x14   :  { %93 = vrot.lane.b32.xlu1 %v152_v22, %s173_s25  ;;  %87 = vrot.lane.b32.xlu0 %v86_v23, %s173_s25 }
  0x18   :  { %110 = vrot.lane.b32.xlu1 %v156_v26, %s174_s3  ;;  %104 = vrot.lane.b32.xlu0 %v103_v27, %s174_s3 }
  0x1c   :  { %127 = vrot.lane.b32.xlu1 %v160_v30, %s175_s0  ;;  %121 = vrot.lane.b32.xlu0 %v120_v31, %s175_s0 }
  0x76   :  { %v37_v32 = vpop.permute.xlu1 %36   ;;  %v20_v33 = vpop.permute.xlu0 %19  }
  0x77   :  { %22 = vst.msk [vmem:[%s315_s1] sm:$0xff] %vm21_vm2, %v20_v33  }
  0x78   :  { %39 = vst.msk [vmem:[%s315_s1] sm:$0xff] %vm38_vm3, %v37_v32  }
  0x7a   :  { %v43_v34 = vpop.permute.xlu1 %42   ;;  %v26_v35 = vpop.permute.xlu0 %25  }
  0x7b   :  { %137 = vst.msk [vmem:[%s315_s1 + $0x8] sm:$0xf] %vm21_vm2, %v26_v35  }
  0x7c   :  { %141 = vst.msk [vmem:[%s315_s1 + $0x8] sm:$0xf] %vm38_vm3, %v43_v34  }
  0x7e   :  { %v60_v36 = vpop.permute.xlu1 %59   ;;  %v54_v37 = vpop.permute.xlu0 %53  }
  0x7f   :  { %145 = vst.msk [vmem:[%s315_s1 + $0x8] sm:$0xf] %vm55_vm4, %v60_v36   ;;  %56 = vst.msk [vmem:[%s315_s1] sm:$0xff] %vm55_vm4, %v54_v37  }
  0x82   :  { %v77_v38 = vpop.permute.xlu1 %76   ;;  %v71_v39 = vpop.permute.xlu0 %70  }
  0x83   :  { %149 = vst.msk [vmem:[%s315_s1 + $0x8] sm:$0xf] %vm72_vm5, %v77_v38   ;;  %73 = vst.msk [vmem:[%s315_s1] sm:$0xff] %vm72_vm5, %v71_v39  }
  0x86   :  { %v94_v40 = vpop.permute.xlu1 %93   ;;  %v88_v41 = vpop.permute.xlu0 %87  }
  0x87   :  { %153 = vst.msk [vmem:[%s315_s1 + $0x8] sm:$0xf] %vm89_vm6, %v94_v40   ;;  %90 = vst.msk [vmem:[%s315_s1] sm:$0xff] %vm89_vm6, %v88_v41  }
  0x8a   :  { %v111_v42 = vpop.permute.xlu1 %110   ;;  %v105_v43 = vpop.permute.xlu0 %104  }
  0x8b   :  { %157 = vst.msk [vmem:[%s315_s1 + $0x8] sm:$0xf] %vm106_vm7, %v111_v42   ;;  %107 = vst.msk [vmem:[%s315_s1] sm:$0xff] %vm106_vm7, %v105_v43  }
  0x8e   :  { %v128_v44 = vpop.permute.xlu1 %127   ;;  %v122_v45 = vpop.permute.xlu0 %121  }
  0x8f   :  { %161 = vst.msk [vmem:[%s315_s1 + $0x8] sm:$0xf] %vm123_vm8, %v128_v44   ;;  %124 = vst.msk [vmem:[%s315_s1] sm:$0xff] %vm123_vm8, %v122_v45  }

// kernel: yolop_loss_forward.4
= control target key start
LH: loop header
LB: loop body
LE: loop exit
PB: predicated region body
PF: predicated region fallthrough
CT: control target
= control target key end

     0   :  { %v1362_v34 = vmov 0.0   ;;  %s1359_s0 = inlined_call_operand.vmem [shape: f32[13,16,128], index: 0, kind: input, shape index: {}]   ;;  %s1360_s1 = inlined_call_operand.vmem [shape: f32[9,16,128], index: 1, kind: input, shape index: {}]   ;;  %s1361_s2 = inlined_call_operand.vmem [shape: f32[4,8,128], index: 2, kind: output, shape index: {}]  }
   0x1   :  { %v19_v0 = vld [vmem:[%s1359_s0] sm:$0xff]  ;;  %v20_v1 = vld [vmem:[%s1359_s0 + $0x8] sm:$0xff]  ;;  %v633_v2 = vld [vmem:[%s1359_s0 + $0x10] sm:$0xff] }
   0x2   :  { %v629_v3 = vmul.f32 -1.442695, %v19_v0  ;;  %v630_v4 = vmul.f32 -1.442695, %v20_v1  ;;  %v634_v5 = vld [vmem:[%s1359_s0 + $0x18] sm:$0xff]  ;;  %v639_v6 = vld [vmem:[%s1359_s0 + $0x20] sm:$0xff] }
   0x3   :  { %v635_v7 = vmul.f32 -1.442695, %v633_v2  ;;  %v636_v8 = vmul.f32 -1.442695, %v634_v5  ;;  %v640_v9 = vld [vmem:[%s1359_s0 + $0x28] sm:$0xff]  ;;  %v645_v11 = vld [vmem:[%s1359_s0 + $0x30] sm:$0xff] }
   0x4   :  { %706 = vpow2.f32 %v629_v3  ;;  %v641_v10 = vmul.f32 -1.442695, %v639_v6  ;;  %v642_v12 = vmul.f32 -1.442695, %v640_v9  ;;  %v646_v13 = vld [vmem:[%s1359_s0 + $0x38] sm:$0xff]  ;;  %v873_v19 = vld [vmem:[%s1360_s1 + $0x80] sm:$0xff] }
   0x5   :  { %708 = vpow2.f32 %v630_v4  ;;  %v647_v14 = vmul.f32 -1.442695, %v645_v11  ;;  %v648_v15 = vmul.f32 -1.442695, %v646_v13  ;;  %v878_v22 = vld [vmem:[%s1360_s1 + $0x88] sm:$0xff]  ;;  %vm334_vm0 = vcmp.eq.f32.partialorder %v873_v19, 0.0 }
   0x6   :  { %710 = vpow2.f32 %v635_v7  ;;  %vm335_vm1 = vcmp.eq.f32.partialorder %v878_v22, 0.0  ;;  %v885_v33 = vld [vmem:[%s1360_s1 + $0x20] sm:$0xff]  ;;  %v667_v35 = vsel %vm334_vm0, 1.0, %v1362_v34  ;;  %v891_v37 = vld [vmem:[%s1360_s1 + $0x28] sm:$0xff]  ;;  %v897_v39 = vld [vmem:[%s1359_s0 + $0x50] sm:$0xff]  ;;  %vm367_vm2 = vcmp.eq.f32.partialorder %v873_v19, 1.0 }
   0x7   :  { %712 = vpow2.f32 %v636_v8  ;;  %v668_v38 = vsel %vm335_vm1, 1.0, %v1362_v34  ;;  %v902_v40 = vld [vmem:[%s1359_s0 + $0x58] sm:$0xff]  ;;  %v907_v41 = vld [vmem:[%s1360_s1 + $0x30] sm:$0xff]  ;;  %v343_v43 = vmax.f32 %v897_v39, 0.0  ;;  %v345_v45 = vmul.f32 %v897_v39, %v667_v35  ;;  %v104_v48 = vld [vmem:[%s1360_s1] sm:$0xff] }
   0x8   :  { %714 = vpow2.f32 %v641_v10  ;;  %v912_v42 = vld [vmem:[%s1360_s1 + $0x38] sm:$0xff]  ;;  %v344_v44 = vmax.f32 %v902_v40, 0.0  ;;  %v136_v46 = vmul.f32 0.5, %v885_v33  ;;  %v346_v47 = vmul.f32 %v902_v40, %v668_v38  ;;  %v105_v49 = vld [vmem:[%s1360_s1 + $0x8] sm:$0xff]  ;;  %v929_v51 = vld [vmem:[%s1359_s0 + $0x40] sm:$0xff] }
   0x9   :  { %716 = vpow2.f32 %v642_v12  ;;  %v137_v50 = vmul.f32 0.5, %v891_v37  ;;  %1368 = vst [vmem:[#allocation2_spill] sm:$0xff] %v929_v51  ;;  %v931_v52 = vsub.f32 %v343_v43, %v345_v45  ;;  %vm368_vm3 = vcmp.eq.f32.partialorder %v878_v22, 1.0  ;;  %v940_v55 = vld [vmem:[%s1359_s0 + $0x48] sm:$0xff]  ;;  %v947_v57 = vld [vmem:[%s1359_s0 + $0x60] sm:$0xff]  ;;  %v651_v1 = vld [vmem:[%s1360_s1 + $0x10] sm:$0xff] }
   0xa   :  { %718 = vpow2.f32 %v647_v14  ;;  %v142_v53 = vmul.f32 0.5, %v907_v41  ;;  %v143_v54 = vmul.f32 0.5, %v912_v42  ;;  %1369 = vst [vmem:[#allocation3_spill] sm:$0xff] %v940_v55  ;;  %v942_v56 = vsub.f32 %v344_v44, %v346_v47  ;;  %v952_v58 = vld [vmem:[%s1359_s0 + $0x68] sm:$0xff]  ;;  %v652_v2 = vld [vmem:[%s1360_s1 + $0x18] sm:$0xff] }
   0xb   :  { %720 = vpow2.f32 %v648_v15  ;;  %v671_v60 = vsel %vm367_vm2, 1.0, %v1362_v34  ;;  %v672_v61 = vsel %vm368_vm3, 1.0, %v1362_v34  ;;  %v376_v62 = vmax.f32 %v947_v57, 0.0 }
   0xc   :  { %v377_v63 = vmax.f32 %v952_v58, 0.0  ;;  %v316_v3 = vand.u32 2147483647, %v929_v51  ;;  %v378_v4 = vmul.f32 %v947_v57, %v671_v60  ;;  %v966_v6 = vsub.f32 %v104_v48, %v136_v46 }
   0xd   :  { %v968_v7 = vsub.f32 %v105_v49, %v137_v50  ;;  %v317_v8 = vand.u32 2147483647, %v940_v55  ;;  %v379_v9 = vmul.f32 %v952_v58, %v672_v61  ;;  %v972_v11 = vadd.f32 %v136_v46, %v104_v48  ;;  %v649_v48 = vld [vmem:[%s1360_s1 + $0x50] sm:$0xff] }
   0xe   :  { %v707_v16 = vpop.eup %706  ;;  %v974_v12 = vadd.f32 %v137_v50, %v105_v49  ;;  %v349_v13 = vand.u32 2147483647, %v897_v39  ;;  %v977_v14 = vsub.f32 %v376_v62, %v378_v4  ;;  %v644_v39 = vld [vmem:[%s1360_s1 + $0x48] sm:$0xff]  ;;  %v382_v49 = vand.u32 2147483647, %v947_v57 }
   0xf   :  { %v709_v17 = vpop.eup %708  ;;  %v27_v18 = vadd.f32 1.0, %v707_v16  ;;  %v979_v16 = vsub.f32 %v651_v1, %v142_v53  ;;  %vm400_vm4 = vcmp.eq.f32.partialorder %v873_v19, 2.0  ;;  %vm401_vm5 = vcmp.eq.f32.partialorder %v878_v22, 2.0 }
  0x10   :  { %v711_v20 = vpop.eup %710  ;;  %v28_v21 = vadd.f32 1.0, %v709_v17  ;;  %v981_v17 = vsub.f32 %v652_v2, %v143_v54  ;;  %v351_v44 = vsub.f32 0.0, %v349_v13  ;;  %vm433_vm6 = vcmp.eq.f32.partialorder %v873_v19, 3.0 }
  0x11   :  { %v713_v23 = vpop.eup %712  ;;  %722 = vrcp.f32 %v27_v18  ;;  %v46_v24 = vadd.f32 1.0, %v711_v20  ;;  %v983_v18 = vadd.f32 %v651_v1, %v142_v53  ;;  %v985_v20 = vsub.f32 %v377_v63, %v379_v9 }
  0x12   :  { %v715_v25 = vpop.eup %714  ;;  %724 = vrcp.f32 %v28_v21  ;;  %v47_v26 = vadd.f32 1.0, %v713_v23  ;;  %vm434_vm7 = vcmp.eq.f32.partialorder %v878_v22, 3.0  ;;  %vm466_vm8 = vcmp.eq.f32.partialorder %v873_v19, 4.0 }
  0x13   :  { %v717_v27 = vpop.eup %716  ;;  %726 = vrcp.f32 %v46_v24  ;;  %v65_v28 = vadd.f32 1.0, %v715_v25  ;;  %v987_v25 = vadd.f32 %v652_v2, %v143_v54  ;;  %v650_v54 = vld [vmem:[%s1360_s1 + $0x58] sm:$0xff]  ;;  %v353_v2 = vmul.f32 1.442695, %v351_v44 }
  0x14   :  { %v719_v29 = vpop.eup %718  ;;  %728 = vrcp.f32 %v47_v26  ;;  %v66_v30 = vadd.f32 1.0, %v717_v27  ;;  %v318_v26 = vsub.f32 0.0, %v316_v3  ;;  %vm467_vm9 = vcmp.eq.f32.partialorder %v878_v22, 4.0 }
  0x15   :  { %v721_v31 = vpop.eup %720  ;;  %730 = vrcp.f32 %v65_v28  ;;  %v89_v32 = vadd.f32 1.0, %v719_v29  ;;  %vm499_vm12 = vcmp.eq.f32.partialorder %v873_v19, 5.0  ;;  %vm500_vm13 = vcmp.eq.f32.partialorder %v878_v22, 5.0 }
  0x16   :  { %732 = vrcp.f32 %v66_v30  ;;  %v90_v36 = vadd.f32 1.0, %v721_v31  ;;  %v643_v30 = vld [vmem:[%s1360_s1 + $0x40] sm:$0xff]  ;;  %v319_v31 = vsub.f32 0.0, %v317_v8  ;;  %v384_v8 = vsub.f32 0.0, %v382_v49 }
  0x17   :  { %734 = vrcp.f32 %v89_v32  ;;  %v350_v32 = vand.u32 2147483647, %v902_v40  ;;  %vm532_vm14 = vcmp.eq.f32.partialorder %v873_v19, 6.0  ;;  %vm533_vm15 = vcmp.eq.f32.partialorder %v878_v22, 6.0 }
  0x18   :  { %736 = vrcp.f32 %v90_v36  ;;  %vm565_vm0 = vcmp.eq.f32.partialorder %v873_v19, 7.0  ;;  %vm566_vm1 = vcmp.eq.f32.partialorder %v878_v22, 7.0 }
  0x19   :  { %v352_v63 = vsub.f32 0.0, %v350_v32  ;;  %738 = vpow2.f32 %v353_v2 }
  0x1b   :  { %v723_v59 = vpop.eup %722 }
  0x1c   :  { %v725_v0 = vpop.eup %724  ;;  %v33_v23 = vmul.f32 2.0, %v723_v59  ;;  %v383_v59 = vand.u32 2147483647, %v952_v58 }
  0x1d   :  { %v727_v5 = vpop.eup %726  ;;  %v34_v28 = vmul.f32 2.0, %v725_v0 }
  0x1e   :  { %v729_v10 = vpop.eup %728  ;;  %v52_v36 = vmul.f32 2.0, %v727_v5  ;;  %v631_v50 = vadd.f32 -0.5, %v33_v23  ;;  %v385_v13 = vsub.f32 0.0, %v383_v59  ;;  %v168_v59 = vmul.f32 %v907_v41, %v885_v33 }
  0x1f   :  { %v731_v15 = vpop.eup %730  ;;  %v53_v45 = vmul.f32 2.0, %v729_v10  ;;  %v632_v60 = vadd.f32 -0.5, %v34_v28  ;;  %v1064_v33 = vadd.f32 %v983_v18, %v979_v16  ;;  %v1068_v41 = vadd.f32 %v987_v25, %v981_v17 }
  0x20   :  { %v733_v21 = vpop.eup %732  ;;  %v71_v24 = vmul.f32 2.0, %v731_v15  ;;  %v637_v0 = vadd.f32 -0.5, %v52_v36  ;;  %v386_v36 = vmul.f32 1.442695, %v384_v8  ;;  %v388_v44 = vmul.f32 1.442695, %v385_v13 }
  0x21   :  { %v735_v27 = vpop.eup %734  ;;  %v72_v29 = vmul.f32 2.0, %v733_v21  ;;  %v638_v3 = vadd.f32 -0.5, %v53_v45 }
  0x22   :  { %v737_v35 = vpop.eup %736  ;;  %v73_v38 = vmul.f32 %v71_v24, %v71_v24  ;;  %v95_v43 = vmul.f32 2.0, %v735_v27  ;;  %v355_v24 = vmul.f32 1.442695, %v352_v63 }
  0x23   :  { %v74_v46 = vmul.f32 %v72_v29, %v72_v29  ;;  %v96_v47 = vmul.f32 2.0, %v737_v35 }
  0x24   :  { %v1000_v40 = vmul.f32 %v643_v30, %v73_v38  ;;  %v97_v53 = vmul.f32 %v95_v43, %v95_v43  ;;  %740 = vpow2.f32 %v355_v24 }
  0x25   :  { %v1006_v61 = vmul.f32 %v644_v39, %v74_v46  ;;  %v98_v62 = vmul.f32 %v96_v47, %v96_v47  ;;  %742 = vpow2.f32 %v386_v36  ;;  %v676_v36 = vsel %vm401_vm5, 1.0, %v1362_v34 }
  0x26   :  { %v1008_v1 = vmul.f32 %v649_v48, %v97_v53  ;;  %v124_v57 = vmul.f32 0.5, %v1000_v40  ;;  %v322_v53 = vmul.f32 1.442695, %v319_v31  ;;  %744 = vpow2.f32 %v388_v44 }
  0x27   :  { %v1011_v4 = vmul.f32 %v650_v54, %v98_v62  ;;  %v125_v5 = vmul.f32 0.5, %v1006_v61  ;;  %v1060_v31 = vadd.f32 %v974_v12, %v968_v7 }
  0x28   :  { %v1014_v9 = vsub.f32 %v631_v50, %v124_v57  ;;  %v1016_v58 = vadd.f32 %v631_v50, %v124_v57  ;;  %v130_v10 = vmul.f32 0.5, %v1008_v1  ;;  %v320_v50 = vmul.f32 1.442695, %v318_v26 }
  0x29   :  { %v1019_v15 = vsub.f32 %v632_v60, %v125_v5  ;;  %v1021_v21 = vadd.f32 %v632_v60, %v125_v5  ;;  %v131_v23 = vmul.f32 0.5, %v1011_v4  ;;  %v166_v54 = vmul.f32 %v1008_v1, %v1000_v40 }
  0x2a   :  { %v1024_v27 = vsub.f32 %v637_v0, %v130_v10  ;;  %v1026_v28 = vadd.f32 %v637_v0, %v130_v10  ;;  %v148_v29 = vmin.f32 %v1016_v58, %v972_v11  ;;  %v150_v30 = vmax.f32 %v1014_v9, %v966_v6 }
  0x2b   :  { %v1032_v32 = vsub.f32 %v638_v3, %v131_v23  ;;  %v1034_v35 = vadd.f32 %v638_v3, %v131_v23  ;;  %v149_v38 = vmin.f32 %v1021_v21, %v974_v12  ;;  %v151_v45 = vmax.f32 %v1019_v15, %v968_v7  ;;  %v739_v3 = vpop.eup %738 }
  0x2c   :  { %v156_v39 = vmin.f32 %v1026_v28, %v983_v18  ;;  %v158_v43 = vmax.f32 %v1024_v27, %v979_v16  ;;  %v152_v46 = vsub.f32 %v148_v29, %v150_v30  ;;  %v169_v57 = vmul.f32 %v912_v42, %v891_v37  ;;  %v677_v29 = vld [vmem:[%s1359_s0 + $0x70] sm:$0xff] }
  0x2d   :  { %v157_v47 = vmin.f32 %v1034_v35, %v987_v25  ;;  %v159_v48 = vmax.f32 %v1032_v32, %v981_v17  ;;  %v153_v60 = vsub.f32 %v149_v38, %v151_v45  ;;  %v1056_v26 = vadd.f32 %v972_v11, %v966_v6 }
  0x2e   :  { %v160_v49 = vsub.f32 %v156_v39, %v158_v43  ;;  %v154_v62 = vmax.f32 %v152_v46, 0.0  ;;  %746 = vpow2.f32 %v320_v50  ;;  %v167_v37 = vmul.f32 %v1011_v4, %v1006_v61  ;;  %v741_v38 = vpop.eup %740 }
  0x2f   :  { %v161_v63 = vsub.f32 %v157_v47, %v159_v48  ;;  %748 = vpow2.f32 %v322_v53  ;;  %v180_v42 = vmax.f32 %v1016_v58, %v972_v11  ;;  %v182_v2 = vmin.f32 %v1014_v9, %v966_v6  ;;  %v743_v44 = vpop.eup %742 }
  0x30   :  { %v162_v0 = vmax.f32 %v160_v49, 0.0  ;;  %v155_v5 = vmax.f32 %v153_v60, 0.0  ;;  %v170_v13 = vadd.f32 %v168_v59, %v166_v54  ;;  %v181_v23 = vmax.f32 %v1021_v21, %v974_v12  ;;  %v745_v49 = vpop.eup %744 }
  0x31   :  { %v163_v8 = vmax.f32 %v161_v63, 0.0  ;;  %v183_v24 = vmin.f32 %v1019_v15, %v968_v7  ;;  %v186_v11 = vmax.f32 %v1026_v28, %v983_v18  ;;  %v188_v6 = vmin.f32 %v1024_v27, %v979_v16 }
  0x32   :  { %v1078_v10 = vmul.f32 %v162_v0, %v154_v62  ;;  %v187_v30 = vmax.f32 %v1034_v35, %v987_v25  ;;  %v675_v12 = vsel %vm400_vm4, 1.0, %v1362_v34  ;;  %v409_v7 = vmax.f32 %v677_v29, 0.0  ;;  %v678_v25 = vld [vmem:[%s1359_s0 + $0x78] sm:$0xff] }
  0x33   :  { %v184_v39 = vsub.f32 %v180_v42, %v182_v2  ;;  %v189_v18 = vmin.f32 %v1032_v32, %v981_v17  ;;  %v220_v16 = vadd.f32 1e-07, %v1008_v1  ;;  %v221_v43 = vadd.f32 1e-07, %v1011_v4 }
  0x34   :  { %v1104_v45 = vmul.f32 %v163_v8, %v155_v5  ;;  %v171_v46 = vadd.f32 %v169_v57, %v167_v37  ;;  %v172_v47 = vsub.f32 %v170_v13, %v1078_v10  ;;  %v410_v48 = vmax.f32 %v678_v25, 0.0 }
  0x35   :  { %v185_v50 = vsub.f32 %v181_v23, %v183_v24  ;;  %v190_v53 = vsub.f32 %v186_v11, %v188_v6  ;;  %750 = vrcp.f32 %v220_v16  ;;  %v357_v17 = vadd.f32 1.0, %v739_v3 }
  0x36   :  { %752 = vrcp.f32 %v221_v43  ;;  %v358_v54 = vadd.f32 1.0, %v741_v38  ;;  %v191_v60 = vsub.f32 %v187_v30, %v189_v18  ;;  %v1113_v62 = vmul.f32 %v184_v39, %v184_v39  ;;  %v681_v30 = vld [vmem:[%s1359_s0 + $0x80] sm:$0xff] }
  0x37   :  { %v390_v63 = vadd.f32 1.0, %v743_v44  ;;  %v411_v0 = vmul.f32 %v677_v29, %v675_v12  ;;  %v173_v37 = vsub.f32 %v171_v46, %v1104_v45  ;;  %v174_v42 = vadd.f32 1e-07, %v172_v47 }
  0x38   :  { %v1111_v59 = vpop.eup %746  ;;  %v391_v2 = vadd.f32 1.0, %v745_v49  ;;  %v412_v3 = vmul.f32 %v678_v25, %v676_v36  ;;  %754 = vlog2.f32 %v357_v17  ;;  %v415_v8 = vand.u32 2147483647, %v677_v29  ;;  %v682_v29 = vld [vmem:[%s1359_s0 + $0x88] sm:$0xff] }
  0x39   :  { %1370 = vst [vmem:[#allocation4_spill] sm:$0xff] %v1111_v59  ;;  %v1115_v57 = vpop.eup %748  ;;  %v1118_v5 = vsub.f32 %v409_v7, %v411_v0  ;;  %v416_v13 = vand.u32 2147483647, %v678_v25  ;;  %756 = vlog2.f32 %v358_v54  ;;  %v679_v6 = vsel %vm433_vm6, 1.0, %v1362_v34 }
  0x3a   :  { %1371 = vst [vmem:[#allocation5_spill] sm:$0xff] %v1115_v57  ;;  %v1120_v23 = vsub.f32 %v410_v48, %v412_v3  ;;  %758 = vlog2.f32 %v390_v63  ;;  %v417_v24 = vsub.f32 0.0, %v415_v8  ;;  %v680_v12 = vsel %vm434_vm7, 1.0, %v1362_v34 }
  0x3b   :  { %v418_v11 = vsub.f32 0.0, %v416_v13  ;;  %760 = vlog2.f32 %v391_v2  ;;  %v442_v36 = vmax.f32 %v681_v30, 0.0  ;;  %v443_v7 = vmax.f32 %v682_v29, 0.0 }
  0x3c   :  { %v419_v38 = vmul.f32 1.442695, %v417_v24  ;;  %v444_v18 = vmul.f32 %v681_v30, %v679_v6  ;;  %v445_v16 = vmul.f32 %v682_v29, %v680_v12  ;;  %v175_v43 = vadd.f32 1e-07, %v173_v37 }
  0x3d   :  { %v421_v39 = vmul.f32 1.442695, %v418_v11  ;;  %v1132_v25 = vmul.f32 %v185_v50, %v185_v50  ;;  %v448_v44 = vand.u32 2147483647, %v681_v30  ;;  %v449_v46 = vand.u32 2147483647, %v682_v29 }
  0x3e   :  { %762 = vpow2.f32 %v419_v38  ;;  %v1134_v48 = vsub.f32 %v442_v36, %v444_v18  ;;  %v1136_v49 = vsub.f32 %v443_v7, %v445_v16  ;;  %v1142_v37 = vmul.f32 %v190_v53, %v190_v53 }
  0x3f   :  { %v751_v47 = vpop.eup %750  ;;  %764 = vpow2.f32 %v421_v39  ;;  %v450_v63 = vsub.f32 0.0, %v448_v44  ;;  %v451_v0 = vsub.f32 0.0, %v449_v46  ;;  %v1144_v50 = vmul.f32 %v191_v60, %v191_v60 }
  0x40   :  { %v753_v17 = vpop.eup %752  ;;  %v1140_v54 = vmul.f32 %v751_v47, %v1000_v40  ;;  %766 = vrcp.f32 %v174_v42  ;;  %v683_v13 = vsel %vm466_vm8, 1.0, %v1362_v34  ;;  %v685_v40 = vld [vmem:[%s1359_s0 + $0x90] sm:$0xff]  ;;  %v684_v30 = vsel %vm467_vm9, 1.0, %v1362_v34 }
  0x41   :  { %v1147_v2 = vmul.f32 %v753_v17, %v1006_v61  ;;  %v452_v8 = vmul.f32 1.442695, %v450_v63  ;;  %768 = vrcp.f32 %v175_v43  ;;  %v454_v60 = vmul.f32 1.442695, %v451_v0  ;;  %v686_v61 = vld [vmem:[%s1359_s0 + $0x98] sm:$0xff] }
  0x42   :  { %v228_v3 = vmax.f32 %v1140_v54, 1e-12  ;;  %v755_v24 = vpop.eup %754  ;;  %v475_v11 = vmax.f32 %v685_v40, 0.0  ;;  %vm226_vm10 = vcmp.gt.f32.partialorder %v1140_v54, 1.0  ;;  %v476_v29 = vmax.f32 %v686_v61, 0.0 }
  0x43   :  { %v229_v53 = vmax.f32 %v1147_v2, 1e-12  ;;  %v757_v42 = vpop.eup %756  ;;  %v360_v6 = vmul.f32 0.6931472, %v755_v24  ;;  %vm227_vm11 = vcmp.gt.f32.partialorder %v1147_v2, 1.0  ;;  %v477_v7 = vmul.f32 %v685_v40, %v683_v13 }
  0x44   :  { %770 = vrcp.f32 %v228_v3  ;;  %v759_v12 = vpop.eup %758  ;;  %v362_v36 = vmul.f32 0.6931472, %v757_v42  ;;  %v478_v38 = vmul.f32 %v686_v61, %v684_v30  ;;  %v481_v43 = vand.u32 2147483647, %v685_v40 }
  0x45   :  { %772 = vrcp.f32 %v229_v53  ;;  %v761_v39 = vpop.eup %760  ;;  %v1165_v18 = vadd.f32 %v360_v6, %v931_v52  ;;  %v393_v16 = vmul.f32 0.6931472, %v759_v12  ;;  %v1170_v47 = vsub.f32 %v475_v11, %v477_v7  ;;  %v689_v52 = vld [vmem:[%s1359_s0 + $0xa0] sm:$0xff] }
  0x46   :  { %774 = vpow2.f32 %v452_v8  ;;  %v1168_v44 = vadd.f32 %v362_v36, %v942_v56  ;;  %v395_v46 = vmul.f32 0.6931472, %v761_v39  ;;  %v1175_v63 = vsub.f32 %v476_v29, %v478_v38 }
  0x47   :  { %776 = vpow2.f32 %v454_v60  ;;  %v1173_v17 = vadd.f32 %v393_v16, %v977_v14  ;;  %v482_v0 = vand.u32 2147483647, %v686_v61  ;;  %v483_v3 = vsub.f32 0.0, %v481_v43  ;;  %v690_v61 = vld [vmem:[%s1359_s0 + $0xa8] sm:$0xff] }
  0x48   :  { %v763_v8 = vpop.eup %762  ;;  %v1181_v13 = vadd.f32 %v395_v46, %v985_v20  ;;  %v508_v56 = vmax.f32 %v689_v52, 0.0  ;;  %v687_v60 = vsel %vm499_vm12, 1.0, %v1362_v34  ;;  %v688_v42 = vsel %vm500_vm13, 1.0, %v1362_v34 }
  0x49   :  { %v765_v40 = vpop.eup %764  ;;  %v423_v14 = vadd.f32 1.0, %v763_v8  ;;  %v484_v24 = vsub.f32 0.0, %v482_v0  ;;  %v485_v53 = vmul.f32 1.442695, %v483_v3  ;;  %v509_v20 = vmax.f32 %v690_v61, 0.0 }
  0x4a   :  { %v424_v11 = vadd.f32 1.0, %v765_v40  ;;  %v510_v6 = vmul.f32 %v689_v52, %v687_v60  ;;  %v1190_v30 = vpop.eup %766  ;;  %v511_v12 = vmul.f32 %v690_v61, %v688_v42  ;;  %v514_v36 = vand.u32 2147483647, %v689_v52  ;;  %v693_v60 = vld [vmem:[%s1359_s0 + $0xb0] sm:$0xff] }
  0x4b   :  { %778 = vlog2.f32 %v423_v14  ;;  %v487_v29 = vmul.f32 1.442695, %v484_v24  ;;  %v1192_v7 = vpop.eup %768  ;;  %v515_v39 = vand.u32 2147483647, %v690_v61  ;;  %v691_v8 = vsel %vm532_vm14, 1.0, %v1362_v34 }
  0x4c   :  { %780 = vlog2.f32 %v424_v11  ;;  %v1194_v38 = vsub.f32 %v508_v56, %v510_v6  ;;  %v1197_v43 = vsub.f32 %v509_v20, %v511_v12  ;;  %v516_v46 = vsub.f32 0.0, %v514_v36  ;;  %v694_v6 = vld [vmem:[%s1359_s0 + $0xb8] sm:$0xff] }
  0x4d   :  { %782 = vpow2.f32 %v485_v53  ;;  %v517_v52 = vsub.f32 0.0, %v515_v39  ;;  %v692_v53 = vsel %vm533_vm15, 1.0, %v1362_v34  ;;  %v542_v39 = vmax.f32 %v694_v6, 0.0 }
  0x4e   :  { %v771_v16 = vpop.eup %770  ;;  %784 = vpow2.f32 %v487_v29  ;;  %v518_v24 = vmul.f32 1.442695, %v516_v46  ;;  %v541_v29 = vmax.f32 %v693_v60, 0.0  ;;  %v543_v46 = vmul.f32 %v693_v60, %v691_v8 }
  0x4f   :  { %v773_v0 = vpop.eup %772  ;;  %v1203_v3 = vsel %vm226_vm10, %v771_v16, %v1140_v54  ;;  %v520_v20 = vmul.f32 1.442695, %v517_v52  ;;  %v547_v1 = vand.u32 2147483647, %v693_v60  ;;  %v1373_v60 = vmov 0.0  }
  0x50   :  { %v775_v56 = vpop.eup %774  ;;  %v1209_v40 = vsel %vm227_vm11, %v773_v0, %v1147_v2  ;;  %v1213_v14 = vmul.f32 %v1203_v3, %v1203_v3  ;;  %786 = vpow2.f32 %v518_v24  ;;  %v544_v0 = vmul.f32 %v694_v6, %v692_v53 }
  0x51   :  { %v777_v61 = vpop.eup %776  ;;  %v1221_v11 = vmul.f32 %v1209_v40, %v1209_v40  ;;  %v456_v42 = vadd.f32 1.0, %v775_v56  ;;  %v548_v56 = vand.u32 2147483647, %v694_v6  ;;  %v1228_v34 = vsub.f32 %v541_v29, %v543_v46 }
  0x52   :  { %v238_v12 = vmul.f32 0.0208351, %v1213_v14  ;;  %v457_v36 = vadd.f32 1.0, %v777_v61  ;;  %v1230_v55 = vsub.f32 %v542_v39, %v544_v0  ;;  %v549_v24 = vsub.f32 0.0, %v547_v1 }
  0x53   :  { %v239_v16 = vmul.f32 0.0208351, %v1221_v11  ;;  %788 = vlog2.f32 %v456_v42  ;;  %v550_v57 = vsub.f32 0.0, %v548_v56  ;;  %v695_v6 = vsel %vm565_vm0, 1.0, %v1373_v60 }
  0x54   :  { %v240_v4 = vadd.f32 -0.085133, %v238_v12  ;;  %790 = vlog2.f32 %v457_v36  ;;  %1372 = vst [vmem:[#allocation6_spill] sm:$0xff] %v1230_v55  ;;  %v1306_v54 = vmul.f32 %v1190_v30, %v1078_v10 }
  0x55   :  { %v241_v52 = vadd.f32 -0.085133, %v239_v16  ;;  %792 = vpow2.f32 %v520_v20  ;;  %v779_v51 = vpop.eup %778  ;;  %v697_v20 = vld [vmem:[%s1359_s0 + $0xc0] sm:$0xff]  ;;  %v553_v0 = vmul.f32 1.442695, %v550_v57 }
  0x56   :  { %v242_v61 = vmul.f32 %v240_v4, %v1213_v14  ;;  %v781_v42 = vpop.eup %780  ;;  %v426_v53 = vmul.f32 0.6931472, %v779_v51  ;;  %v551_v4 = vmul.f32 1.442695, %v549_v24  ;;  %v576_v1 = vmul.f32 %v697_v20, %v695_v6 }
  0x57   :  { %v243_v8 = vmul.f32 %v241_v52, %v1221_v11  ;;  %v783_v29 = vpop.eup %782  ;;  %v428_v36 = vmul.f32 0.6931472, %v781_v42  ;;  %v574_v42 = vmax.f32 %v697_v20, 0.0 }
  0x58   :  { %v244_v12 = vadd.f32 0.180141, %v242_v61  ;;  %v785_v39 = vpop.eup %784  ;;  %v429_v19 = vadd.f32 %v426_v53, %v1118_v5  ;;  %v489_v46 = vadd.f32 1.0, %v783_v29  ;;  %794 = vpow2.f32 %v551_v4 }
  0x59   :  { %v245_v16 = vadd.f32 0.180141, %v243_v8  ;;  %v430_v56 = vadd.f32 %v428_v36, %v1120_v23  ;;  %v490_v52 = vadd.f32 1.0, %v785_v39  ;;  %v696_v61 = vsel %vm566_vm1, 1.0, %v1373_v60  ;;  %v698_v23 = vld [vmem:[%s1359_s0 + $0xc8] sm:$0xff] }
  0x5a   :  { %v246_v51 = vmul.f32 %v244_v12, %v1213_v14  ;;  %v1245_v59 = vadd.f32 %v429_v19, %v1165_v18  ;;  %796 = vlog2.f32 %v489_v46  ;;  %v787_v24 = vpop.eup %786  ;;  %v575_v6 = vmax.f32 %v698_v23, 0.0 }
  0x5b   :  { %v247_v55 = vmul.f32 %v245_v16, %v1221_v11  ;;  %v1251_v57 = vadd.f32 %v430_v56, %v1168_v44  ;;  %798 = vlog2.f32 %v490_v52  ;;  %v522_v18 = vadd.f32 1.0, %v787_v24 }
  0x5c   :  { %v248_v5 = vadd.f32 -0.3302995, %v246_v51  ;;  %800 = vpow2.f32 %v553_v0  ;;  %v577_v36 = vmul.f32 %v698_v23, %v696_v61  ;;  %v1257_v4 = vsub.f32 %v574_v42, %v576_v1  ;;  %v1271_v1 = vld [vmem:[%s1360_s1 + $0x68] sm:$0xff] }
  0x5d   :  { %v789_v8 = vpop.eup %788  ;;  %v249_v53 = vadd.f32 -0.3302995, %v247_v55  ;;  %802 = vlog2.f32 %v522_v18  ;;  %v580_v19 = vand.u32 2147483647, %v697_v20  ;;  %v1263_v55 = vld [vmem:[%s1360_s1 + $0x60] sm:$0xff] }
  0x5e   :  { %v791_v29 = vpop.eup %790  ;;  %v250_v22 = vmul.f32 %v248_v5, %v1213_v14  ;;  %v459_v12 = vmul.f32 0.6931472, %v789_v8  ;;  %v1266_v14 = vsub.f32 %v575_v6, %v577_v36  ;;  %v581_v20 = vand.u32 2147483647, %v698_v23 }
  0x5f   :  { %v793_v44 = vpop.eup %792  ;;  %v251_v39 = vmul.f32 %v249_v53, %v1221_v11  ;;  %v461_v16 = vmul.f32 0.6931472, %v791_v29  ;;  %v582_v52 = vsub.f32 0.0, %v580_v19  ;;  %v196_v36 = vadd.f32 %v1142_v37, %v1113_v62 }
  0x60   :  { %v252_v46 = vadd.f32 0.999866, %v250_v22  ;;  %v462_v0 = vadd.f32 %v459_v12, %v1134_v48  ;;  %v523_v51 = vadd.f32 1.0, %v793_v44  ;;  %v612_v48 = vadd.f32 %v1271_v1, %v1263_v55 }
  0x61   :  { %v253_v11 = vadd.f32 0.999866, %v251_v39  ;;  %v463_v56 = vadd.f32 %v461_v16, %v1136_v49  ;;  %v583_v8 = vsub.f32 0.0, %v581_v20  ;;  %v584_v53 = vmul.f32 1.442695, %v582_v52  ;;  %v659_v49 = vld [vmem:[%s1360_s1 + $0x70] sm:$0xff] }
  0x62   :  { %v254_v61 = vmul.f32 %v252_v46, %v1203_v3  ;;  %v464_v24 = vadd.f32 %v462_v0, %v1173_v17  ;;  %804 = vlog2.f32 %v523_v51  ;;  %v795_v18 = vpop.eup %794  ;;  %v210_v3 = vsub.f32 %v1064_v33, %v1024_v27  ;;  %700 = vst [vmem:[%s1361_s2 + $0x8] sm:$0xff] %v612_v48 }
  0x63   :  { %v255_v5 = vmul.f32 %v253_v11, %v1209_v40  ;;  %v1280_v42 = vadd.f32 %v463_v56, %v1181_v13  ;;  %v211_v17 = vsub.f32 %v1068_v41, %v1032_v32  ;;  %v660_v13 = vld [vmem:[%s1360_s1 + $0x78] sm:$0xff]  ;;  %v555_v29 = vadd.f32 1.0, %v795_v18 }
  0x64   :  { %v256_v23 = vsub.f32 1.5707964, %v254_v61  ;;  %v797_v6 = vpop.eup %796  ;;  %806 = vpow2.f32 %v584_v53  ;;  %v586_v22 = vmul.f32 1.442695, %v583_v8  ;;  %v197_v27 = vadd.f32 %v1144_v50, %v1132_v25 }
  0x65   :  { %v257_v40 = vsub.f32 1.5707964, %v255_v5  ;;  %v799_v12 = vpop.eup %798  ;;  %v492_v33 = vmul.f32 0.6931472, %v797_v6  ;;  %808 = vlog2.f32 %v555_v29  ;;  %v1310_v50 = vmul.f32 %v1192_v7, %v1104_v45 }
  0x66   :  { %v258_v32 = vsel %vm226_vm10, %v256_v23, %v254_v61  ;;  %v801_v41 = vpop.eup %800  ;;  %v494_v16 = vmul.f32 0.6931472, %v799_v12  ;;  %810 = vpow2.f32 %v586_v22  ;;  %v1374_v56 = vsub.f32 %v1056_v26, %v1014_v9 }
  0x67   :  { %v259_v44 = vsel %vm227_vm11, %v257_v40, %v255_v5  ;;  %v260_v39 = vsub.f32 %v659_v49, %v258_v32  ;;  %v495_v62 = vadd.f32 %v492_v33, %v1170_v47  ;;  %v556_v37 = vadd.f32 1.0, %v801_v41  ;;  %v803_v25 = vpop.eup %802  ;;  %v1377_v32 = vld [vmem:[#allocation6_spill] sm:$0xff] }
  0x68   :  { %v261_v19 = vsub.f32 %v660_v13, %v259_v44  ;;  %v496_v2 = vadd.f32 %v494_v16, %v1175_v63  ;;  %v525_v11 = vmul.f32 0.6931472, %v803_v25  ;;  %v198_v47 = vadd.f32 1e-07, %v196_v36  ;;  %v1376_v36 = vld [vmem:[#allocation4_spill] sm:$0xff] }
  0x69   :  { %v262_v46 = vmul.f32 %v260_v39, %v260_v39  ;;  %v497_v51 = vadd.f32 %v495_v62, %v1245_v59  ;;  %812 = vlog2.f32 %v556_v37  ;;  %v204_v20 = vsub.f32 %v1374_v56, %v1016_v58 }
  0x6a   :  { %v263_v0 = vmul.f32 %v261_v19, %v261_v19  ;;  %v498_v30 = vadd.f32 %v496_v2, %v1251_v57  ;;  %v199_v45 = vadd.f32 1e-07, %v197_v27  ;;  %v212_v7 = vsub.f32 %v210_v3, %v1026_v28 }
  0x6b   :  { %v264_v10 = vmul.f32 0.40528473, %v262_v46  ;;  %v528_v63 = vadd.f32 %v525_v11, %v1194_v38  ;;  %v1375_v59 = vsub.f32 %v1060_v31, %v1019_v15  ;;  %v213_v5 = vsub.f32 %v211_v17, %v1034_v35 }
  0x6c   :  { %v805_v52 = vpop.eup %804  ;;  %v265_v61 = vmul.f32 0.40528473, %v263_v0  ;;  %v206_v53 = vmul.f32 %v204_v20, %v204_v20  ;;  %814 = vrcp.f32 %v198_v47  ;;  %v214_v38 = vmul.f32 %v212_v7, %v212_v7 }
  0x6d   :  { %v205_v48 = vsub.f32 %v1375_v59, %v1021_v21  ;;  %v266_v9 = vsub.f32 %v264_v10, %v1306_v54  ;;  %v527_v58 = vmul.f32 0.6931472, %v805_v52  ;;  %v530_v57 = vadd.f32 %v528_v63, %v464_v24 }
  0x6e   :  { %v267_v26 = vsub.f32 %v265_v61, %v1310_v50  ;;  %v807_v8 = vpop.eup %806  ;;  %816 = vrcp.f32 %v199_v45  ;;  %v215_v31 = vmul.f32 %v213_v5, %v213_v5  ;;  %v216_v13 = vadd.f32 %v214_v38, %v206_v53 }
  0x6f   :  { %v268_v18 = vadd.f32 1.0000001, %v266_v9  ;;  %v529_v28 = vadd.f32 %v527_v58, %v1197_v43  ;;  %v588_v3 = vadd.f32 1.0, %v807_v8  ;;  %v809_v15 = vpop.eup %808  ;;  %v207_v21 = vmul.f32 %v205_v48, %v205_v48 }
  0x70   :  { %v269_v49 = vadd.f32 1.0000001, %v267_v26  ;;  %v811_v17 = vpop.eup %810  ;;  %v558_v23 = vmul.f32 0.6931472, %v809_v15  ;;  %v285_v29 = vlaneseq  ;;  %v324_v27 = vadd.f32 1.0, %v1376_v36 }
  0x71   :  { %818 = vrcp.f32 %v268_v18  ;;  %v531_v35 = vadd.f32 %v529_v28, %v1280_v42  ;;  %v589_v24 = vadd.f32 1.0, %v811_v17  ;;  %v217_v43 = vadd.f32 %v215_v31, %v207_v21  ;;  %v1378_v42 = vld [vmem:[#allocation5_spill] sm:$0xff]  ;;  %v1379_v21 = vld [vmem:[#allocation2_spill] sm:$0xff] }
  0x72   :  { %820 = vrcp.f32 %v269_v49  ;;  %v561_v40 = vadd.f32 %v558_v23, %v1228_v34  ;;  %v218_v41 = vmul.f32 0.25, %v216_v13  ;;  %v325_v44 = vadd.f32 1.0, %v1378_v42 }
  0x73   :  { %822 = vlog2.f32 %v588_v3  ;;  %v813_v6 = vpop.eup %812  ;;  %v219_v16 = vmul.f32 0.25, %v217_v43  ;;  %v286_v19 = vshrl.u32 %v285_v29, 7  ;;  %v289_v7 = vand.u32 127, %v285_v29 }
  0x74   :  { %v560_v22 = vmul.f32 0.6931472, %v813_v6  ;;  %824 = vlog2.f32 %v589_v24  ;;  %v563_v12 = vadd.f32 %v561_v40, %v497_v51  ;;  %v310_v31 = vmax.f32 %v1379_v21, 0.0  ;;  %v1380_v24 = vld [vmem:[#allocation3_spill] sm:$0xff] }
  0x75   :  { %826 = vlog2.f32 %v324_v27  ;;  %v287_v47 = vadd.s32 8, %v286_v19  ;;  %v290_v63 = vmul.u32 128, %v286_v19 }
  0x76   :  { %v562_v33 = vadd.f32 %v560_v22, %v1377_v32  ;;  %v815_v39 = vpop.eup %814  ;;  %828 = vlog2.f32 %v325_v44 }
  0x77   :  { %v275_v2 = vmul.f32 %v815_v39, %v218_v41  ;;  %v291_v9 = vmul.u32 128, %v287_v47  ;;  %v295_v18 = vadd.s32 %v290_v63, %v289_v7 }
  0x78   :  { %v564_v62 = vadd.f32 %v562_v33, %v498_v30  ;;  %v817_v37 = vpop.eup %816 }
  0x79   :  { %v277_v11 = vmul.f32 %v817_v37, %v219_v16  ;;  %v296_v3 = vadd.s32 %v291_v9, %v289_v7  ;;  %vm297_vm2 = vcmp.lt.s32.totalorder %v295_v18, 1536 }
  0x7b   :  { %v819_v25 = vpop.eup %818  ;;  %vm298_vm3 = vcmp.lt.s32.totalorder %v296_v3, 1536 }
  0x7c   :  { %v821_v34 = vpop.eup %820  ;;  %v271_v46 = vmul.f32 %v819_v25, %v264_v10  ;;  %v664_v33 = vsel %vm298_vm3, 1.0, %v1373_v60 }
  0x7d   :  { %v823_v0 = vpop.eup %822  ;;  %v273_v51 = vmul.f32 %v821_v34, %v265_v61 }
  0x7e   :  { %v278_v56 = vmul.f32 %v271_v46, %v264_v10  ;;  %v591_v20 = vmul.f32 0.6931472, %v823_v0  ;;  %v825_v52 = vpop.eup %824 }
  0x7f   :  { %v279_v45 = vmul.f32 %v273_v51, %v265_v61  ;;  %v593_v48 = vmul.f32 0.6931472, %v825_v52  ;;  %v827_v49 = vpop.eup %826 }
  0x80   :  { %v280_v59 = vadd.f32 %v278_v56, %v275_v2  ;;  %v594_v30 = vadd.f32 %v591_v20, %v1257_v4  ;;  %v829_v17 = vpop.eup %828  ;;  %v327_v40 = vmul.f32 0.6931472, %v827_v49 }
  0x81   :  { %v281_v5 = vadd.f32 %v279_v45, %v277_v11  ;;  %v595_v26 = vadd.f32 %v593_v48, %v1266_v14  ;;  %v329_v22 = vmul.f32 0.6931472, %v829_v17 }
  0x82   :  { %v282_v58 = vsub.f32 %v1306_v54, %v280_v59  ;;  %v596_v8 = vadd.f32 %v594_v30, %v530_v57 }
  0x83   :  { %v283_v53 = vsub.f32 %v1310_v50, %v281_v5  ;;  %v597_v28 = vadd.f32 %v595_v26, %v531_v35  ;;  %v311_v35 = vmax.f32 %v1380_v24, 0.0 }
  0x84   :  { %v303_v10 = vmax.f32 %v282_v58, 0.0  ;;  %v598_v38 = vadd.f32 %v596_v8, %v563_v12  ;;  %v603_v61 = vsub.f32 1.0, %v282_v58 }
  0x85   :  { %v304_v15 = vmax.f32 %v283_v53, 0.0  ;;  %v604_v4 = vsub.f32 1.0, %v283_v53  ;;  %v599_v54 = vadd.f32 %v597_v28, %v564_v62 }
  0x86   :  { %v305_v23 = vmul.f32 %v1263_v55, %v303_v10  ;;  %v600_v14 = vmul.f32 %v1263_v55, %v598_v38  ;;  %v605_v57 = vmul.f32 %v1263_v55, %v603_v61  ;;  %v663_v55 = vsel %vm297_vm2, 1.0, %v1373_v60 }
  0x87   :  { %v306_v50 = vmul.f32 %v1271_v1, %v304_v15  ;;  %v606_v6 = vmul.f32 %v1271_v1, %v604_v4  ;;  %v601_v43 = vmul.f32 %v1271_v1, %v599_v54 }
  0x88   :  { %v312_v13 = vmul.f32 %v1379_v21, %v305_v23 }
  0x89   :  { %v313_v29 = vmul.f32 %v1380_v24, %v306_v50  ;;  %v607_v12 = vadd.f32 %v606_v6, %v605_v57  ;;  %v622_v27 = vadd.f32 %v601_v43, %v600_v14 }
  0x8a   :  { %v314_v36 = vsub.f32 %v310_v31, %v312_v13 }
  0x8b   :  { %v315_v32 = vsub.f32 %v311_v35, %v313_v29  ;;  %609 = vst [vmem:[%s1361_s2] sm:$0xff] %v607_v12  ;;  %704 = vst [vmem:[%s1361_s2 + $0x18] sm:$0xff] %v622_v27 }
  0x8c   :  { %v330_v41 = vadd.f32 %v327_v40, %v314_v36 }
  0x8d   :  { %v331_v42 = vadd.f32 %v329_v22, %v315_v32 }
  0x8e   :  { %v332_v44 = vmul.f32 %v663_v55, %v330_v41 }
  0x8f   :  { %v333_v1 = vmul.f32 %v664_v33, %v331_v42 }
  0x91   :  { %v617_v39 = vadd.f32 %v333_v1, %v332_v44 }
  0x93   :  { %702 = vst [vmem:[%s1361_s2 + $0x10] sm:$0xff] %v617_v39 }

// kernel: squeeze.42
= control target key start
LH: loop header
LB: loop body
LE: loop exit
PB: predicated region body
PF: predicated region fallthrough
CT: control target
= control target key end

     0   :  { %vm6_vm0 = vcmask 1042434   ;;  %s11_s6 = smov 3  ;;  %s33_s11 = smov 3  ;;  %vm8_vm1 = vcmask 64512   ;;  %vm19_vm2 = vcmask 1048512   ;;  %vm30_vm3 = vcmask 982912   ;;  %s367_s0 = inlined_call_operand.vmem [shape: f32[2,3,8,8], index: 0, kind: input, shape index: {}]   ;;  %s368_s1 = inlined_call_operand.vmem [shape: f32[384], index: 1, kind: output, shape index: {}]  }
   0x1   :  { %v183_v0 = vld [vmem:[%s367_s0 + $0x2d] sm:$0x4]   ;;  %v187_v2 = vld [vmem:[%s367_s0 + $0x2b] sm:$0x4]   ;;  %s22_s16 = smov 3  ;;  %s227_s19 = smov 120  }
   0x2   :  { %v182_v1 = vld [vmem:[%s367_s0 + $0xf] ss:$16 sm:%s11_s6]   ;;  %v186_v4 = vld [vmem:[%s367_s0 + $0xd] ss:$16 sm:%s33_s11]   ;;  %s44_s22 = smov 3  ;;  %s228_s25 = smov 104  }
   0x3   :  { %v16_v3 = vsel %vm6_vm0, %v183_v0, %v182_v1  ;;  %v185_v5 = vld [vmem:[%s367_s0 + $0x2c] sm:$0x4]   ;;  %v38_v6 = vsel %vm6_vm0, %v187_v2, %v186_v4  ;;  %v189_v8 = vld [vmem:[%s367_s0 + $0x2a] sm:$0x4]   ;;  %s55_s28 = smov 3  ;;  %s66_s4 = smov 3 }
   0x4   :  { %17 = vrot.lane.b32.xlu0 %v16_v3, %s227_s19  ;;  %v184_v7 = vld [vmem:[%s367_s0 + $0xe] ss:$16 sm:%s22_s16]   ;;  %39 = vrot.lane.b32.xlu1 %v38_v6, %s228_s25  ;;  %s77_s9 = smov 3  ;;  %s229_s10 = smov 112   ;;  %vm41_vm4 = vcmask 917312   ;;  %vm52_vm5 = vcmask 851712  }
   0x5   :  { %v27_v9 = vsel %vm6_vm0, %v185_v5, %v184_v7  ;;  %v188_v10 = vld [vmem:[%s367_s0 + $0xc] ss:$16 sm:%s44_s22]   ;;  %v190_v12 = vld [vmem:[%s367_s0 + $0xb] ss:$16 sm:%s55_s28]   ;;  %s88_s11 = smov 3  ;;  %s230_s12 = smov 96  }
   0x6   :  { %v49_v11 = vsel %vm6_vm0, %v189_v8, %v188_v10  ;;  %v191_v13 = vld [vmem:[%s367_s0 + $0x29] sm:$0x4]   ;;  %v192_v14 = vld [vmem:[%s367_s0 + $0xa] ss:$16 sm:%s66_s4]   ;;  %v195_v19 = vld [vmem:[%s367_s0 + $0x27] sm:$0x4]  }
   0x7   :  { %v193_v15 = vld [vmem:[%s367_s0 + $0x28] sm:$0x4]   ;;  %v60_v16 = vsel %vm6_vm0, %v191_v13, %v190_v12  ;;  %v194_v18 = vld [vmem:[%s367_s0 + $0x9] ss:$16 sm:%s77_s9]   ;;  %v197_v21 = vld [vmem:[%s367_s0 + $0x26] sm:$0x4]  }
   0x8   :  { %28 = vrot.lane.b32.xlu0 %v27_v9, %s229_s10  ;;  %50 = vrot.lane.b32.xlu1 %v49_v11, %s230_s12  ;;  %v71_v17 = vsel %vm6_vm0, %v193_v15, %v192_v14  ;;  %v196_v20 = vld [vmem:[%s367_s0 + $0x8] ss:$16 sm:%s88_s11]   ;;  %s99_s21 = smov 3  ;;  %s231_s22 = smov 88   ;;  %v82_v22 = vsel %vm6_vm0, %v195_v19, %v194_v18  ;;  %vm63_vm6 = vcmask 786112   ;;  %vm74_vm7 = vcmask 720512  }
   0x9   :  { %s110_s23 = smov 3  ;;  %s232_s24 = smov 80   ;;  %v93_v23 = vsel %vm6_vm0, %v197_v21, %v196_v20  ;;  %v198_v24 = vld [vmem:[%s367_s0 + $0x7] ss:$16 sm:%s99_s21]   ;;  %v201_v27 = vld [vmem:[%s367_s0 + $0x24] sm:$0x4]  }
   0xa   :  { %v199_v25 = vld [vmem:[%s367_s0 + $0x25] sm:$0x4]   ;;  %v200_v26 = vld [vmem:[%s367_s0 + $0x6] ss:$16 sm:%s110_s23]   ;;  %s121_s4 = smov 3  ;;  %s233_s5 = smov 72  }
   0xb   :  { %s132_s6 = smov 3  ;;  %s2_s7 = smov 3  ;;  %v181_v28 = vld [vmem:[%s367_s0 + $0x1e] sm:$0x4]   ;;  %v104_v29 = vsel %vm6_vm0, %v199_v25, %v198_v24  ;;  %v115_v31 = vsel %vm6_vm0, %v201_v27, %v200_v26  ;;  %v202_v32 = vld [vmem:[%s367_s0 + $0x5] ss:$16 sm:%s121_s4]  }
   0xc   :  { %61 = vrot.lane.b32.xlu0 %v60_v16, %s231_s22  ;;  %72 = vrot.lane.b32.xlu1 %v71_v17, %s232_s24  ;;  %s234_s10 = smov 64   ;;  %v3_v30 = vld [vmem:[%s367_s0] ss:$16 sm:%s2_s7]   ;;  %s143_s21 = smov 3  ;;  %vm85_vm8 = vcmask 654912   ;;  %vm96_vm9 = vcmask 589312  }
   0xd   :  { %v203_v33 = vld [vmem:[%s367_s0 + $0x23] sm:$0x4]   ;;  %v7_v34 = vsel %vm6_vm0, %v181_v28, %v3_v30  ;;  %v204_v35 = vld [vmem:[%s367_s0 + $0x4] ss:$16 sm:%s132_s6]   ;;  %s235_s22 = smov 56   ;;  %s154_s23 = smov 3 }
   0xe   :  { %v205_v36 = vld [vmem:[%s367_s0 + $0x22] sm:$0x4]   ;;  %9 = vst.msk [vmem:[#allocation0] sm:$0x7] %vm8_vm1, %v7_v34   ;;  %s236_s24 = smov 48   ;;  %v126_v37 = vsel %vm6_vm0, %v203_v33, %v202_v32  ;;  %s165_s4 = smov 3 }
   0xf   :  { %v137_v38 = vsel %vm6_vm0, %v205_v36, %v204_v35  ;;  %v206_v39 = vld [vmem:[%s367_s0 + $0x3] ss:$16 sm:%s143_s21]   ;;  %v208_v41 = vld [vmem:[%s367_s0 + $0x2] ss:$16 sm:%s154_s23]   ;;  %s238_s6 = smov 32   ;;  %s240_s11 = smov 16  }
  0x10   :  { %83 = vrot.lane.b32.xlu0 %v82_v22, %s233_s5  ;;  %94 = vrot.lane.b32.xlu1 %v93_v23, %s234_s10  ;;  %v207_v40 = vld [vmem:[%s367_s0 + $0x21] sm:$0x4]   ;;  %v209_v42 = vld [vmem:[%s367_s0 + $0x20] sm:$0x4]   ;;  %s237_s5 = smov 40   ;;  %s241_s12 = smov 8  }
  0x11   :  { %v148_v43 = vsel %vm6_vm0, %v207_v40, %v206_v39  ;;  %v159_v44 = vsel %vm6_vm0, %v209_v42, %v208_v41  ;;  %v210_v45 = vld [vmem:[%s367_s0 + $0x1] ss:$16 sm:%s165_s4]   ;;  %vm107_vm10 = vcmask 523712   ;;  %vm118_vm11 = vcmask 458112  }
  0x12   :  { %v211_v46 = vld [vmem:[%s367_s0 + $0x1f] sm:$0x4]   ;;  %s239_s0 = smov 24   ;;  %vm129_vm12 = vcmask 392512   ;;  %vm140_vm13 = vcmask 326912   ;;  %vm151_vm14 = vcmask 261312  }
  0x13   :  { %v170_v47 = vsel %vm6_vm0, %v211_v46, %v210_v45  ;;  %vm162_vm15 = vcmask 195712   ;;  %vm173_vm0 = vcmask 130112  }
  0x14   :  { %105 = vrot.lane.b32.xlu0 %v104_v29, %s235_s22  ;;  %116 = vrot.lane.b32.xlu1 %v115_v31, %s236_s24 }
  0x18   :  { %127 = vrot.lane.b32.xlu0 %v126_v37, %s237_s5  ;;  %138 = vrot.lane.b32.xlu1 %v137_v38, %s238_s6 }
  0x1c   :  { %149 = vrot.lane.b32.xlu0 %v148_v43, %s239_s0  ;;  %160 = vrot.lane.b32.xlu1 %v159_v44, %s240_s11 }
  0x20   :  { %171 = vrot.lane.b32.xlu0 %v170_v47, %s241_s12 }
  0x76   :  { %v18_v48 = vpop.permute.xlu0 %17   ;;  %v40_v49 = vpop.permute.xlu1 %39  }
  0x77   :  { %20 = vst.msk [vmem:[#allocation0] sm:$0x7] %vm19_vm2, %v18_v48  }
  0x7a   :  { %v29_v50 = vpop.permute.xlu0 %28   ;;  %v51_v51 = vpop.permute.xlu1 %50  }
  0x7b   :  { %31 = vst.msk [vmem:[#allocation0] sm:$0x7] %vm30_vm3, %v29_v50  }
  0x7c   :  { %42 = vst.msk [vmem:[#allocation0] sm:$0x7] %vm41_vm4, %v40_v49  }
  0x7d   :  { %53 = vst.msk [vmem:[#allocation0] sm:$0x7] %vm52_vm5, %v51_v51  }
  0x7e   :  { %v62_v52 = vpop.permute.xlu0 %61   ;;  %v73_v53 = vpop.permute.xlu1 %72  }
  0x7f   :  { %64 = vst.msk [vmem:[#allocation0] sm:$0x7] %vm63_vm6, %v62_v52  }
  0x80   :  { %75 = vst.msk [vmem:[#allocation0] sm:$0x7] %vm74_vm7, %v73_v53  }
  0x82   :  { %v84_v54 = vpop.permute.xlu0 %83   ;;  %v95_v55 = vpop.permute.xlu1 %94  }
  0x83   :  { %86 = vst.msk [vmem:[#allocation0] sm:$0x7] %vm85_vm8, %v84_v54  }
  0x84   :  { %97 = vst.msk [vmem:[#allocation0] sm:$0x7] %vm96_vm9, %v95_v55  }
  0x86   :  { %v106_v56 = vpop.permute.xlu0 %105   ;;  %v117_v57 = vpop.permute.xlu1 %116  }
  0x87   :  { %108 = vst.msk [vmem:[#allocation0] sm:$0x7] %vm107_vm10, %v106_v56  }
  0x88   :  { %119 = vst.msk [vmem:[#allocation0] sm:$0x7] %vm118_vm11, %v117_v57  }
  0x8a   :  { %v128_v58 = vpop.permute.xlu0 %127   ;;  %v139_v59 = vpop.permute.xlu1 %138  }
  0x8b   :  { %130 = vst.msk [vmem:[#allocation0] sm:$0x7] %vm129_vm12, %v128_v58  }
  0x8c   :  { %141 = vst.msk [vmem:[#allocation0] sm:$0x7] %vm140_vm13, %v139_v59  }
  0x8e   :  { %v150_v60 = vpop.permute.xlu0 %149   ;;  %v161_v61 = vpop.permute.xlu1 %160  }
  0x8f   :  { %152 = vst.msk [vmem:[#allocation0] sm:$0x7] %vm151_vm14, %v150_v60  }
  0x90   :  { %163 = vst.msk [vmem:[#allocation0] sm:$0x7] %vm162_vm15, %v161_v61  }
  0x92   :  { %v172_v62 = vpop.permute.xlu0 %171  }
  0x93   :  { %174 = vst.msk [vmem:[#allocation0] sm:$0x7] %vm173_vm0, %v172_v62  }
  0x9a   :  { %v178_v63 = vld [vmem:[#allocation0] sm:$0xf] }
  0x9b   :  { %180 = vst [vmem:[%s368_s1] sm:$0xf] %v178_v63 }

// kernel: squeeze.52
= control target key start
LH: loop header
LB: loop body
LE: loop exit
PB: predicated region body
PF: predicated region fallthrough
CT: control target
= control target key end

     0   :  { %s210_s18 = smov 84   ;;  %s211_s19 = smov 88   ;;  %vm31_vm0 = vcmask 31744   ;;  %vm37_vm1 = vcmask 786144   ;;  %vm43_vm2 = vcmask 753344   ;;  %vm49_vm3 = vcmask 720544   ;;  %s263_s0 = inlined_call_operand.vmem [shape: f32[2,3,4,4], index: 0, kind: input, shape index: {}]   ;;  %s264_s1 = inlined_call_operand.vmem [shape: f32[96], index: 1, kind: output, shape index: {}]  }
   0x1   :  { %v181_v0 = vld [vmem:[%s263_s0 + $0x14] sm:$0xf]  ;;  %v182_v1 = vld [vmem:[%s263_s0 + $0x10] sm:$0xf]  ;;  %v183_v2 = vld [vmem:[%s263_s0 + $0xc] sm:$0xf] }
   0x2   :  { %8 = vst [vmem:[#allocation1 + $0x28] sm:$0xf] %v181_v0  ;;  %13 = vst [vmem:[#allocation1 + $0x20] sm:$0xf] %v182_v1  ;;  %v184_v3 = vld [vmem:[%s263_s0 + $0x8] sm:$0xf] }
   0x3   :  { %18 = vst [vmem:[#allocation1 + $0x18] sm:$0xf] %v183_v2  ;;  %23 = vst [vmem:[#allocation1 + $0x10] sm:$0xf] %v184_v3  ;;  %v185_v4 = vld [vmem:[%s263_s0 + $0x4] sm:$0xf] }
   0x4   :  { %v28_v5 = vld [vmem:[%s263_s0] sm:$0xf]  ;;  %27 = vst [vmem:[#allocation1 + $0x8] sm:$0xf] %v185_v4  ;;  %s209_s0 = smov 92   ;;  %s212_s20 = smov 80  }
   0x5   :  { %29 = vst [vmem:[#allocation1] sm:$0xf] %v28_v5  ;;  %s213_s21 = smov 76   ;;  %s214_s22 = smov 72   ;;  %vm55_vm4 = vcmask 687744   ;;  %vm61_vm5 = vcmask 654944  }
   0x6   :  { %s215_s23 = smov 68   ;;  %s216_s24 = smov 64   ;;  %vm67_vm6 = vcmask 622144   ;;  %vm73_vm7 = vcmask 589344   ;;  %vm79_vm8 = vcmask 556544   ;;  %vm85_vm9 = vcmask 523744  }
   0x7   :  { %s217_s25 = smov 60   ;;  %s218_s26 = smov 56   ;;  %vm91_vm10 = vcmask 490944   ;;  %vm97_vm11 = vcmask 458144   ;;  %vm103_vm12 = vcmask 425344   ;;  %vm109_vm13 = vcmask 392544  }
   0x8   :  { %s219_s27 = smov 52   ;;  %s220_s28 = smov 48   ;;  %vm115_vm14 = vcmask 359744   ;;  %vm121_vm15 = vcmask 326944  }
   0x9   :  { %v34_v6 = vld [vmem:[#allocation1 + $0x2b] sm:$0x1]   ;;  %v46_v7 = vld [vmem:[#allocation1 + $0x29] sm:$0x1]   ;;  %v40_v8 = vld [vmem:[#allocation1 + $0x2a] sm:$0x1]  }
   0xa   :  { %35 = vrot.lane.b32.xlu0 %v34_v6, %s209_s0  ;;  %47 = vrot.lane.b32.xlu1 %v46_v7, %s210_s18  ;;  %v52_v9 = vld [vmem:[#allocation1 + $0x28] sm:$0x1]   ;;  %v58_v10 = vld [vmem:[#allocation1 + $0x23] sm:$0x1]   ;;  %v64_v11 = vld [vmem:[#allocation1 + $0x22] sm:$0x1]  }
   0xb   :  { %v70_v13 = vld [vmem:[#allocation1 + $0x21] sm:$0x1]   ;;  %v76_v14 = vld [vmem:[#allocation1 + $0x20] sm:$0x1]   ;;  %v82_v15 = vld [vmem:[#allocation1 + $0x1b] sm:$0x1]  }
   0xc   :  { %v30_v12 = vld [vmem:[#allocation1] sm:$0x1]   ;;  %v88_v16 = vld [vmem:[#allocation1 + $0x1a] sm:$0x1]   ;;  %v94_v17 = vld [vmem:[#allocation1 + $0x19] sm:$0x1]  }
   0xd   :  { %32 = vst.msk [vmem:[#allocation0] sm:$0x1] %vm31_vm0, %v30_v12   ;;  %v100_v18 = vld [vmem:[#allocation1 + $0x18] sm:$0x1]   ;;  %v106_v19 = vld [vmem:[#allocation1 + $0x13] sm:$0x1]  }
   0xe   :  { %41 = vrot.lane.b32.xlu0 %v40_v8, %s211_s19  ;;  %53 = vrot.lane.b32.xlu1 %v52_v9, %s212_s20  ;;  %v112_v20 = vld [vmem:[#allocation1 + $0x12] sm:$0x1]   ;;  %s221_s29 = smov 44   ;;  %s222_s30 = smov 40   ;;  %v118_v21 = vld [vmem:[#allocation1 + $0x11] sm:$0x1]  }
   0xf   :  { %v124_v22 = vld [vmem:[#allocation1 + $0x10] sm:$0x1]   ;;  %s223_s2 = smov 36   ;;  %s224_s3 = smov 32   ;;  %v130_v23 = vld [vmem:[#allocation1 + $0xb] sm:$0x1]  }
  0x10   :  { %v136_v24 = vld [vmem:[#allocation1 + $0xa] sm:$0x1]   ;;  %s225_s4 = smov 28   ;;  %s226_s5 = smov 24   ;;  %v142_v25 = vld [vmem:[#allocation1 + $0x9] sm:$0x1]  }
  0x11   :  { %v148_v26 = vld [vmem:[#allocation1 + $0x8] sm:$0x1]   ;;  %s227_s6 = smov 20   ;;  %s228_s7 = smov 16   ;;  %v154_v27 = vld [vmem:[#allocation1 + $0x3] sm:$0x1]  }
  0x12   :  { %59 = vrot.lane.b32.xlu0 %v58_v10, %s213_s21  ;;  %65 = vrot.lane.b32.xlu1 %v64_v11, %s214_s22  ;;  %v160_v28 = vld [vmem:[#allocation1 + $0x2] sm:$0x1]   ;;  %s229_s8 = smov 12   ;;  %s230_s9 = smov 8   ;;  %v166_v29 = vld [vmem:[#allocation1 + $0x1] sm:$0x1]  }
  0x13   :  { %s231_s10 = smov 4   ;;  %vm127_vm0 = vcmask 294144  }
  0x16   :  { %71 = vrot.lane.b32.xlu0 %v70_v13, %s215_s23  ;;  %77 = vrot.lane.b32.xlu1 %v76_v14, %s216_s24 }
  0x1a   :  { %83 = vrot.lane.b32.xlu0 %v82_v15, %s217_s25  ;;  %89 = vrot.lane.b32.xlu1 %v88_v16, %s218_s26 }
  0x1e   :  { %95 = vrot.lane.b32.xlu0 %v94_v17, %s219_s27  ;;  %101 = vrot.lane.b32.xlu1 %v100_v18, %s220_s28 }
  0x22   :  { %107 = vrot.lane.b32.xlu0 %v106_v19, %s221_s29  ;;  %113 = vrot.lane.b32.xlu1 %v112_v20, %s222_s30 }
  0x26   :  { %119 = vrot.lane.b32.xlu0 %v118_v21, %s223_s2  ;;  %125 = vrot.lane.b32.xlu1 %v124_v22, %s224_s3 }
  0x2a   :  { %131 = vrot.lane.b32.xlu0 %v130_v23, %s225_s4  ;;  %137 = vrot.lane.b32.xlu1 %v136_v24, %s226_s5 }
  0x2e   :  { %143 = vrot.lane.b32.xlu0 %v142_v25, %s227_s6  ;;  %149 = vrot.lane.b32.xlu1 %v148_v26, %s228_s7 }
  0x32   :  { %155 = vrot.lane.b32.xlu0 %v154_v27, %s229_s8  ;;  %161 = vrot.lane.b32.xlu1 %v160_v28, %s230_s9 }
  0x36   :  { %167 = vrot.lane.b32.xlu0 %v166_v29, %s231_s10 }
  0x7c   :  { %v36_v30 = vpop.permute.xlu0 %35   ;;  %v48_v31 = vpop.permute.xlu1 %47  }
  0x7d   :  { %38 = vst.msk [vmem:[#allocation0] sm:$0x1] %vm37_vm1, %v36_v30   ;;  %vm133_vm1 = vcmask 261344  }
  0x80   :  { %v42_v32 = vpop.permute.xlu0 %41   ;;  %v54_v33 = vpop.permute.xlu1 %53  }
  0x81   :  { %44 = vst.msk [vmem:[#allocation0] sm:$0x1] %vm43_vm2, %v42_v32   ;;  %vm139_vm2 = vcmask 228544  }
  0x82   :  { %50 = vst.msk [vmem:[#allocation0] sm:$0x1] %vm49_vm3, %v48_v31   ;;  %vm145_vm3 = vcmask 195744  }
  0x83   :  { %56 = vst.msk [vmem:[#allocation0] sm:$0x1] %vm55_vm4, %v54_v33   ;;  %vm151_vm4 = vcmask 162944  }
  0x84   :  { %v60_v34 = vpop.permute.xlu0 %59   ;;  %v66_v35 = vpop.permute.xlu1 %65  }
  0x85   :  { %62 = vst.msk [vmem:[#allocation0] sm:$0x1] %vm61_vm5, %v60_v34   ;;  %vm157_vm5 = vcmask 130144  }
  0x86   :  { %68 = vst.msk [vmem:[#allocation0] sm:$0x1] %vm67_vm6, %v66_v35   ;;  %vm163_vm6 = vcmask 97344  }
  0x88   :  { %v72_v36 = vpop.permute.xlu0 %71   ;;  %v78_v37 = vpop.permute.xlu1 %77  }
  0x89   :  { %74 = vst.msk [vmem:[#allocation0] sm:$0x1] %vm73_vm7, %v72_v36   ;;  %vm169_vm7 = vcmask 64544  }
  0x8a   :  { %80 = vst.msk [vmem:[#allocation0] sm:$0x1] %vm79_vm8, %v78_v37  }
  0x8c   :  { %v84_v38 = vpop.permute.xlu0 %83   ;;  %v90_v39 = vpop.permute.xlu1 %89  }
  0x8d   :  { %86 = vst.msk [vmem:[#allocation0] sm:$0x1] %vm85_vm9, %v84_v38  }
  0x8e   :  { %92 = vst.msk [vmem:[#allocation0] sm:$0x1] %vm91_vm10, %v90_v39  }
  0x90   :  { %v96_v40 = vpop.permute.xlu0 %95   ;;  %v102_v41 = vpop.permute.xlu1 %101  }
  0x91   :  { %98 = vst.msk [vmem:[#allocation0] sm:$0x1] %vm97_vm11, %v96_v40  }
  0x92   :  { %104 = vst.msk [vmem:[#allocation0] sm:$0x1] %vm103_vm12, %v102_v41  }
  0x94   :  { %v108_v42 = vpop.permute.xlu0 %107   ;;  %v114_v43 = vpop.permute.xlu1 %113  }
  0x95   :  { %110 = vst.msk [vmem:[#allocation0] sm:$0x1] %vm109_vm13, %v108_v42  }
  0x96   :  { %116 = vst.msk [vmem:[#allocation0] sm:$0x1] %vm115_vm14, %v114_v43  }
  0x98   :  { %v120_v44 = vpop.permute.xlu0 %119   ;;  %v126_v45 = vpop.permute.xlu1 %125  }
  0x99   :  { %122 = vst.msk [vmem:[#allocation0] sm:$0x1] %vm121_vm15, %v120_v44  }
  0x9a   :  { %128 = vst.msk [vmem:[#allocation0] sm:$0x1] %vm127_vm0, %v126_v45  }
  0x9c   :  { %v132_v46 = vpop.permute.xlu0 %131   ;;  %v138_v47 = vpop.permute.xlu1 %137  }
  0x9d   :  { %134 = vst.msk [vmem:[#allocation0] sm:$0x1] %vm133_vm1, %v132_v46  }
  0x9e   :  { %140 = vst.msk [vmem:[#allocation0] sm:$0x1] %vm139_vm2, %v138_v47  }
  0xa0   :  { %v144_v48 = vpop.permute.xlu0 %143   ;;  %v150_v49 = vpop.permute.xlu1 %149  }
  0xa1   :  { %146 = vst.msk [vmem:[#allocation0] sm:$0x1] %vm145_vm3, %v144_v48  }
  0xa2   :  { %152 = vst.msk [vmem:[#allocation0] sm:$0x1] %vm151_vm4, %v150_v49  }
  0xa4   :  { %v156_v50 = vpop.permute.xlu0 %155   ;;  %v162_v51 = vpop.permute.xlu1 %161  }
  0xa5   :  { %158 = vst.msk [vmem:[#allocation0] sm:$0x1] %vm157_vm5, %v156_v50  }
  0xa6   :  { %164 = vst.msk [vmem:[#allocation0] sm:$0x1] %vm163_vm6, %v162_v51  }
  0xa8   :  { %v168_v52 = vpop.permute.xlu0 %167  }
  0xa9   :  { %170 = vst.msk [vmem:[#allocation0] sm:$0x1] %vm169_vm7, %v168_v52  }
  0xb0   :  { %v174_v53 = vld [vmem:[#allocation0] sm:$0x1] }
  0xb1   :  { %176 = vst [vmem:[%s264_s1] sm:$0x1] %v174_v53 }

// kernel: yolop_loss_forward.5
= control target key start
LH: loop header
LB: loop body
LE: loop exit
PB: predicated region body
PF: predicated region fallthrough
CT: control target
= control target key end

     0   :  { %s689_s0 = inlined_call_operand.vmem [shape: f32[13,8,128], index: 0, kind: input, shape index: {}]   ;;  %s690_s1 = inlined_call_operand.vmem [shape: f32[9,8,128], index: 1, kind: input, shape index: {}]   ;;  %s691_s2 = inlined_call_operand.vmem [shape: f32[4,8,128], index: 2, kind: output, shape index: {}]  }
   0x1   :  { %v349_v0 = vld [vmem:[%s689_s0 + $0x10] sm:$0xff]  ;;  %v19_v2 = vld [vmem:[%s689_s0] sm:$0xff]  ;;  %v352_v3 = vld [vmem:[%s689_s0 + $0x18] sm:$0xff] }
   0x2   :  { %v350_v1 = vmul.f32 -1.442695, %v349_v0  ;;  %v346_v4 = vld [vmem:[%s689_s0 + $0x8] sm:$0xff]  ;;  %v353_v5 = vmul.f32 -1.442695, %v352_v3  ;;  %v479_v6 = vld [vmem:[%s690_s1 + $0x30] sm:$0xff] }
   0x3   :  { %v344_v7 = vmul.f32 -1.442695, %v19_v2  ;;  %v347_v8 = vmul.f32 -1.442695, %v346_v4  ;;  %380 = vst [vmem:[%s691_s2 + $0x8] sm:$0xff] %v479_v6  ;;  %v488_v9 = vld [vmem:[%s689_s0 + $0x28] sm:$0xff] }
   0x4   :  { %386 = vpow2.f32 %v350_v1  ;;  %v493_v10 = vld [vmem:[%s689_s0 + $0x30] sm:$0xff]  ;;  %v193_v11 = vand.u32 2147483647, %v488_v9  ;;  %v500_v13 = vld [vmem:[%s689_s0 + $0x38] sm:$0xff]  ;;  %v506_v18 = vld [vmem:[%s689_s0 + $0x40] sm:$0xff] }
   0x5   :  { %388 = vpow2.f32 %v353_v5  ;;  %v210_v12 = vand.u32 2147483647, %v493_v10  ;;  %v227_v16 = vand.u32 2147483647, %v500_v13  ;;  %v511_v25 = vld [vmem:[%s689_s0 + $0x48] sm:$0xff]  ;;  %v517_v28 = vld [vmem:[%s689_s0 + $0x50] sm:$0xff] }
   0x6   :  { %390 = vpow2.f32 %v344_v7  ;;  %v194_v14 = vsub.f32 0.0, %v193_v11  ;;  %v244_v27 = vand.u32 2147483647, %v506_v18  ;;  %v261_v32 = vand.u32 2147483647, %v511_v25  ;;  %v524_v37 = vld [vmem:[%s689_s0 + $0x58] sm:$0xff] }
   0x7   :  { %392 = vpow2.f32 %v347_v8  ;;  %v211_v15 = vsub.f32 0.0, %v210_v12  ;;  %v228_v22 = vsub.f32 0.0, %v227_v16  ;;  %v278_v33 = vand.u32 2147483647, %v517_v28  ;;  %v530_v43 = vld [vmem:[%s689_s0 + $0x60] sm:$0xff]  ;;  %v535_v46 = vld [vmem:[%s690_s1 + $0x10] sm:$0xff] }
   0x8   :  { %v195_v21 = vmul.f32 1.442695, %v194_v14  ;;  %v245_v31 = vsub.f32 0.0, %v244_v27  ;;  %v262_v36 = vsub.f32 0.0, %v261_v32  ;;  %v295_v42 = vand.u32 2147483647, %v524_v37 }
   0x9   :  { %v212_v24 = vmul.f32 1.442695, %v211_v15  ;;  %v229_v26 = vmul.f32 1.442695, %v228_v22  ;;  %v279_v39 = vsub.f32 0.0, %v278_v33  ;;  %v540_v48 = vld [vmem:[%s690_s1 + $0x40] sm:$0xff] }
   0xa   :  { %v246_v35 = vmul.f32 1.442695, %v245_v31  ;;  %v263_v40 = vmul.f32 1.442695, %v262_v36  ;;  %v296_v44 = vsub.f32 0.0, %v295_v42  ;;  %v354_v54 = vld [vmem:[%s690_s1 + $0x28] sm:$0xff] }
   0xb   :  { %v280_v41 = vmul.f32 1.442695, %v279_v39  ;;  %v312_v50 = vand.u32 2147483647, %v530_v43  ;;  %v83_v55 = vmul.f32 0.5, %v535_v46  ;;  %vm185_vm0 = vcmp.eq.f32.partialorder %v540_v48, 0.0 }
   0xc   :  { %v297_v49 = vmul.f32 1.442695, %v296_v44  ;;  %vm202_vm1 = vcmp.eq.f32.partialorder %v540_v48, 1.0  ;;  %v64_v2 = vld [vmem:[%s690_s1] sm:$0xff]  ;;  %v557_v3 = vld [vmem:[%s690_s1 + $0x18] sm:$0xff]  ;;  %vm219_vm2 = vcmp.eq.f32.partialorder %v540_v48, 2.0 }
   0xd   :  { %v313_v57 = vsub.f32 0.0, %v312_v50  ;;  %vm236_vm3 = vcmp.eq.f32.partialorder %v540_v48, 3.0  ;;  %v448_v8 = vmov 0.0   ;;  %v568_v15 = vsub.f32 %v64_v2, %v83_v55 }
   0xe   :  { %v387_v17 = vpop.eup %386  ;;  %v363_v11 = vsel %vm185_vm0, 1.0, %v448_v8  ;;  %v365_v12 = vsel %vm202_vm1, 1.0, %v448_v8  ;;  %v86_v16 = vmul.f32 0.5, %v557_v3  ;;  %v575_v22 = vadd.f32 %v83_v55, %v64_v2 }
   0xf   :  { %v389_v19 = vpop.eup %388  ;;  %v43_v20 = vadd.f32 1.0, %v387_v17  ;;  %v314_v62 = vmul.f32 1.442695, %v313_v57  ;;  %v367_v17 = vsel %vm219_vm2, 1.0, %v448_v8  ;;  %v190_v27 = vmax.f32 %v488_v9, 0.0 }
  0x10   :  { %v56_v23 = vadd.f32 1.0, %v389_v19  ;;  %v391_v29 = vpop.eup %390  ;;  %v208_v31 = vmul.f32 %v493_v10, %v365_v12  ;;  %v224_v33 = vmax.f32 %v500_v13, 0.0  ;;  %vm253_vm4 = vcmp.eq.f32.partialorder %v540_v48, 4.0 }
  0x11   :  { %394 = vrcp.f32 %v43_v20  ;;  %v393_v30 = vpop.eup %392  ;;  %v23_v34 = vadd.f32 1.0, %v391_v29  ;;  %v191_v29 = vmul.f32 %v488_v9, %v363_v11  ;;  %vm270_vm5 = vcmp.eq.f32.partialorder %v540_v48, 5.0 }
  0x12   :  { %396 = vrcp.f32 %v56_v23  ;;  %v33_v38 = vadd.f32 1.0, %v393_v30  ;;  %v369_v23 = vsel %vm236_vm3, 1.0, %v448_v8  ;;  %v207_v30 = vmax.f32 %v493_v10, 0.0 }
  0x13   :  { %398 = vpow2.f32 %v195_v21  ;;  %v355_v21 = vld [vmem:[%s690_s1 + $0x8] sm:$0xff]  ;;  %v242_v39 = vmul.f32 %v506_v18, %v369_v23  ;;  %v258_v57 = vmax.f32 %v511_v25, 0.0  ;;  %vm287_vm6 = vcmp.eq.f32.partialorder %v540_v48, 6.0 }
  0x14   :  { %400 = vpow2.f32 %v212_v24  ;;  %v590_v36 = vsub.f32 %v355_v21, %v86_v16  ;;  %vm304_vm7 = vcmp.eq.f32.partialorder %v540_v48, 7.0  ;;  %v292_v23 = vmax.f32 %v524_v37, 0.0 }
  0x15   :  { %402 = vpow2.f32 %v229_v26  ;;  %v351_v26 = vld [vmem:[%s690_s1 + $0x20] sm:$0xff] }
  0x16   :  { %404 = vpow2.f32 %v246_v35 }
  0x17   :  { %406 = vrcp.f32 %v23_v34  ;;  %v225_v34 = vmul.f32 %v500_v13, %v367_v17  ;;  %v371_v13 = vsel %vm253_vm4, 1.0, %v448_v8 }
  0x18   :  { %408 = vrcp.f32 %v33_v38  ;;  %v241_v38 = vmax.f32 %v506_v18, 0.0 }
  0x19   :  { %410 = vpow2.f32 %v263_v40 }
  0x1a   :  { %412 = vpow2.f32 %v280_v41  ;;  %v596_v41 = vadd.f32 %v355_v21, %v86_v16  ;;  %v243_v55 = vsub.f32 %v241_v38, %v242_v39  ;;  %v375_v21 = vsel %vm287_vm6, 1.0, %v448_v8 }
  0x1b   :  { %v395_v45 = vpop.eup %394  ;;  %414 = vpow2.f32 %v297_v49  ;;  %v293_v38 = vmul.f32 %v524_v37, %v375_v21 }
  0x1c   :  { %v397_v47 = vpop.eup %396  ;;  %v46_v0 = vmul.f32 2.0, %v395_v45  ;;  %v192_v45 = vsub.f32 %v190_v27, %v191_v29  ;;  %v377_v29 = vsel %vm304_vm7, 1.0, %v448_v8 }
  0x1d   :  { %v399_v51 = vpop.eup %398  ;;  %v59_v52 = vmul.f32 2.0, %v397_v47  ;;  %v209_v47 = vsub.f32 %v207_v30, %v208_v31 }
  0x1e   :  { %v401_v53 = vpop.eup %400  ;;  %v197_v56 = vadd.f32 1.0, %v399_v51  ;;  %v47_v20 = vmul.f32 %v46_v0, %v46_v0 }
  0x1f   :  { %v403_v58 = vpop.eup %402  ;;  %v60_v59 = vmul.f32 %v59_v52, %v59_v52  ;;  %v214_v60 = vadd.f32 1.0, %v401_v53  ;;  %v226_v52 = vsub.f32 %v224_v33, %v225_v34 }
  0x20   :  { %416 = vlog2.f32 %v197_v56  ;;  %v231_v61 = vadd.f32 1.0, %v403_v58  ;;  %v405_v63 = vpop.eup %404  ;;  %v594_v9 = vmul.f32 %v351_v26, %v47_v20  ;;  %v259_v58 = vmul.f32 %v511_v25, %v371_v13 }
  0x21   :  { %v549_v1 = vmul.f32 %v354_v54, %v60_v59  ;;  %418 = vlog2.f32 %v214_v60  ;;  %v248_v4 = vadd.f32 1.0, %v405_v63  ;;  %v407_v5 = vpop.eup %406  ;;  %v373_v59 = vsel %vm270_vm5, 1.0, %v448_v8 }
  0x22   :  { %420 = vlog2.f32 %v231_v61  ;;  %v409_v14 = vpop.eup %408  ;;  %v26_v32 = vmul.f32 2.0, %v407_v5  ;;  %v77_v51 = vmul.f32 0.5, %v594_v9  ;;  %v275_v60 = vmax.f32 %v517_v28, 0.0 }
  0x23   :  { %v125_v7 = vadd.f32 1e-07, %v549_v1  ;;  %422 = vpow2.f32 %v314_v62  ;;  %v411_v19 = vpop.eup %410  ;;  %v36_v35 = vmul.f32 2.0, %v409_v14  ;;  %v80_v54 = vmul.f32 0.5, %v549_v1 }
  0x24   :  { %424 = vlog2.f32 %v248_v4  ;;  %v413_v24 = vpop.eup %412  ;;  %v265_v10 = vadd.f32 1.0, %v411_v19  ;;  %v345_v50 = vadd.f32 -0.5, %v26_v32  ;;  %v260_v17 = vsub.f32 %v258_v57, %v259_v58 }
  0x25   :  { %426 = vrcp.f32 %v125_v7  ;;  %v415_v40 = vpop.eup %414  ;;  %v282_v42 = vadd.f32 1.0, %v413_v24  ;;  %v348_v53 = vadd.f32 -0.5, %v36_v35  ;;  %v276_v19 = vmul.f32 %v517_v28, %v373_v59 }
  0x26   :  { %428 = vlog2.f32 %v265_v10  ;;  %v299_v62 = vadd.f32 1.0, %v415_v40  ;;  %v608_v2 = vsub.f32 %v345_v50, %v77_v51  ;;  %v610_v4 = vadd.f32 %v345_v50, %v77_v51 }
  0x27   :  { %430 = vlog2.f32 %v282_v42  ;;  %v612_v11 = vsub.f32 %v348_v53, %v80_v54  ;;  %v614_v25 = vadd.f32 %v348_v53, %v80_v54  ;;  %v277_v35 = vsub.f32 %v275_v60, %v276_v19 }
  0x28   :  { %432 = vlog2.f32 %v299_v62  ;;  %v89_v24 = vmin.f32 %v610_v4, %v575_v22  ;;  %v90_v28 = vmax.f32 %v608_v2, %v568_v15  ;;  %v309_v42 = vmax.f32 %v530_v43, 0.0 }
  0x29   :  { %v93_v30 = vmin.f32 %v614_v25, %v596_v41  ;;  %v94_v31 = vmax.f32 %v612_v11, %v590_v36  ;;  %v98_v58 = vmul.f32 %v549_v1, %v594_v9 }
  0x2a   :  { %v417_v44 = vpop.eup %416 }
  0x2b   :  { %v419_v49 = vpop.eup %418  ;;  %v199_v5 = vmul.f32 0.6931472, %v417_v44  ;;  %v310_v44 = vmul.f32 %v530_v43, %v377_v29  ;;  %v95_v13 = vsub.f32 %v93_v30, %v94_v31  ;;  %v109_v29 = vmin.f32 %v612_v11, %v590_v36 }
  0x2c   :  { %v421_v18 = vpop.eup %420  ;;  %v216_v14 = vmul.f32 0.6931472, %v419_v49 }
  0x2d   :  { %v423_v56 = vpop.eup %422  ;;  %v233_v7 = vmul.f32 0.6931472, %v421_v18  ;;  %v200_v26 = vadd.f32 %v199_v5, %v192_v45  ;;  %v91_v45 = vsub.f32 %v89_v24, %v90_v28  ;;  %v311_v54 = vsub.f32 %v309_v42, %v310_v44  ;;  %v662_v28 = vld [vmem:[%s689_s0 + $0x20] sm:$0xff] }
  0x2e   :  { %v425_v61 = vpop.eup %424  ;;  %v316_v63 = vadd.f32 1.0, %v423_v56  ;;  %v217_v33 = vadd.f32 %v216_v14, %v209_v47  ;;  %v99_v47 = vmul.f32 %v557_v3, %v535_v46  ;;  %v96_v57 = vmax.f32 %v95_v13, 0.0 }
  0x2f   :  { %v427_v0 = vpop.eup %426  ;;  %v250_v16 = vmul.f32 0.6931472, %v425_v61  ;;  %v234_v27 = vadd.f32 %v233_v7, %v226_v52  ;;  %v294_v52 = vsub.f32 %v292_v23, %v293_v38  ;;  %v92_v56 = vmax.f32 %v91_v45, 0.0 }
  0x30   :  { %v617_v12 = vmul.f32 %v427_v0, %v594_v9  ;;  %434 = vlog2.f32 %v316_v63  ;;  %v429_v32 = vpop.eup %428  ;;  %v100_v0 = vadd.f32 %v99_v47, %v98_v58  ;;  %v105_v24 = vmax.f32 %v610_v4, %v575_v22 }
  0x31   :  { %v251_v34 = vadd.f32 %v250_v16, %v243_v55  ;;  %v431_v39 = vpop.eup %430  ;;  %v267_v40 = vmul.f32 0.6931472, %v429_v32  ;;  %v235_v48 = vadd.f32 %v234_v27, %v200_v26  ;;  %v97_v63 = vmul.f32 %v96_v57, %v92_v56 }
  0x32   :  { %v129_v20 = vmax.f32 %v617_v12, 1e-12  ;;  %v284_v10 = vmul.f32 0.6931472, %v431_v39  ;;  %v433_v18 = vpop.eup %432  ;;  %vm128_vm8 = vcmp.gt.f32.partialorder %v617_v12, 1.0  ;;  %v106_v26 = vmin.f32 %v608_v2, %v568_v15 }
  0x33   :  { %v268_v49 = vadd.f32 %v267_v40, %v260_v17  ;;  %v252_v50 = vadd.f32 %v251_v34, %v217_v33  ;;  %v301_v37 = vmul.f32 0.6931472, %v433_v18  ;;  %v101_v17 = vsub.f32 %v100_v0, %v97_v63 }
  0x34   :  { %436 = vrcp.f32 %v129_v20  ;;  %v285_v51 = vadd.f32 %v284_v10, %v277_v35  ;;  %v108_v27 = vmax.f32 %v614_v25, %v596_v41  ;;  %v176_v32 = vand.u32 2147483647, %v662_v28  ;;  %v359_v10 = vld [vmem:[%s690_s1 + $0x38] sm:$0xff] }
  0x35   :  { %v269_v53 = vadd.f32 %v268_v49, %v235_v48  ;;  %v302_v59 = vadd.f32 %v301_v37, %v294_v52  ;;  %v102_v20 = vadd.f32 1e-07, %v101_v17  ;;  %v107_v33 = vsub.f32 %v105_v24, %v106_v26 }
  0x36   :  { %v286_v43 = vadd.f32 %v285_v51, %v252_v50  ;;  %v110_v34 = vsub.f32 %v108_v27, %v109_v29  ;;  %v177_v39 = vsub.f32 0.0, %v176_v32  ;;  %v115_v42 = vadd.f32 %v575_v22, %v568_v15 }
  0x37   :  { %v303_v46 = vadd.f32 %v302_v59, %v269_v53  ;;  %438 = vrcp.f32 %v102_v20  ;;  %v111_v40 = vmul.f32 %v107_v33, %v107_v33  ;;  %v119_v44 = vadd.f32 %v596_v41, %v590_v36 }
  0x38   :  { %v112_v48 = vmul.f32 %v110_v34, %v110_v34  ;;  %v178_v50 = vmul.f32 1.442695, %v177_v39  ;;  %v116_v18 = vsub.f32 %v115_v42, %v608_v2 }
  0x39   :  { %v120_v47 = vsub.f32 %v119_v44, %v612_v11  ;;  %v158_v11 = vlaneseq }
  0x3a   :  { %v435_v55 = vpop.eup %434  ;;  %v113_v51 = vadd.f32 %v112_v48, %v111_v40  ;;  %440 = vpow2.f32 %v178_v50  ;;  %v117_v22 = vsub.f32 %v116_v18, %v610_v4 }
  0x3b   :  { %v318_v60 = vmul.f32 0.6931472, %v435_v55  ;;  %v121_v36 = vsub.f32 %v120_v47, %v614_v25  ;;  %v161_v25 = vand.u32 127, %v158_v11 }
  0x3d   :  { %v319_v3 = vadd.f32 %v318_v60, %v311_v54  ;;  %v114_v54 = vadd.f32 1e-07, %v113_v51  ;;  %v122_v56 = vmul.f32 %v121_v36, %v121_v36 }
  0x3e   :  { %v437_v61 = vpop.eup %436 }
  0x3f   :  { %v132_v62 = vsel %vm128_vm8, %v437_v61, %v617_v12  ;;  %v320_v7 = vadd.f32 %v319_v3, %v286_v43  ;;  %442 = vrcp.f32 %v114_v54  ;;  %v118_v12 = vmul.f32 %v117_v22, %v117_v22 }
  0x40   :  { %v133_v5 = vmul.f32 %v132_v62, %v132_v62 }
  0x41   :  { %v321_v16 = vadd.f32 %v320_v7, %v303_v46  ;;  %v439_v13 = vpop.eup %438  ;;  %v123_v58 = vadd.f32 %v122_v56, %v118_v12  ;;  %v159_v46 = vshrl.u32 %v158_v11, 7 }
  0x42   :  { %v134_v14 = vmul.f32 0.0208351, %v133_v5  ;;  %v104_v53 = vmul.f32 %v439_v13, %v97_v63 }
  0x43   :  { %v322_v9 = vmul.f32 %v479_v6, %v321_v16  ;;  %v124_v43 = vmul.f32 0.25, %v123_v58  ;;  %v162_v63 = vmul.u32 128, %v159_v46 }
  0x44   :  { %v135_v1 = vadd.f32 -0.085133, %v134_v14  ;;  %v441_v57 = vpop.eup %440 }
  0x45   :  { %384 = vst [vmem:[%s691_s2 + $0x18] sm:$0xff] %v322_v9  ;;  %v180_v2 = vadd.f32 1.0, %v441_v57  ;;  %v165_v14 = vadd.s32 %v162_v63, %v161_v25  ;;  %v173_v9 = vmax.f32 %v662_v28, 0.0 }
  0x46   :  { %v136_v19 = vmul.f32 %v135_v1, %v133_v5 }
  0x47   :  { %vm166_vm9 = vcmp.lt.s32.totalorder %v165_v14, 384 }
  0x48   :  { %v137_v21 = vadd.f32 0.180141, %v136_v19 }
  0x49   :  { %v443_v59 = vpop.eup %442 }
  0x4a   :  { %v138_v23 = vmul.f32 %v137_v21, %v133_v5 }
  0x4c   :  { %v139_v30 = vadd.f32 -0.3302995, %v138_v23  ;;  %v361_v23 = vsel %vm166_vm9, 1.0, %v448_v8 }
  0x4e   :  { %v140_v31 = vmul.f32 %v139_v30, %v133_v5 }
  0x50   :  { %v141_v35 = vadd.f32 0.999866, %v140_v31 }
  0x52   :  { %v142_v38 = vmul.f32 %v141_v35, %v132_v62  ;;  %v153_v62 = vmul.f32 %v443_v59, %v124_v43 }
  0x54   :  { %v143_v45 = vsub.f32 1.5707964, %v142_v38 }
  0x56   :  { %v144_v49 = vsel %vm128_vm8, %v143_v45, %v142_v38 }
  0x57   :  { %v145_v52 = vsub.f32 %v359_v10, %v144_v49 }
  0x59   :  { %v146_v37 = vmul.f32 %v145_v52, %v145_v52 }
  0x5b   :  { %v147_v15 = vmul.f32 0.40528473, %v146_v37 }
  0x5d   :  { %v148_v41 = vsub.f32 %v147_v15, %v104_v53 }
  0x5f   :  { %v149_v55 = vadd.f32 1.0000001, %v148_v41 }
  0x61   :  { %444 = vrcp.f32 %v149_v55 }
  0x62   :  { %446 = vlog2.f32 %v180_v2 }
  0x6b   :  { %v445_v60 = vpop.eup %444 }
  0x6c   :  { %v151_v61 = vmul.f32 %v445_v60, %v147_v15  ;;  %v447_v16 = vpop.eup %446 }
  0x6d   :  { %v182_v20 = vmul.f32 0.6931472, %v447_v16 }
  0x6e   :  { %v154_v4 = vmul.f32 %v151_v61, %v147_v15 }
  0x70   :  { %v155_v3 = vadd.f32 %v154_v4, %v153_v62 }
  0x72   :  { %v156_v0 = vsub.f32 %v104_v53, %v155_v3 }
  0x74   :  { %v169_v5 = vmax.f32 %v156_v0, 0.0  ;;  %v324_v7 = vsub.f32 1.0, %v156_v0 }
  0x76   :  { %v325_v17 = vmul.f32 %v479_v6, %v324_v7  ;;  %v170_v1 = vmul.f32 %v479_v6, %v169_v5 }
  0x78   :  { %v174_v19 = vmul.f32 %v662_v28, %v170_v1  ;;  %327 = vst [vmem:[%s691_s2] sm:$0xff] %v325_v17 }
  0x7a   :  { %v175_v21 = vsub.f32 %v173_v9, %v174_v19 }
  0x7c   :  { %v183_v24 = vadd.f32 %v182_v20, %v175_v21 }
  0x7e   :  { %v184_v26 = vmul.f32 %v361_v23, %v183_v24 }
  0x80   :  { %382 = vst [vmem:[%s691_s2 + $0x10] sm:$0xff] %v184_v26 }

// kernel: yolop_loss_forward.7
= control target key start
LH: loop header
LB: loop body
LE: loop exit
PB: predicated region body
PF: predicated region fallthrough
CT: control target
= control target key end

     0   :  { %s298_s0 = inlined_call_operand.vmem [shape: f32[32,128], index: 0, kind: input, shape index: {}]   ;;  %s299_s2 = inlined_call_operand.vmem [shape: f32[32,128], index: 2, kind: input, shape index: {}]   ;;  %s300_s1 = inlined_call_operand.vmem [shape: f32[32,128], index: 1, kind: input, shape index: {}]   ;;  %s301_s3 = inlined_call_operand.vmem [shape: f32[32,128], index: 3, kind: input, shape index: {}]   ;;  %s302_s4 = inlined_call_operand.vmem [shape: f32[2,8,128], index: 4, kind: output, shape index: {}]  }
   0x1   :  { %v207_v0 = vld [vmem:[%s298_s0] sm:$0xff]  ;;  %v212_v1 = vld [vmem:[%s298_s0 + $0x8] sm:$0xff]  ;;  %v217_v2 = vld [vmem:[%s298_s0 + $0x10] sm:$0xff] }
   0x2   :  { %v222_v3 = vld [vmem:[%s298_s0 + $0x18] sm:$0xff]  ;;  %v44_v4 = vand.u32 2147483647, %v207_v0  ;;  %v45_v5 = vand.u32 2147483647, %v212_v1  ;;  %v231_v13 = vld [vmem:[%s299_s2] sm:$0xff] }
   0x3   :  { %v46_v6 = vand.u32 2147483647, %v217_v2  ;;  %v47_v7 = vand.u32 2147483647, %v222_v3  ;;  %v236_v16 = vld [vmem:[%s299_s2 + $0x8] sm:$0xff]  ;;  %v241_v18 = vld [vmem:[%s299_s2 + $0x10] sm:$0xff] }
   0x4   :  { %v48_v8 = vsub.f32 0.0, %v44_v4  ;;  %v49_v9 = vsub.f32 0.0, %v45_v5  ;;  %v246_v19 = vld [vmem:[%s299_s2 + $0x18] sm:$0xff]  ;;  %v103_v20 = vand.u32 2147483647, %v231_v13  ;;  %v28_v40 = vld [vmem:[%s300_s1] sm:$0xff] }
   0x5   :  { %v50_v10 = vsub.f32 0.0, %v46_v6  ;;  %v51_v11 = vsub.f32 0.0, %v47_v7  ;;  %v104_v21 = vand.u32 2147483647, %v236_v16  ;;  %v105_v22 = vand.u32 2147483647, %v241_v18 }
   0x6   :  { %v52_v12 = vmul.f32 1.442695, %v48_v8  ;;  %v54_v14 = vmul.f32 1.442695, %v49_v9  ;;  %v106_v23 = vand.u32 2147483647, %v246_v19  ;;  %v36_v46 = vmul.f32 %v28_v40, %v207_v0 }
   0x7   :  { %v56_v15 = vmul.f32 1.442695, %v50_v10  ;;  %v58_v17 = vmul.f32 1.442695, %v51_v11  ;;  %v107_v24 = vsub.f32 0.0, %v103_v20  ;;  %v108_v25 = vsub.f32 0.0, %v104_v21 }
   0x8   :  { %147 = vpow2.f32 %v52_v12  ;;  %v109_v26 = vsub.f32 0.0, %v105_v22  ;;  %v110_v27 = vsub.f32 0.0, %v106_v23  ;;  %v29_v41 = vld [vmem:[%s300_s1 + $0x8] sm:$0xff]  ;;  %v30_v42 = vld [vmem:[%s300_s1 + $0x10] sm:$0xff]  ;;  %v31_v44 = vld [vmem:[%s300_s1 + $0x18] sm:$0xff]  ;;  %v32_v45 = vmax.f32 %v207_v0, 0.0 }
   0x9   :  { %149 = vpow2.f32 %v54_v14  ;;  %v111_v28 = vmul.f32 1.442695, %v107_v24  ;;  %v113_v29 = vmul.f32 1.442695, %v108_v25  ;;  %v33_v48 = vmax.f32 %v212_v1, 0.0  ;;  %v87_v63 = vld [vmem:[%s301_s3] sm:$0xff] }
   0xa   :  { %151 = vpow2.f32 %v56_v15  ;;  %v115_v30 = vmul.f32 1.442695, %v109_v26  ;;  %v117_v31 = vmul.f32 1.442695, %v110_v27  ;;  %v37_v49 = vmul.f32 %v29_v41, %v212_v1  ;;  %v88_v4 = vld [vmem:[%s301_s3 + $0x8] sm:$0xff]  ;;  %v89_v7 = vld [vmem:[%s301_s3 + $0x10] sm:$0xff] }
   0xb   :  { %153 = vpow2.f32 %v58_v17  ;;  %v34_v52 = vmax.f32 %v217_v2, 0.0  ;;  %v38_v53 = vmul.f32 %v30_v42, %v217_v2  ;;  %v35_v56 = vmax.f32 %v222_v3, 0.0  ;;  %v90_v11 = vld [vmem:[%s301_s3 + $0x18] sm:$0xff] }
   0xc   :  { %155 = vpow2.f32 %v111_v28  ;;  %v39_v57 = vmul.f32 %v31_v44, %v222_v3  ;;  %v40_v59 = vsub.f32 %v32_v45, %v36_v46  ;;  %v41_v62 = vsub.f32 %v33_v48, %v37_v49 }
   0xd   :  { %157 = vpow2.f32 %v113_v29  ;;  %v42_v1 = vsub.f32 %v34_v52, %v38_v53  ;;  %v91_v12 = vmax.f32 %v231_v13, 0.0  ;;  %v95_v14 = vmul.f32 %v87_v63, %v231_v13 }
   0xe   :  { %159 = vpow2.f32 %v115_v30  ;;  %v43_v5 = vsub.f32 %v35_v56, %v39_v57  ;;  %v92_v20 = vmax.f32 %v236_v16, 0.0  ;;  %v96_v21 = vmul.f32 %v88_v4, %v236_v16 }
   0xf   :  { %161 = vpow2.f32 %v117_v31  ;;  %v93_v23 = vmax.f32 %v241_v18, 0.0  ;;  %v97_v24 = vmul.f32 %v89_v7, %v241_v18  ;;  %v94_v27 = vmax.f32 %v246_v19, 0.0 }
  0x10   :  { %v98_v28 = vmul.f32 %v90_v11, %v246_v19  ;;  %v99_v29 = vsub.f32 %v91_v12, %v95_v14  ;;  %v100_v31 = vsub.f32 %v92_v20, %v96_v21 }
  0x12   :  { %v148_v32 = vpop.eup %147 }
  0x13   :  { %v150_v33 = vpop.eup %149  ;;  %v60_v34 = vadd.f32 1.0, %v148_v32 }
  0x14   :  { %v152_v35 = vpop.eup %151  ;;  %v61_v36 = vadd.f32 1.0, %v150_v33  ;;  %v101_v33 = vsub.f32 %v93_v23, %v97_v24 }
  0x15   :  { %v154_v37 = vpop.eup %153  ;;  %v62_v38 = vadd.f32 1.0, %v152_v35  ;;  %163 = vlog2.f32 %v60_v34 }
  0x16   :  { %v63_v39 = vadd.f32 1.0, %v154_v37  ;;  %165 = vlog2.f32 %v61_v36  ;;  %v156_v43 = vpop.eup %155  ;;  %v102_v36 = vsub.f32 %v94_v27, %v98_v28 }
  0x17   :  { %167 = vlog2.f32 %v62_v38  ;;  %v158_v47 = vpop.eup %157  ;;  %v119_v50 = vadd.f32 1.0, %v156_v43 }
  0x18   :  { %169 = vlog2.f32 %v63_v39  ;;  %v160_v51 = vpop.eup %159  ;;  %v120_v54 = vadd.f32 1.0, %v158_v47 }
  0x19   :  { %v162_v55 = vpop.eup %161  ;;  %v121_v58 = vadd.f32 1.0, %v160_v51  ;;  %171 = vlog2.f32 %v119_v50 }
  0x1a   :  { %v122_v60 = vadd.f32 1.0, %v162_v55  ;;  %173 = vlog2.f32 %v120_v54 }
  0x1b   :  { %175 = vlog2.f32 %v121_v58 }
  0x1c   :  { %177 = vlog2.f32 %v122_v60 }
  0x1f   :  { %v164_v61 = vpop.eup %163 }
  0x20   :  { %v166_v0 = vpop.eup %165  ;;  %v65_v2 = vmul.f32 0.6931472, %v164_v61 }
  0x21   :  { %v168_v3 = vpop.eup %167  ;;  %v67_v6 = vmul.f32 0.6931472, %v166_v0 }
  0x22   :  { %v170_v8 = vpop.eup %169  ;;  %v69_v9 = vmul.f32 0.6931472, %v168_v3  ;;  %v72_v10 = vadd.f32 %v65_v2, %v40_v59 }
  0x23   :  { %v71_v15 = vmul.f32 0.6931472, %v170_v8  ;;  %v73_v17 = vadd.f32 %v67_v6, %v41_v62  ;;  %v172_v30 = vpop.eup %171 }
  0x24   :  { %v74_v22 = vadd.f32 %v69_v9, %v42_v1  ;;  %v174_v32 = vpop.eup %173  ;;  %v124_v34 = vmul.f32 0.6931472, %v172_v30 }
  0x25   :  { %v75_v25 = vadd.f32 %v71_v15, %v43_v5  ;;  %v76_v26 = vadd.f32 %v73_v17, %v72_v10  ;;  %v176_v35 = vpop.eup %175  ;;  %v126_v37 = vmul.f32 0.6931472, %v174_v32 }
  0x26   :  { %v178_v38 = vpop.eup %177  ;;  %v128_v39 = vmul.f32 0.6931472, %v176_v35  ;;  %v131_v18 = vadd.f32 %v124_v34, %v99_v29 }
  0x27   :  { %v77_v13 = vadd.f32 %v76_v26, %v74_v22  ;;  %v130_v40 = vmul.f32 0.6931472, %v178_v38  ;;  %v132_v41 = vadd.f32 %v126_v37, %v100_v31 }
  0x28   :  { %v133_v42 = vadd.f32 %v128_v39, %v101_v33 }
  0x29   :  { %v78_v16 = vadd.f32 %v77_v13, %v75_v25  ;;  %v134_v19 = vadd.f32 %v130_v40, %v102_v36  ;;  %v135_v43 = vadd.f32 %v132_v41, %v131_v18 }
  0x2b   :  { %80 = vst [vmem:[%s302_s4] sm:$0xff] %v78_v16  ;;  %v136_v44 = vadd.f32 %v135_v43, %v133_v42 }
  0x2d   :  { %v137_v45 = vadd.f32 %v136_v44, %v134_v19 }
  0x2f   :  { %145 = vst [vmem:[%s302_s4 + $0x8] sm:$0xff] %v137_v45 }

// kernel: yolop_loss_forward.6
= control target key start
LH: loop header
LB: loop body
LE: loop exit
PB: predicated region body
PF: predicated region fallthrough
CT: control target
= control target key end

     0   :  { %s689_s0 = inlined_call_operand.vmem [shape: f32[13,8,128], index: 0, kind: input, shape index: {}]   ;;  %s690_s1 = inlined_call_operand.vmem [shape: f32[9,8,128], index: 1, kind: input, shape index: {}]   ;;  %s691_s2 = inlined_call_operand.vmem [shape: f32[4,8,128], index: 2, kind: output, shape index: {}]  }
   0x1   :  { %v349_v0 = vld [vmem:[%s689_s0 + $0x10] sm:$0xff]  ;;  %v19_v2 = vld [vmem:[%s689_s0] sm:$0xff]  ;;  %v352_v3 = vld [vmem:[%s689_s0 + $0x18] sm:$0xff] }
   0x2   :  { %v350_v1 = vmul.f32 -1.442695, %v349_v0  ;;  %v346_v4 = vld [vmem:[%s689_s0 + $0x8] sm:$0xff]  ;;  %v353_v5 = vmul.f32 -1.442695, %v352_v3  ;;  %v479_v6 = vld [vmem:[%s690_s1 + $0x30] sm:$0xff] }
   0x3   :  { %v344_v7 = vmul.f32 -1.442695, %v19_v2  ;;  %v347_v8 = vmul.f32 -1.442695, %v346_v4  ;;  %380 = vst [vmem:[%s691_s2 + $0x8] sm:$0xff] %v479_v6  ;;  %v488_v9 = vld [vmem:[%s689_s0 + $0x28] sm:$0xff] }
   0x4   :  { %386 = vpow2.f32 %v350_v1  ;;  %v493_v10 = vld [vmem:[%s689_s0 + $0x30] sm:$0xff]  ;;  %v193_v11 = vand.u32 2147483647, %v488_v9  ;;  %v500_v13 = vld [vmem:[%s689_s0 + $0x38] sm:$0xff]  ;;  %v506_v18 = vld [vmem:[%s689_s0 + $0x40] sm:$0xff] }
   0x5   :  { %388 = vpow2.f32 %v353_v5  ;;  %v210_v12 = vand.u32 2147483647, %v493_v10  ;;  %v227_v16 = vand.u32 2147483647, %v500_v13  ;;  %v511_v25 = vld [vmem:[%s689_s0 + $0x48] sm:$0xff]  ;;  %v517_v28 = vld [vmem:[%s689_s0 + $0x50] sm:$0xff] }
   0x6   :  { %390 = vpow2.f32 %v344_v7  ;;  %v194_v14 = vsub.f32 0.0, %v193_v11  ;;  %v244_v27 = vand.u32 2147483647, %v506_v18  ;;  %v261_v32 = vand.u32 2147483647, %v511_v25  ;;  %v524_v37 = vld [vmem:[%s689_s0 + $0x58] sm:$0xff] }
   0x7   :  { %392 = vpow2.f32 %v347_v8  ;;  %v211_v15 = vsub.f32 0.0, %v210_v12  ;;  %v228_v22 = vsub.f32 0.0, %v227_v16  ;;  %v278_v33 = vand.u32 2147483647, %v517_v28  ;;  %v530_v43 = vld [vmem:[%s689_s0 + $0x60] sm:$0xff]  ;;  %v535_v46 = vld [vmem:[%s690_s1 + $0x10] sm:$0xff] }
   0x8   :  { %v195_v21 = vmul.f32 1.442695, %v194_v14  ;;  %v245_v31 = vsub.f32 0.0, %v244_v27  ;;  %v262_v36 = vsub.f32 0.0, %v261_v32  ;;  %v295_v42 = vand.u32 2147483647, %v524_v37 }
   0x9   :  { %v212_v24 = vmul.f32 1.442695, %v211_v15  ;;  %v229_v26 = vmul.f32 1.442695, %v228_v22  ;;  %v279_v39 = vsub.f32 0.0, %v278_v33  ;;  %v540_v48 = vld [vmem:[%s690_s1 + $0x40] sm:$0xff] }
   0xa   :  { %v246_v35 = vmul.f32 1.442695, %v245_v31  ;;  %v263_v40 = vmul.f32 1.442695, %v262_v36  ;;  %v296_v44 = vsub.f32 0.0, %v295_v42  ;;  %v354_v54 = vld [vmem:[%s690_s1 + $0x28] sm:$0xff] }
   0xb   :  { %v280_v41 = vmul.f32 1.442695, %v279_v39  ;;  %v312_v50 = vand.u32 2147483647, %v530_v43  ;;  %v83_v55 = vmul.f32 0.5, %v535_v46  ;;  %vm185_vm0 = vcmp.eq.f32.partialorder %v540_v48, 0.0 }
   0xc   :  { %v297_v49 = vmul.f32 1.442695, %v296_v44  ;;  %vm202_vm1 = vcmp.eq.f32.partialorder %v540_v48, 1.0  ;;  %v64_v2 = vld [vmem:[%s690_s1] sm:$0xff]  ;;  %v557_v3 = vld [vmem:[%s690_s1 + $0x18] sm:$0xff]  ;;  %vm219_vm2 = vcmp.eq.f32.partialorder %v540_v48, 2.0 }
   0xd   :  { %v313_v57 = vsub.f32 0.0, %v312_v50  ;;  %vm236_vm3 = vcmp.eq.f32.partialorder %v540_v48, 3.0  ;;  %v448_v8 = vmov 0.0   ;;  %v568_v15 = vsub.f32 %v64_v2, %v83_v55 }
   0xe   :  { %v387_v17 = vpop.eup %386  ;;  %v363_v11 = vsel %vm185_vm0, 1.0, %v448_v8  ;;  %v365_v12 = vsel %vm202_vm1, 1.0, %v448_v8  ;;  %v86_v16 = vmul.f32 0.5, %v557_v3  ;;  %v575_v22 = vadd.f32 %v83_v55, %v64_v2 }
   0xf   :  { %v389_v19 = vpop.eup %388  ;;  %v43_v20 = vadd.f32 1.0, %v387_v17  ;;  %v314_v62 = vmul.f32 1.442695, %v313_v57  ;;  %v367_v17 = vsel %vm219_vm2, 1.0, %v448_v8  ;;  %v190_v27 = vmax.f32 %v488_v9, 0.0 }
  0x10   :  { %v56_v23 = vadd.f32 1.0, %v389_v19  ;;  %v391_v29 = vpop.eup %390  ;;  %v208_v31 = vmul.f32 %v493_v10, %v365_v12  ;;  %v224_v33 = vmax.f32 %v500_v13, 0.0  ;;  %vm253_vm4 = vcmp.eq.f32.partialorder %v540_v48, 4.0 }
  0x11   :  { %394 = vrcp.f32 %v43_v20  ;;  %v393_v30 = vpop.eup %392  ;;  %v23_v34 = vadd.f32 1.0, %v391_v29  ;;  %v191_v29 = vmul.f32 %v488_v9, %v363_v11  ;;  %vm270_vm5 = vcmp.eq.f32.partialorder %v540_v48, 5.0 }
  0x12   :  { %396 = vrcp.f32 %v56_v23  ;;  %v33_v38 = vadd.f32 1.0, %v393_v30  ;;  %v369_v23 = vsel %vm236_vm3, 1.0, %v448_v8  ;;  %v207_v30 = vmax.f32 %v493_v10, 0.0 }
  0x13   :  { %398 = vpow2.f32 %v195_v21  ;;  %v355_v21 = vld [vmem:[%s690_s1 + $0x8] sm:$0xff]  ;;  %v242_v39 = vmul.f32 %v506_v18, %v369_v23  ;;  %v258_v57 = vmax.f32 %v511_v25, 0.0  ;;  %vm287_vm6 = vcmp.eq.f32.partialorder %v540_v48, 6.0 }
  0x14   :  { %400 = vpow2.f32 %v212_v24  ;;  %v590_v36 = vsub.f32 %v355_v21, %v86_v16  ;;  %vm304_vm7 = vcmp.eq.f32.partialorder %v540_v48, 7.0  ;;  %v292_v23 = vmax.f32 %v524_v37, 0.0 }
  0x15   :  { %402 = vpow2.f32 %v229_v26  ;;  %v351_v26 = vld [vmem:[%s690_s1 + $0x20] sm:$0xff] }
  0x16   :  { %404 = vpow2.f32 %v246_v35 }
  0x17   :  { %406 = vrcp.f32 %v23_v34  ;;  %v225_v34 = vmul.f32 %v500_v13, %v367_v17  ;;  %v371_v13 = vsel %vm253_vm4, 1.0, %v448_v8 }
  0x18   :  { %408 = vrcp.f32 %v33_v38  ;;  %v241_v38 = vmax.f32 %v506_v18, 0.0 }
  0x19   :  { %410 = vpow2.f32 %v263_v40 }
  0x1a   :  { %412 = vpow2.f32 %v280_v41  ;;  %v596_v41 = vadd.f32 %v355_v21, %v86_v16  ;;  %v243_v55 = vsub.f32 %v241_v38, %v242_v39  ;;  %v375_v21 = vsel %vm287_vm6, 1.0, %v448_v8 }
  0x1b   :  { %v395_v45 = vpop.eup %394  ;;  %414 = vpow2.f32 %v297_v49  ;;  %v293_v38 = vmul.f32 %v524_v37, %v375_v21 }
  0x1c   :  { %v397_v47 = vpop.eup %396  ;;  %v46_v0 = vmul.f32 2.0, %v395_v45  ;;  %v192_v45 = vsub.f32 %v190_v27, %v191_v29  ;;  %v377_v29 = vsel %vm304_vm7, 1.0, %v448_v8 }
  0x1d   :  { %v399_v51 = vpop.eup %398  ;;  %v59_v52 = vmul.f32 2.0, %v397_v47  ;;  %v209_v47 = vsub.f32 %v207_v30, %v208_v31 }
  0x1e   :  { %v401_v53 = vpop.eup %400  ;;  %v197_v56 = vadd.f32 1.0, %v399_v51  ;;  %v47_v20 = vmul.f32 %v46_v0, %v46_v0 }
  0x1f   :  { %v403_v58 = vpop.eup %402  ;;  %v60_v59 = vmul.f32 %v59_v52, %v59_v52  ;;  %v214_v60 = vadd.f32 1.0, %v401_v53  ;;  %v226_v52 = vsub.f32 %v224_v33, %v225_v34 }
  0x20   :  { %416 = vlog2.f32 %v197_v56  ;;  %v231_v61 = vadd.f32 1.0, %v403_v58  ;;  %v405_v63 = vpop.eup %404  ;;  %v594_v9 = vmul.f32 %v351_v26, %v47_v20  ;;  %v259_v58 = vmul.f32 %v511_v25, %v371_v13 }
  0x21   :  { %v549_v1 = vmul.f32 %v354_v54, %v60_v59  ;;  %418 = vlog2.f32 %v214_v60  ;;  %v248_v4 = vadd.f32 1.0, %v405_v63  ;;  %v407_v5 = vpop.eup %406  ;;  %v373_v59 = vsel %vm270_vm5, 1.0, %v448_v8 }
  0x22   :  { %420 = vlog2.f32 %v231_v61  ;;  %v409_v14 = vpop.eup %408  ;;  %v26_v32 = vmul.f32 2.0, %v407_v5  ;;  %v77_v51 = vmul.f32 0.5, %v594_v9  ;;  %v275_v60 = vmax.f32 %v517_v28, 0.0 }
  0x23   :  { %v125_v7 = vadd.f32 1e-07, %v549_v1  ;;  %422 = vpow2.f32 %v314_v62  ;;  %v411_v19 = vpop.eup %410  ;;  %v36_v35 = vmul.f32 2.0, %v409_v14  ;;  %v80_v54 = vmul.f32 0.5, %v549_v1 }
  0x24   :  { %424 = vlog2.f32 %v248_v4  ;;  %v413_v24 = vpop.eup %412  ;;  %v265_v10 = vadd.f32 1.0, %v411_v19  ;;  %v345_v50 = vadd.f32 -0.5, %v26_v32  ;;  %v260_v17 = vsub.f32 %v258_v57, %v259_v58 }
  0x25   :  { %426 = vrcp.f32 %v125_v7  ;;  %v415_v40 = vpop.eup %414  ;;  %v282_v42 = vadd.f32 1.0, %v413_v24  ;;  %v348_v53 = vadd.f32 -0.5, %v36_v35  ;;  %v276_v19 = vmul.f32 %v517_v28, %v373_v59 }
  0x26   :  { %428 = vlog2.f32 %v265_v10  ;;  %v299_v62 = vadd.f32 1.0, %v415_v40  ;;  %v608_v2 = vsub.f32 %v345_v50, %v77_v51  ;;  %v610_v4 = vadd.f32 %v345_v50, %v77_v51 }
  0x27   :  { %430 = vlog2.f32 %v282_v42  ;;  %v612_v11 = vsub.f32 %v348_v53, %v80_v54  ;;  %v614_v25 = vadd.f32 %v348_v53, %v80_v54  ;;  %v277_v35 = vsub.f32 %v275_v60, %v276_v19 }
  0x28   :  { %432 = vlog2.f32 %v299_v62  ;;  %v89_v24 = vmin.f32 %v610_v4, %v575_v22  ;;  %v90_v28 = vmax.f32 %v608_v2, %v568_v15  ;;  %v309_v42 = vmax.f32 %v530_v43, 0.0 }
  0x29   :  { %v93_v30 = vmin.f32 %v614_v25, %v596_v41  ;;  %v94_v31 = vmax.f32 %v612_v11, %v590_v36  ;;  %v98_v58 = vmul.f32 %v549_v1, %v594_v9 }
  0x2a   :  { %v417_v44 = vpop.eup %416 }
  0x2b   :  { %v419_v49 = vpop.eup %418  ;;  %v199_v5 = vmul.f32 0.6931472, %v417_v44  ;;  %v310_v44 = vmul.f32 %v530_v43, %v377_v29  ;;  %v95_v13 = vsub.f32 %v93_v30, %v94_v31  ;;  %v109_v29 = vmin.f32 %v612_v11, %v590_v36 }
  0x2c   :  { %v421_v18 = vpop.eup %420  ;;  %v216_v14 = vmul.f32 0.6931472, %v419_v49 }
  0x2d   :  { %v423_v56 = vpop.eup %422  ;;  %v233_v7 = vmul.f32 0.6931472, %v421_v18  ;;  %v200_v26 = vadd.f32 %v199_v5, %v192_v45  ;;  %v91_v45 = vsub.f32 %v89_v24, %v90_v28  ;;  %v311_v54 = vsub.f32 %v309_v42, %v310_v44  ;;  %v662_v28 = vld [vmem:[%s689_s0 + $0x20] sm:$0xff] }
  0x2e   :  { %v425_v61 = vpop.eup %424  ;;  %v316_v63 = vadd.f32 1.0, %v423_v56  ;;  %v217_v33 = vadd.f32 %v216_v14, %v209_v47  ;;  %v99_v47 = vmul.f32 %v557_v3, %v535_v46  ;;  %v96_v57 = vmax.f32 %v95_v13, 0.0 }
  0x2f   :  { %v427_v0 = vpop.eup %426  ;;  %v250_v16 = vmul.f32 0.6931472, %v425_v61  ;;  %v234_v27 = vadd.f32 %v233_v7, %v226_v52  ;;  %v294_v52 = vsub.f32 %v292_v23, %v293_v38  ;;  %v92_v56 = vmax.f32 %v91_v45, 0.0 }
  0x30   :  { %v617_v12 = vmul.f32 %v427_v0, %v594_v9  ;;  %434 = vlog2.f32 %v316_v63  ;;  %v429_v32 = vpop.eup %428  ;;  %v100_v0 = vadd.f32 %v99_v47, %v98_v58  ;;  %v105_v24 = vmax.f32 %v610_v4, %v575_v22 }
  0x31   :  { %v251_v34 = vadd.f32 %v250_v16, %v243_v55  ;;  %v431_v39 = vpop.eup %430  ;;  %v267_v40 = vmul.f32 0.6931472, %v429_v32  ;;  %v235_v48 = vadd.f32 %v234_v27, %v200_v26  ;;  %v97_v63 = vmul.f32 %v96_v57, %v92_v56 }
  0x32   :  { %v129_v20 = vmax.f32 %v617_v12, 1e-12  ;;  %v284_v10 = vmul.f32 0.6931472, %v431_v39  ;;  %v433_v18 = vpop.eup %432  ;;  %vm128_vm8 = vcmp.gt.f32.partialorder %v617_v12, 1.0  ;;  %v106_v26 = vmin.f32 %v608_v2, %v568_v15 }
  0x33   :  { %v268_v49 = vadd.f32 %v267_v40, %v260_v17  ;;  %v252_v50 = vadd.f32 %v251_v34, %v217_v33  ;;  %v301_v37 = vmul.f32 0.6931472, %v433_v18  ;;  %v101_v17 = vsub.f32 %v100_v0, %v97_v63 }
  0x34   :  { %436 = vrcp.f32 %v129_v20  ;;  %v285_v51 = vadd.f32 %v284_v10, %v277_v35  ;;  %v108_v27 = vmax.f32 %v614_v25, %v596_v41  ;;  %v176_v32 = vand.u32 2147483647, %v662_v28  ;;  %v359_v10 = vld [vmem:[%s690_s1 + $0x38] sm:$0xff] }
  0x35   :  { %v269_v53 = vadd.f32 %v268_v49, %v235_v48  ;;  %v302_v59 = vadd.f32 %v301_v37, %v294_v52  ;;  %v102_v20 = vadd.f32 1e-07, %v101_v17  ;;  %v107_v33 = vsub.f32 %v105_v24, %v106_v26 }
  0x36   :  { %v286_v43 = vadd.f32 %v285_v51, %v252_v50  ;;  %v110_v34 = vsub.f32 %v108_v27, %v109_v29  ;;  %v177_v39 = vsub.f32 0.0, %v176_v32  ;;  %v115_v42 = vadd.f32 %v575_v22, %v568_v15 }
  0x37   :  { %v303_v46 = vadd.f32 %v302_v59, %v269_v53  ;;  %438 = vrcp.f32 %v102_v20  ;;  %v111_v40 = vmul.f32 %v107_v33, %v107_v33  ;;  %v119_v44 = vadd.f32 %v596_v41, %v590_v36 }
  0x38   :  { %v112_v48 = vmul.f32 %v110_v34, %v110_v34  ;;  %v178_v50 = vmul.f32 1.442695, %v177_v39  ;;  %v116_v18 = vsub.f32 %v115_v42, %v608_v2 }
  0x39   :  { %v120_v47 = vsub.f32 %v119_v44, %v612_v11  ;;  %v158_v11 = vlaneseq }
  0x3a   :  { %v435_v55 = vpop.eup %434  ;;  %v113_v51 = vadd.f32 %v112_v48, %v111_v40  ;;  %440 = vpow2.f32 %v178_v50  ;;  %v117_v22 = vsub.f32 %v116_v18, %v610_v4 }
  0x3b   :  { %v318_v60 = vmul.f32 0.6931472, %v435_v55  ;;  %v121_v36 = vsub.f32 %v120_v47, %v614_v25  ;;  %v161_v25 = vand.u32 127, %v158_v11 }
  0x3d   :  { %v319_v3 = vadd.f32 %v318_v60, %v311_v54  ;;  %v114_v54 = vadd.f32 1e-07, %v113_v51  ;;  %v122_v56 = vmul.f32 %v121_v36, %v121_v36 }
  0x3e   :  { %v437_v61 = vpop.eup %436 }
  0x3f   :  { %v132_v62 = vsel %vm128_vm8, %v437_v61, %v617_v12  ;;  %v320_v7 = vadd.f32 %v319_v3, %v286_v43  ;;  %442 = vrcp.f32 %v114_v54  ;;  %v118_v12 = vmul.f32 %v117_v22, %v117_v22 }
  0x40   :  { %v133_v5 = vmul.f32 %v132_v62, %v132_v62 }
  0x41   :  { %v321_v16 = vadd.f32 %v320_v7, %v303_v46  ;;  %v439_v13 = vpop.eup %438  ;;  %v123_v58 = vadd.f32 %v122_v56, %v118_v12  ;;  %v159_v46 = vshrl.u32 %v158_v11, 7 }
  0x42   :  { %v134_v14 = vmul.f32 0.0208351, %v133_v5  ;;  %v104_v53 = vmul.f32 %v439_v13, %v97_v63 }
  0x43   :  { %v322_v9 = vmul.f32 %v479_v6, %v321_v16  ;;  %v124_v43 = vmul.f32 0.25, %v123_v58  ;;  %v162_v63 = vmul.u32 128, %v159_v46 }
  0x44   :  { %v135_v1 = vadd.f32 -0.085133, %v134_v14  ;;  %v441_v57 = vpop.eup %440 }
  0x45   :  { %384 = vst [vmem:[%s691_s2 + $0x18] sm:$0xff] %v322_v9  ;;  %v180_v2 = vadd.f32 1.0, %v441_v57  ;;  %v165_v14 = vadd.s32 %v162_v63, %v161_v25  ;;  %v173_v9 = vmax.f32 %v662_v28, 0.0 }
  0x46   :  { %v136_v19 = vmul.f32 %v135_v1, %v133_v5 }
  0x47   :  { %vm166_vm9 = vcmp.lt.s32.totalorder %v165_v14, 96 }
  0x48   :  { %v137_v21 = vadd.f32 0.180141, %v136_v19 }
  0x49   :  { %v443_v59 = vpop.eup %442 }
  0x4a   :  { %v138_v23 = vmul.f32 %v137_v21, %v133_v5 }
  0x4c   :  { %v139_v30 = vadd.f32 -0.3302995, %v138_v23  ;;  %v361_v23 = vsel %vm166_vm9, 1.0, %v448_v8 }
  0x4e   :  { %v140_v31 = vmul.f32 %v139_v30, %v133_v5 }
  0x50   :  { %v141_v35 = vadd.f32 0.999866, %v140_v31 }
  0x52   :  { %v142_v38 = vmul.f32 %v141_v35, %v132_v62  ;;  %v153_v62 = vmul.f32 %v443_v59, %v124_v43 }
  0x54   :  { %v143_v45 = vsub.f32 1.5707964, %v142_v38 }
  0x56   :  { %v144_v49 = vsel %vm128_vm8, %v143_v45, %v142_v38 }
  0x57   :  { %v145_v52 = vsub.f32 %v359_v10, %v144_v49 }
  0x59   :  { %v146_v37 = vmul.f32 %v145_v52, %v145_v52 }
  0x5b   :  { %v147_v15 = vmul.f32 0.40528473, %v146_v37 }
  0x5d   :  { %v148_v41 = vsub.f32 %v147_v15, %v104_v53 }
  0x5f   :  { %v149_v55 = vadd.f32 1.0000001, %v148_v41 }
  0x61   :  { %444 = vrcp.f32 %v149_v55 }
  0x62   :  { %446 = vlog2.f32 %v180_v2 }
  0x6b   :  { %v445_v60 = vpop.eup %444 }
  0x6c   :  { %v151_v61 = vmul.f32 %v445_v60, %v147_v15  ;;  %v447_v16 = vpop.eup %446 }
  0x6d   :  { %v182_v20 = vmul.f32 0.6931472, %v447_v16 }
  0x6e   :  { %v154_v4 = vmul.f32 %v151_v61, %v147_v15 }
  0x70   :  { %v155_v3 = vadd.f32 %v154_v4, %v153_v62 }
  0x72   :  { %v156_v0 = vsub.f32 %v104_v53, %v155_v3 }
  0x74   :  { %v169_v5 = vmax.f32 %v156_v0, 0.0  ;;  %v324_v7 = vsub.f32 1.0, %v156_v0 }
  0x76   :  { %v325_v17 = vmul.f32 %v479_v6, %v324_v7  ;;  %v170_v1 = vmul.f32 %v479_v6, %v169_v5 }
  0x78   :  { %v174_v19 = vmul.f32 %v662_v28, %v170_v1  ;;  %327 = vst [vmem:[%s691_s2] sm:$0xff] %v325_v17 }
  0x7a   :  { %v175_v21 = vsub.f32 %v173_v9, %v174_v19 }
  0x7c   :  { %v183_v24 = vadd.f32 %v182_v20, %v175_v21 }
  0x7e   :  { %v184_v26 = vmul.f32 %v361_v23, %v183_v24 }
  0x80   :  { %382 = vst [vmem:[%s691_s2 + $0x10] sm:$0xff] %v184_v26 }

</bundles_post_ra>
